<compile_context>
chip_gen: v5e
topology: v5e:2x2
jax: 0.10.0
libtpu: 0.0.40
codegen_flags: <defaults>
</compile_context>

<pallas_src>
import functools
import math

import jax
import jax.numpy as jnp
from jax.experimental import pallas as pl
from jax.experimental.pallas import tpu as pltpu

NEG_INF = -1e30  # additive mask value (keeps softmax finite in f32)


# ------------------------------ in-kernel helpers ------------------------------
def _layernorm(x, g, b):
    """x: (M, E) f32; g, b: (1, E). PyTorch LayerNorm, eps=1e-5."""
    mean = jnp.mean(x, axis=-1, keepdims=True)
    xc = x - mean
    var = jnp.mean(xc * xc, axis=-1, keepdims=True)
    return xc * jax.lax.rsqrt(var + 1e-5) * g + b


def _mha(x_q, x_kv, bias, wqkv_ref, b_q, b_k, b_v, w_o, b_o, bn, Sq, Sk, H, D):
    """Multi-head attention fully in-kernel, head-fused projections.

    x_q: (bn*Sq, E) f32; x_kv: (bn*Sk, E) f32; bias: broadcastable to (bn, Sq, Sk) f32.
    wqkv_ref: VMEM ref (1, 3, E, E) bf16 (1/sqrt(D) pre-folded into the Q slab).
    b_q/b_k/b_v/b_o: (1, E) f32.  w_o: (E, E) bf16.
    """
    xq = x_q.astype(jnp.bfloat16)
    xkv = x_kv.astype(jnp.bfloat16)
    # Fused-across-heads projections: full (E,E) contractions on the MXU.
    q = jnp.dot(xq, wqkv_ref[0, 0], preferred_element_type=jnp.float32) + b_q
    k = jnp.dot(xkv, wqkv_ref[0, 1], preferred_element_type=jnp.float32) + b_k
    v = jnp.dot(xkv, wqkv_ref[0, 2], preferred_element_type=jnp.float32) + b_v
    ctx = []
    for h in range(H):  # static loop; heads are static lane slices of the fused Q/K/V
        sl = slice(h * D, (h + 1) * D)
        qh = q[:, sl].reshape(bn, Sq, D).astype(jnp.bfloat16)
        kh = k[:, sl].reshape(bn, Sk, D).astype(jnp.bfloat16)
        vh = v[:, sl].reshape(bn, Sk, D).astype(jnp.bfloat16)
        # QK^T without an explicit transpose (contract on D in stored layout).
        s = jnp.einsum('nqd,nkd->nqk', qh, kh, preferred_element_type=jnp.float32) + bias
        m = jnp.max(s, axis=-1, keepdims=True)
        p = jnp.exp(s - m)
        denom = jnp.sum(p, axis=-1, keepdims=True)
        oh = jnp.einsum('nqk,nkd->nqd', p.astype(jnp.bfloat16), vh,
                        preferred_element_type=jnp.float32)
        oh = oh * pl.reciprocal(denom, approx=True)   # normalize the (Sq,D) output (EUP slot)
        ctx.append(oh.reshape(bn * Sq, D))
    ctx = jnp.concatenate(ctx, axis=1)                 # (bn*Sq, E): all heads, one slab
    # Single full-width output projection instead of H tiny (D->E) matmuls.
    return jnp.dot(ctx.astype(jnp.bfloat16), w_o, preferred_element_type=jnp.float32) + b_o


# ------------------------- fused layer-STACK kernels ----------------------------
def _encoder_stack_kernel(x_ref, kpm_ref, wqkv_ref, wo_ref, w1_ref, w2_ref, b1_ref, misc_ref,
                          o_ref, act_ref, *, n_heads):
    l = pl.program_id(1)
    bn, S, E = act_ref.shape
    H = n_heads
    D = E // H

    @pl.when(l == 0)
    def _():  # load the layer-0 input; afterwards the activation stays resident in VMEM
        act_ref[...] = x_ref[...].astype(jnp.float32)

    x = act_ref[...].reshape(bn * S, E)

    misc = misc_ref[0]  # (9, E): [bq, bk, bv, bo, b2, ln1_g, ln1_b, ln2_g, ln2_b]
    bq, bk, bv, bo, b2 = misc[0:1], misc[1:2], misc[2:3], misc[3:4], misc[4:5]
    ln1_g, ln1_b, ln2_g, ln2_b = misc[5:6], misc[6:7], misc[7:8], misc[8:9]

    bias = kpm_ref[...]  # (bn, 1, S) additive key-padding mask; broadcast over q inside _mha

    a = _mha(x, x, bias, wqkv_ref, bq, bk, bv, wo_ref[0], bo, bn, S, S, H, D)
    x = _layernorm(x + a, ln1_g, ln1_b)

    # fused FFN: the (M, Hff) hidden never leaves VMEM/vregs
    # TODO(synk): at real sizes (E=256, Hff=512 here is toy) tile Hff with an
    # accumulator loop to respect v7x's 64 MiB VMEM.
    h = jnp.maximum(
        jnp.dot(x.astype(jnp.bfloat16), w1_ref[0], preferred_element_type=jnp.float32) + b1_ref[0],
        0.0)
    f = jnp.dot(h.astype(jnp.bfloat16), w2_ref[0], preferred_element_type=jnp.float32) + b2
    x = _layernorm(x + f, ln2_g, ln2_b)

    x = x.reshape(bn, S, E)
    act_ref[...] = x
    o_ref[...] = x


def _decoder_stack_kernel(y_ref, mem_ref, kpm_trg_ref, kpm_src_ref, causal_ref,
                          s_wqkv_ref, s_wo_ref, c_wqkv_ref, c_wo_ref,
                          w1_ref, w2_ref, b1_ref, misc_ref,
                          o_ref, act_ref, *, n_heads):
    l = pl.program_id(1)
    bn, St, E = act_ref.shape
    Ss = mem_ref.shape[1]
    H = n_heads
    D = E // H

    @pl.when(l == 0)
    def _():
        act_ref[...] = y_ref[...].astype(jnp.float32)

    y = act_ref[...].reshape(bn * St, E)
    mem = mem_ref[...].astype(jnp.float32).reshape(bn * Ss, E)

    misc = misc_ref[0]  # (15, E)
    s_bq, s_bk, s_bv, s_bo = misc[0:1], misc[1:2], misc[2:3], misc[3:4]
    c_bq, c_bk, c_bv, c_bo = misc[4:5], misc[5:6], misc[6:7], misc[7:8]
    b2 = misc[8:9]
    ln1_g, ln1_b = misc[9:10], misc[10:11]
    ln2_g, ln2_b = misc[11:12], misc[12:13]
    ln3_g, ln3_b = misc[13:14], misc[14:15]

    # masked causal self-attention: (bn,1,St) key-padding + (1,St,St) causal (DMA'd once).
    self_bias = kpm_trg_ref[...] + causal_ref[...]
    a = _mha(y, y, self_bias, s_wqkv_ref, s_bq, s_bk, s_bv, s_wo_ref[0], s_bo,
             bn, St, St, H, D)
    y = _layernorm(y + a, ln1_g, ln1_b)

    # cross-attention over encoder memory (memory key-padding mask only).
    c = _mha(y, mem, kpm_src_ref[...], c_wqkv_ref, c_bq, c_bk, c_bv, c_wo_ref[0], c_bo,
             bn, St, Ss, H, D)
    y = _layernorm(y + c, ln2_g, ln2_b)

    h = jnp.maximum(
        jnp.dot(y.astype(jnp.bfloat16), w1_ref[0], preferred_element_type=jnp.float32) + b1_ref[0],
        0.0)
    f = jnp.dot(h.astype(jnp.bfloat16), w2_ref[0], preferred_element_type=jnp.float32) + b2
    y = _layernorm(y + f, ln3_g, ln3_b)

    y = y.reshape(bn, St, E)
    act_ref[...] = y
    o_ref[...] = y


def _linear_kernel(x_ref, w_ref, b_ref, o_ref):
    o_ref[...] = (jnp.dot(x_ref[...].astype(jnp.bfloat16), w_ref[...],
                          preferred_element_type=jnp.float32) + b_ref[...]).astype(o_ref.dtype)


# --------------------------------- wrappers ------------------------------------
def _pick_bn(N):
    # >=2 grid steps on the batch axis when possible so v7x's 2 TensorCores both work.
    bn = max(1, N // 2)
    return bn if N % bn == 0 else 1


def encoder_stack(x, kpm, w, n_heads):
    """x: (N, S, E) f32, kpm: (N, 1, S) additive f32 mask, w: stacked (L, ...) slabs."""
    N, S, E = x.shape
    L = w["wqkv"].shape[0]
    Hff = w["w1"].shape[2]
    bn = _pick_bn(N)
    kernel = functools.partial(_encoder_stack_kernel, n_heads=n_heads)
    return pl.pallas_call(
        kernel,
        grid=(N // bn, L),
        in_specs=[
            pl.BlockSpec((bn, S, E), lambda b, l: (b, 0, 0)),
            pl.BlockSpec((bn, 1, S), lambda b, l: (b, 0, 0)),
            pl.BlockSpec((1, 3, E, E), lambda b, l: (l, 0, 0, 0)),
            pl.BlockSpec((1, E, E), lambda b, l: (l, 0, 0)),
            pl.BlockSpec((1, E, Hff), lambda b, l: (l, 0, 0)),
            pl.BlockSpec((1, Hff, E), lambda b, l: (l, 0, 0)),
            pl.BlockSpec((1, 1, Hff), lambda b, l: (l, 0, 0)),
            pl.BlockSpec((1, 9, E), lambda b, l: (l, 0, 0)),
        ],
        out_specs=pl.BlockSpec((bn, S, E), lambda b, l: (b, 0, 0)),
        out_shape=jax.ShapeDtypeStruct((N, S, E), jnp.float32),
        scratch_shapes=[pltpu.VMEM((bn, S, E), jnp.float32)],
        compiler_params=pltpu.CompilerParams(
            dimension_semantics=("parallel", "arbitrary"),
            vmem_limit_bytes=32 * 1024 * 1024),
    )(x, kpm, w["wqkv"], w["wo"], w["w1"], w["w2"], w["b1"], w["misc"])


def decoder_stack(y, memory, kpm_trg, kpm_src, causal, w, n_heads):
    N, St, E = y.shape
    Ss = memory.shape[1]
    L = w["s_wqkv"].shape[0]
    Hff = w["w1"].shape[2]
    bn = _pick_bn(N)
    kernel = functools.partial(_decoder_stack_kernel, n_heads=n_heads)
    return pl.pallas_call(
        kernel,
        grid=(N // bn, L),
        in_specs=[
            pl.BlockSpec((bn, St, E), lambda b, l: (b, 0, 0)),
            pl.BlockSpec((bn, Ss, E), lambda b, l: (b, 0, 0)),
            pl.BlockSpec((bn, 1, St), lambda b, l: (b, 0, 0)),
            pl.BlockSpec((bn, 1, Ss), lambda b, l: (b, 0, 0)),
            pl.BlockSpec((1, St, St), lambda b, l: (0, 0, 0)),
            pl.BlockSpec((1, 3, E, E), lambda b, l: (l, 0, 0, 0)),
            pl.BlockSpec((1, E, E), lambda b, l: (l, 0, 0)),
            pl.BlockSpec((1, 3, E, E), lambda b, l: (l, 0, 0, 0)),
            pl.BlockSpec((1, E, E), lambda b, l: (l, 0, 0)),
            pl.BlockSpec((1, E, Hff), lambda b, l: (l, 0, 0)),
            pl.BlockSpec((1, Hff, E), lambda b, l: (l, 0, 0)),
            pl.BlockSpec((1, 1, Hff), lambda b, l: (l, 0, 0)),
            pl.BlockSpec((1, 15, E), lambda b, l: (l, 0, 0)),
        ],
        out_specs=pl.BlockSpec((bn, St, E), lambda b, l: (b, 0, 0)),
        out_shape=jax.ShapeDtypeStruct((N, St, E), jnp.float32),
        scratch_shapes=[pltpu.VMEM((bn, St, E), jnp.float32)],
        compiler_params=pltpu.CompilerParams(
            dimension_semantics=("parallel", "arbitrary"),
            vmem_limit_bytes=32 * 1024 * 1024),
    )(y, memory, kpm_trg, kpm_src, causal,
      w["s_wqkv"], w["s_wo"], w["c_wqkv"], w["c_wo"],
      w["w1"], w["w2"], w["b1"], w["misc"])


def linear(x, w, b, *, block_m=256, block_n=512):
    """Row- and column-tiled, lane-dense output projection. x: (M,K) f32, w: (K,Vp) bf16."""
    M, K = x.shape
    V = w.shape[1]
    bm = M if M <= block_m else block_m
    bn_ = V if V <= block_n else block_n
    return pl.pallas_call(
        _linear_kernel,
        grid=(pl.cdiv(M, bm), pl.cdiv(V, bn_)),
        in_specs=[pl.BlockSpec((bm, K), lambda i, j: (i, 0)),
                  pl.BlockSpec((K, bn_), lambda i, j: (0, j)),
                  pl.BlockSpec((1, bn_), lambda i, j: (0, j))],
        out_specs=pl.BlockSpec((bm, bn_), lambda i, j: (i, j)),
        out_shape=jax.ShapeDtypeStruct((M, V), jnp.float32),
        compiler_params=pltpu.CompilerParams(dimension_semantics=("parallel", "parallel")),
    )(x, w, b)


# ------------------------------ full forward pass -------------------------------
def transformer_forward(params, src, trg, n_heads, pad_idx):
    S_src, N = src.shape
    S_trg, _ = trg.shape
    E = params["embedding"].shape[1]
    V = params["embedding"].shape[0]

    # Positional-encoding parameter is zero-initialized in __init__, so this add is a no-op.
    # TODO(synk): the original adds a (1,S,E) PE to an (S,N,E) embedding (only broadcasts
    # when N == S); we add along the sequence axis instead (all zeros either way).
    pe_src = params["pos_enc"][0, :S_src, :][:, None, :]
    pe_trg = params["pos_enc"][0, :S_trg, :][:, None, :]
    embed_src = jnp.take(params["embedding"], src, axis=0) + pe_src   # (S, N, E)
    embed_trg = jnp.take(params["embedding"], trg, axis=0) + pe_trg

    # batch-major layout for the fused stack kernels
    x = embed_src.transpose(1, 0, 2)     # (N, S_src, E)
    y = embed_trg.transpose(1, 0, 2)     # (N, S_trg, E)

    # tiny additive key-padding masks (N, 1, S); causal mask is a (1, St, St) constant.
    # TODO(synk): original calls self.transformer.generate_square_subsequent_mask but
    # self.transformer is never defined; the equivalent causal mask is built here.
    src_kpm = jnp.where((src == pad_idx).T, NEG_INF, 0.0).astype(jnp.float32)[:, None, :]
    trg_kpm = jnp.where((trg == pad_idx).T, NEG_INF, 0.0).astype(jnp.float32)[:, None, :]
    row = jnp.arange(S_trg)[:, None]
    col = jnp.arange(S_trg)[None, :]
    causal = jnp.where(col > row, NEG_INF, 0.0).astype(jnp.float32)[None]   # (1, St, St)

    memory = encoder_stack(x, src_kpm, params["encoder"], n_heads)
    y = decoder_stack(y, memory, trg_kpm, src_kpm, causal, params["decoder"], n_heads)

    # final projection: rows ordered (s, n) so logits land directly in (S_trg, N, V)
    # without transposing the large logits tensor (vocab dim padded to a 128 multiple).
    y_sn = y.transpose(1, 0, 2).reshape(S_trg * N, E)
    logits = linear(y_sn, params["fc_out_w"], params["fc_out_b"])
    return logits.reshape(S_trg, N, -1)[:, :, :V]


# ------------------------------ parameter init ----------------------------------
def _init_encoder_stack(key, E, Hff, L, H):
    D = E // H
    scale = 1.0 / math.sqrt(D)
    wqkv_l, wo_l, w1_l, w2_l, b1_l, misc_l = [], [], [], [], [], []
    for i in range(L):
        k = jax.random.split(jax.random.fold_in(key, i), 6)
        wq = jax.random.normal(k[0], (E, E), jnp.float32) * 0.02 * scale  # 1/sqrt(D) folded in
        wk = jax.random.normal(k[1], (E, E), jnp.float32) * 0.02
        wv = jax.random.normal(k[2], (E, E), jnp.float32) * 0.02
        wqkv_l.append(jnp.stack([wq, wk, wv]))
        wo_l.append(jax.random.normal(k[3], (E, E), jnp.float32) * 0.02)
        w1_l.append(jax.random.normal(k[4], (E, Hff), jnp.float32) * 0.02)
        w2_l.append(jax.random.normal(k[5], (Hff, E), jnp.float32) * 0.02)
        b1_l.append(jnp.zeros((1, Hff), jnp.float32))
        # [bq, bk, bv, bo, b2, ln1_g, ln1_b, ln2_g, ln2_b]
        misc_l.append(jnp.zeros((9, E), jnp.float32).at[jnp.array([5, 7])].set(1.0))
    return dict(
        wqkv=jnp.stack(wqkv_l).astype(jnp.bfloat16),
        wo=jnp.stack(wo_l).astype(jnp.bfloat16),
        w1=jnp.stack(w1_l).astype(jnp.bfloat16),
        w2=jnp.stack(w2_l).astype(jnp.bfloat16),
        b1=jnp.stack(b1_l),
        misc=jnp.stack(misc_l),
    )


def _init_decoder_stack(key, E, Hff, L, H):
    D = E // H
    scale = 1.0 / math.sqrt(D)
    s_wqkv_l, s_wo_l, c_wqkv_l, c_wo_l = [], [], [], []
    w1_l, w2_l, b1_l, misc_l = [], [], [], []
    for i in range(L):
        k = jax.random.split(jax.random.fold_in(key, i), 10)
        s_wq = jax.random.normal(k[0], (E, E), jnp.float32) * 0.02 * scale
        s_wk = jax.random.normal(k[1], (E, E), jnp.float32) * 0.02
        s_wv = jax.random.normal(k[2], (E, E), jnp.float32) * 0.02
        s_wqkv_l.append(jnp.stack([s_wq, s_wk, s_wv]))
        s_wo_l.append(jax.random.normal(k[3], (E, E), jnp.float32) * 0.02)
        c_wq = jax.random.normal(k[4], (E, E), jnp.float32) * 0.02 * scale
        c_wk = jax.random.normal(k[5], (E, E), jnp.float32) * 0.02
        c_wv = jax.random.normal(k[6], (E, E), jnp.float32) * 0.02
        c_wqkv_l.append(jnp.stack([c_wq, c_wk, c_wv]))
        c_wo_l.append(jax.random.normal(k[7], (E, E), jnp.float32) * 0.02)
        w1_l.append(jax.random.normal(k[8], (E, Hff), jnp.float32) * 0.02)
        w2_l.append(jax.random.normal(k[9], (Hff, E), jnp.float32) * 0.02)
        b1_l.append(jnp.zeros((1, Hff), jnp.float32))
        # [s_bq,s_bk,s_bv,s_bo, c_bq,c_bk,c_bv,c_bo, b2, ln1_g,ln1_b, ln2_g,ln2_b, ln3_g,ln3_b]
        misc_l.append(jnp.zeros((15, E), jnp.float32).at[jnp.array([9, 11, 13])].set(1.0))
    return dict(
        s_wqkv=jnp.stack(s_wqkv_l).astype(jnp.bfloat16),
        s_wo=jnp.stack(s_wo_l).astype(jnp.bfloat16),
        c_wqkv=jnp.stack(c_wqkv_l).astype(jnp.bfloat16),
        c_wo=jnp.stack(c_wo_l).astype(jnp.bfloat16),
        w1=jnp.stack(w1_l).astype(jnp.bfloat16),
        w2=jnp.stack(w2_l).astype(jnp.bfloat16),
        b1=jnp.stack(b1_l),
        misc=jnp.stack(misc_l),
    )


def init_params(key, input_dim, emb_dim, hidden_dim, n_layers, n_heads):
    k = jax.random.split(key, 4)
    Vp = ((input_dim + 127) // 128) * 128        # lane-dense (padded) vocab dim
    fc_w = jax.random.normal(k[1], (emb_dim, input_dim), jnp.float32) * 0.02
    fc_w = jnp.pad(fc_w, ((0, 0), (0, Vp - input_dim)))
    return dict(
        embedding=jax.random.normal(k[0], (input_dim, emb_dim), jnp.float32),
        pos_enc=jnp.zeros((1, 1000, emb_dim), jnp.float32),   # as in __init__: torch.zeros
        encoder=_init_encoder_stack(k[2], emb_dim, hidden_dim, n_layers, n_heads),
        decoder=_init_decoder_stack(k[3], emb_dim, hidden_dim, n_layers, n_heads),
        fc_out_w=fc_w.astype(jnp.bfloat16),
        fc_out_b=jnp.zeros((1, Vp), jnp.float32),
    )


# ------------------------------------ main ---------------------------------------
if __name__ == "__main__":
    # Small, module-consistent shapes
    input_dim = 64      # vocab size
    emb_dim = 32
    n_heads = 4
    hidden_dim = 64
    n_layers = 2
    pad_idx = 0         # vocab['<pad>'] == 0 (specials come first)
    S_src, S_trg, N = 8, 8, 2

    key = jax.random.PRNGKey(0)
    kp, ks, kt = jax.random.split(key, 3)
    params = init_params(kp, input_dim, emb_dim, hidden_dim, n_layers, n_heads)

    src = jax.random.randint(ks, (S_src, N), 4, input_dim, dtype=jnp.int32)
    trg = jax.random.randint(kt, (S_trg, N), 4, input_dim, dtype=jnp.int32)
    # introduce some padding tokens (last positions of batch element 1)
    src = src.at[-1, 1].set(pad_idx)
    trg = trg.at[-1, 1].set(pad_idx)

    fwd = jax.jit(functools.partial(transformer_forward, n_heads=n_heads, pad_idx=pad_idx))
    out = jax.block_until_ready(fwd(params, src, trg))
    assert out.shape == (S_trg, N, input_dim)
    assert bool(jnp.all(jnp.isfinite(out)))
    print("KERNEL_OK")
</pallas_src>

<mosaic_0001>
module attributes {stable_mosaic.version = 11 : i64} {
  func.func @_encoder_stack_kernel(%arg0: i32, %arg1: i32, %arg2: memref<1x8x32xf32, #tpu.memory_space<vmem>>, %arg3: memref<1x1x8xf32, #tpu.memory_space<vmem>>, %arg4: memref<1x3x32x32xbf16, #tpu.memory_space<vmem>>, %arg5: memref<1x32x32xbf16, #tpu.memory_space<vmem>>, %arg6: memref<1x32x64xbf16, #tpu.memory_space<vmem>>, %arg7: memref<1x64x32xbf16, #tpu.memory_space<vmem>>, %arg8: memref<1x1x64xf32, #tpu.memory_space<vmem>>, %arg9: memref<1x9x32xf32, #tpu.memory_space<vmem>>, %arg10: memref<1x8x32xf32, #tpu.memory_space<vmem>>, %arg11: memref<1x8x32xf32, #tpu.memory_space<vmem>>) attributes {dimension_semantics = [#tpu.dimension_semantics<parallel>, #tpu.dimension_semantics<arbitrary>], iteration_bounds = array<i64: 2, 2>, scalar_prefetch = 0 : i64, scratch_operands = 1 : i64, tpu.core_type = #tpu.core_type<tc>, window_params = [{transform_indices = @transform_0, window_bounds = array<i64: 1, 8, 32>}, {transform_indices = @transform_1, window_bounds = array<i64: 1, 1, 8>}, {transform_indices = @transform_2, window_bounds = array<i64: 1, 3, 32, 32>}, {transform_indices = @transform_3, window_bounds = array<i64: 1, 32, 32>}, {transform_indices = @transform_4, window_bounds = array<i64: 1, 32, 64>}, {transform_indices = @transform_5, window_bounds = array<i64: 1, 64, 32>}, {transform_indices = @transform_6, window_bounds = array<i64: 1, 1, 64>}, {transform_indices = @transform_7, window_bounds = array<i64: 1, 9, 32>}, {transform_indices = @transform_8, window_bounds = array<i64: 1, 8, 32>}]} {
    %c0_i32 = arith.constant 0 : i32
    %0 = arith.cmpi eq, %arg1, %c0_i32 : i32
    %1 = arith.extui %0 : i1 to i32
    %c0_i32_0 = arith.constant 0 : i32
    %2 = arith.cmpi ne, %1, %c0_i32_0 : i32
    scf.if %2 {
      %c0_69 = arith.constant 0 : index
      %c0_70 = arith.constant 0 : index
      %c0_71 = arith.constant 0 : index
      %202 = vector.load %arg2[%c0_69, %c0_70, %c0_71] : memref<1x8x32xf32, #tpu.memory_space<vmem>>, vector<1x8x32xf32>
      %c0_72 = arith.constant 0 : index
      %c0_73 = arith.constant 0 : index
      %c0_74 = arith.constant 0 : index
      %203 = vector.load %arg11[%c0_72, %c0_73, %c0_74] : memref<1x8x32xf32, #tpu.memory_space<vmem>>, vector<1x8x32xf32>
      tpu.vector_store %arg11[%c0_72, %c0_73, %c0_74], %202 {strides = array<i32>} : memref<1x8x32xf32, #tpu.memory_space<vmem>>, vector<1x8x32xf32>,
    } else {
    }
    %c0 = arith.constant 0 : index
    %c0_1 = arith.constant 0 : index
    %c0_2 = arith.constant 0 : index
    %3 = vector.load %arg11[%c0, %c0_1, %c0_2] : memref<1x8x32xf32, #tpu.memory_space<vmem>>, vector<1x8x32xf32>
    %4 = vector.shape_cast %3 : vector<1x8x32xf32> to vector<8x32xf32>
    %c0_3 = arith.constant 0 : index
    %c0_4 = arith.constant 0 : index
    %c0_5 = arith.constant 0 : index
    %5 = vector.load %arg9[%c0_3, %c0_4, %c0_5] : memref<1x9x32xf32, #tpu.memory_space<vmem>>, vector<1x9x32xf32>
    %6 = vector.shape_cast %5 : vector<1x9x32xf32> to vector<9x32xf32>
    %7 = vector.extract_strided_slice %6 {offsets = [0, 0], sizes = [1, 32], strides = [1, 1]} : vector<9x32xf32> to vector<1x32xf32>
    %8 = vector.extract_strided_slice %6 {offsets = [1, 0], sizes = [1, 32], strides = [1, 1]} : vector<9x32xf32> to vector<1x32xf32>
    %9 = vector.extract_strided_slice %6 {offsets = [2, 0], sizes = [1, 32], strides = [1, 1]} : vector<9x32xf32> to vector<1x32xf32>
    %10 = vector.extract_strided_slice %6 {offsets = [3, 0], sizes = [1, 32], strides = [1, 1]} : vector<9x32xf32> to vector<1x32xf32>
    %11 = vector.extract_strided_slice %6 {offsets = [4, 0], sizes = [1, 32], strides = [1, 1]} : vector<9x32xf32> to vector<1x32xf32>
    %12 = vector.extract_strided_slice %6 {offsets = [5, 0], sizes = [1, 32], strides = [1, 1]} : vector<9x32xf32> to vector<1x32xf32>
    %13 = vector.extract_strided_slice %6 {offsets = [6, 0], sizes = [1, 32], strides = [1, 1]} : vector<9x32xf32> to vector<1x32xf32>
    %14 = vector.extract_strided_slice %6 {offsets = [7, 0], sizes = [1, 32], strides = [1, 1]} : vector<9x32xf32> to vector<1x32xf32>
    %15 = vector.extract_strided_slice %6 {offsets = [8, 0], sizes = [1, 32], strides = [1, 1]} : vector<9x32xf32> to vector<1x32xf32>
    %c0_6 = arith.constant 0 : index
    %c0_7 = arith.constant 0 : index
    %c0_8 = arith.constant 0 : index
    %16 = vector.load %arg3[%c0_6, %c0_7, %c0_8] : memref<1x1x8xf32, #tpu.memory_space<vmem>>, vector<1x1x8xf32>
    %c0_9 = arith.constant 0 : index
    %c0_10 = arith.constant 0 : index
    %c0_11 = arith.constant 0 : index
    %17 = vector.load %arg5[%c0_9, %c0_10, %c0_11] : memref<1x32x32xbf16, #tpu.memory_space<vmem>>, vector<1x32x32xbf16>
    %18 = vector.shape_cast %17 : vector<1x32x32xbf16> to vector<32x32xbf16>
    %19 = arith.truncf %4 : vector<8x32xf32> to vector<8x32xbf16>
    %20 = arith.truncf %4 : vector<8x32xf32> to vector<8x32xbf16>
    %c0_12 = arith.constant 0 : index
    %c0_13 = arith.constant 0 : index
    %c0_14 = arith.constant 0 : index
    %c0_15 = arith.constant 0 : index
    %21 = vector.load %arg4[%c0_12, %c0_13, %c0_14, %c0_15] : memref<1x3x32x32xbf16, #tpu.memory_space<vmem>>, vector<1x1x32x32xbf16>
    %22 = vector.shape_cast %21 : vector<1x1x32x32xbf16> to vector<32x32xbf16>
    %cst = arith.constant dense<0.000000e+00> : vector<8x32xf32>
    %23 = tpu.matmul %19, %22, %cst {dimension_numbers = #tpu.dot_dimension_numbers<[1], [0], [0], [1], [0, 0, 1, 1], [], []>} : vector<8x32xbf16>, vector<32x32xbf16>, vector<8x32xf32> -> vector<8x32xf32>
    %24 = vector.broadcast %7 : vector<1x32xf32> to vector<8x32xf32>
    %25 = arith.addf %23, %24 : vector<8x32xf32>
    %c0_16 = arith.constant 0 : index
    %c1 = arith.constant 1 : index
    %c0_17 = arith.constant 0 : index
    %c0_18 = arith.constant 0 : index
    %26 = vector.load %arg4[%c0_16, %c1, %c0_17, %c0_18] : memref<1x3x32x32xbf16, #tpu.memory_space<vmem>>, vector<1x1x32x32xbf16>
    %27 = vector.shape_cast %26 : vector<1x1x32x32xbf16> to vector<32x32xbf16>
    %cst_19 = arith.constant dense<0.000000e+00> : vector<8x32xf32>
    %28 = tpu.matmul %20, %27, %cst_19 {dimension_numbers = #tpu.dot_dimension_numbers<[1], [0], [0], [1], [0, 0, 1, 1], [], []>} : vector<8x32xbf16>, vector<32x32xbf16>, vector<8x32xf32> -> vector<8x32xf32>
    %29 = vector.broadcast %8 : vector<1x32xf32> to vector<8x32xf32>
    %30 = arith.addf %28, %29 : vector<8x32xf32>
    %c0_20 = arith.constant 0 : index
    %c2 = arith.constant 2 : index
    %c0_21 = arith.constant 0 : index
    %c0_22 = arith.constant 0 : index
    %31 = vector.load %arg4[%c0_20, %c2, %c0_21, %c0_22] : memref<1x3x32x32xbf16, #tpu.memory_space<vmem>>, vector<1x1x32x32xbf16>
    %32 = vector.shape_cast %31 : vector<1x1x32x32xbf16> to vector<32x32xbf16>
    %cst_23 = arith.constant dense<0.000000e+00> : vector<8x32xf32>
    %33 = tpu.matmul %20, %32, %cst_23 {dimension_numbers = #tpu.dot_dimension_numbers<[1], [0], [0], [1], [0, 0, 1, 1], [], []>} : vector<8x32xbf16>, vector<32x32xbf16>, vector<8x32xf32> -> vector<8x32xf32>
    %34 = vector.broadcast %9 : vector<1x32xf32> to vector<8x32xf32>
    %35 = arith.addf %33, %34 : vector<8x32xf32>
    %36 = vector.extract_strided_slice %25 {offsets = [0, 0], sizes = [8, 8], strides = [1, 1]} : vector<8x32xf32> to vector<8x8xf32>
    %37 = vector.shape_cast %36 : vector<8x8xf32> to vector<1x8x8xf32>
    %38 = arith.truncf %37 : vector<1x8x8xf32> to vector<1x8x8xbf16>
    %39 = vector.extract_strided_slice %30 {offsets = [0, 0], sizes = [8, 8], strides = [1, 1]} : vector<8x32xf32> to vector<8x8xf32>
    %40 = vector.shape_cast %39 : vector<8x8xf32> to vector<1x8x8xf32>
    %41 = arith.truncf %40 : vector<1x8x8xf32> to vector<1x8x8xbf16>
    %42 = vector.extract_strided_slice %35 {offsets = [0, 0], sizes = [8, 8], strides = [1, 1]} : vector<8x32xf32> to vector<8x8xf32>
    %43 = vector.shape_cast %42 : vector<8x8xf32> to vector<1x8x8xf32>
    %44 = arith.truncf %43 : vector<1x8x8xf32> to vector<1x8x8xbf16>
    "tpu.trace_start"() <{level = 10 : i32, message = "nqd,nkd->nqk"}> : () -> ()
    %cst_24 = arith.constant dense<0.000000e+00> : vector<1x8x8xf32>
    %45 = tpu.matmul %38, %41, %cst_24 {dimension_numbers = #tpu.dot_dimension_numbers<[2], [2], [1], [1], [0, 0, 0, 1, 1, 1], [0], [0]>} : vector<1x8x8xbf16>, vector<1x8x8xbf16>, vector<1x8x8xf32> -> vector<1x8x8xf32>
    "tpu.trace_stop"() : () -> ()
    %46 = vector.broadcast %16 : vector<1x1x8xf32> to vector<1x8x8xf32>
    %47 = arith.addf %45, %46 : vector<1x8x8xf32>
    %cst_25 = arith.constant dense<0xFF800000> : vector<1x8xf32>
    %48 = vector.multi_reduction <maximumf>, %47, %cst_25 [2] : vector<1x8x8xf32> to vector<1x8xf32>
    %49 = vector.shape_cast %48 : vector<1x8xf32> to vector<1x8x1xf32>
    %50 = vector.broadcast %49 : vector<1x8x1xf32> to vector<1x8x8xf32>
    %51 = arith.subf %47, %50 : vector<1x8x8xf32>
    %52 = math.exp %51 : vector<1x8x8xf32>
    %cst_26 = arith.constant dense<0.000000e+00> : vector<1x8xf32>
    %53 = vector.multi_reduction <add>, %52, %cst_26 [2] : vector<1x8x8xf32> to vector<1x8xf32>
    %54 = vector.shape_cast %53 : vector<1x8xf32> to vector<1x8x1xf32>
    %55 = arith.truncf %52 : vector<1x8x8xf32> to vector<1x8x8xbf16>
    "tpu.trace_start"() <{level = 10 : i32, message = "nqk,nkd->nqd"}> : () -> ()
    %cst_27 = arith.constant dense<0.000000e+00> : vector<1x8x8xf32>
    %56 = tpu.matmul %55, %44, %cst_27 {dimension_numbers = #tpu.dot_dimension_numbers<[2], [1], [1], [2], [0, 0, 0, 1, 1, 2], [0], [0]>} : vector<1x8x8xbf16>, vector<1x8x8xbf16>, vector<1x8x8xf32> -> vector<1x8x8xf32>
    "tpu.trace_stop"() : () -> ()
    %57 = tpu.reciprocal %54 {approx = true} : vector<1x8x1xf32> -> vector<1x8x1xf32>
    %58 = vector.broadcast %57 : vector<1x8x1xf32> to vector<1x8x8xf32>
    %59 = arith.mulf %56, %58 : vector<1x8x8xf32>
    %60 = vector.shape_cast %59 : vector<1x8x8xf32> to vector<8x8xf32>
    %61 = vector.extract_strided_slice %25 {offsets = [0, 8], sizes = [8, 8], strides = [1, 1]} : vector<8x32xf32> to vector<8x8xf32>
    %62 = vector.shape_cast %61 : vector<8x8xf32> to vector<1x8x8xf32>
    %63 = arith.truncf %62 : vector<1x8x8xf32> to vector<1x8x8xbf16>
    %64 = vector.extract_strided_slice %30 {offsets = [0, 8], sizes = [8, 8], strides = [1, 1]} : vector<8x32xf32> to vector<8x8xf32>
    %65 = vector.shape_cast %64 : vector<8x8xf32> to vector<1x8x8xf32>
    %66 = arith.truncf %65 : vector<1x8x8xf32> to vector<1x8x8xbf16>
    %67 = vector.extract_strided_slice %35 {offsets = [0, 8], sizes = [8, 8], strides = [1, 1]} : vector<8x32xf32> to vector<8x8xf32>
    %68 = vector.shape_cast %67 : vector<8x8xf32> to vector<1x8x8xf32>
    %69 = arith.truncf %68 : vector<1x8x8xf32> to vector<1x8x8xbf16>
    "tpu.trace_start"() <{level = 10 : i32, message = "nqd,nkd->nqk"}> : () -> ()
    %cst_28 = arith.constant dense<0.000000e+00> : vector<1x8x8xf32>
    %70 = tpu.matmul %63, %66, %cst_28 {dimension_numbers = #tpu.dot_dimension_numbers<[2], [2], [1], [1], [0, 0, 0, 1, 1, 1], [0], [0]>} : vector<1x8x8xbf16>, vector<1x8x8xbf16>, vector<1x8x8xf32> -> vector<1x8x8xf32>
    "tpu.trace_stop"() : () -> ()
    %71 = vector.broadcast %16 : vector<1x1x8xf32> to vector<1x8x8xf32>
    %72 = arith.addf %70, %71 : vector<1x8x8xf32>
    %cst_29 = arith.constant dense<0xFF800000> : vector<1x8xf32>
    %73 = vector.multi_reduction <maximumf>, %72, %cst_29 [2] : vector<1x8x8xf32> to vector<1x8xf32>
    %74 = vector.shape_cast %73 : vector<1x8xf32> to vector<1x8x1xf32>
    %75 = vector.broadcast %74 : vector<1x8x1xf32> to vector<1x8x8xf32>
    %76 = arith.subf %72, %75 : vector<1x8x8xf32>
    %77 = math.exp %76 : vector<1x8x8xf32>
    %cst_30 = arith.constant dense<0.000000e+00> : vector<1x8xf32>
    %78 = vector.multi_reduction <add>, %77, %cst_30 [2] : vector<1x8x8xf32> to vector<1x8xf32>
    %79 = vector.shape_cast %78 : vector<1x8xf32> to vector<1x8x1xf32>
    %80 = arith.truncf %77 : vector<1x8x8xf32> to vector<1x8x8xbf16>
    "tpu.trace_start"() <{level = 10 : i32, message = "nqk,nkd->nqd"}> : () -> ()
    %cst_31 = arith.constant dense<0.000000e+00> : vector<1x8x8xf32>
    %81 = tpu.matmul %80, %69, %cst_31 {dimension_numbers = #tpu.dot_dimension_numbers<[2], [1], [1], [2], [0, 0, 0, 1, 1, 2], [0], [0]>} : vector<1x8x8xbf16>, vector<1x8x8xbf16>, vector<1x8x8xf32> -> vector<1x8x8xf32>
    "tpu.trace_stop"() : () -> ()
    %82 = tpu.reciprocal %79 {approx = true} : vector<1x8x1xf32> -> vector<1x8x1xf32>
    %83 = vector.broadcast %82 : vector<1x8x1xf32> to vector<1x8x8xf32>
    %84 = arith.mulf %81, %83 : vector<1x8x8xf32>
    %85 = vector.shape_cast %84 : vector<1x8x8xf32> to vector<8x8xf32>
    %86 = vector.extract_strided_slice %25 {offsets = [0, 16], sizes = [8, 8], strides = [1, 1]} : vector<8x32xf32> to vector<8x8xf32>
    %87 = vector.shape_cast %86 : vector<8x8xf32> to vector<1x8x8xf32>
    %88 = arith.truncf %87 : vector<1x8x8xf32> to vector<1x8x8xbf16>
    %89 = vector.extract_strided_slice %30 {offsets = [0, 16], sizes = [8, 8], strides = [1, 1]} : vector<8x32xf32> to vector<8x8xf32>
    %90 = vector.shape_cast %89 : vector<8x8xf32> to vector<1x8x8xf32>
    %91 = arith.truncf %90 : vector<1x8x8xf32> to vector<1x8x8xbf16>
    %92 = vector.extract_strided_slice %35 {offsets = [0, 16], sizes = [8, 8], strides = [1, 1]} : vector<8x32xf32> to vector<8x8xf32>
    %93 = vector.shape_cast %92 : vector<8x8xf32> to vector<1x8x8xf32>
    %94 = arith.truncf %93 : vector<1x8x8xf32> to vector<1x8x8xbf16>
    "tpu.trace_start"() <{level = 10 : i32, message = "nqd,nkd->nqk"}> : () -> ()
    %cst_32 = arith.constant dense<0.000000e+00> : vector<1x8x8xf32>
    %95 = tpu.matmul %88, %91, %cst_32 {dimension_numbers = #tpu.dot_dimension_numbers<[2], [2], [1], [1], [0, 0, 0, 1, 1, 1], [0], [0]>} : vector<1x8x8xbf16>, vector<1x8x8xbf16>, vector<1x8x8xf32> -> vector<1x8x8xf32>
    "tpu.trace_stop"() : () -> ()
    %96 = vector.broadcast %16 : vector<1x1x8xf32> to vector<1x8x8xf32>
    %97 = arith.addf %95, %96 : vector<1x8x8xf32>
    %cst_33 = arith.constant dense<0xFF800000> : vector<1x8xf32>
    %98 = vector.multi_reduction <maximumf>, %97, %cst_33 [2] : vector<1x8x8xf32> to vector<1x8xf32>
    %99 = vector.shape_cast %98 : vector<1x8xf32> to vector<1x8x1xf32>
    %100 = vector.broadcast %99 : vector<1x8x1xf32> to vector<1x8x8xf32>
    %101 = arith.subf %97, %100 : vector<1x8x8xf32>
    %102 = math.exp %101 : vector<1x8x8xf32>
    %cst_34 = arith.constant dense<0.000000e+00> : vector<1x8xf32>
    %103 = vector.multi_reduction <add>, %102, %cst_34 [2] : vector<1x8x8xf32> to vector<1x8xf32>
    %104 = vector.shape_cast %103 : vector<1x8xf32> to vector<1x8x1xf32>
    %105 = arith.truncf %102 : vector<1x8x8xf32> to vector<1x8x8xbf16>
    "tpu.trace_start"() <{level = 10 : i32, message = "nqk,nkd->nqd"}> : () -> ()
    %cst_35 = arith.constant dense<0.000000e+00> : vector<1x8x8xf32>
    %106 = tpu.matmul %105, %94, %cst_35 {dimension_numbers = #tpu.dot_dimension_numbers<[2], [1], [1], [2], [0, 0, 0, 1, 1, 2], [0], [0]>} : vector<1x8x8xbf16>, vector<1x8x8xbf16>, vector<1x8x8xf32> -> vector<1x8x8xf32>
    "tpu.trace_stop"() : () -> ()
    %107 = tpu.reciprocal %104 {approx = true} : vector<1x8x1xf32> -> vector<1x8x1xf32>
    %108 = vector.broadcast %107 : vector<1x8x1xf32> to vector<1x8x8xf32>
    %109 = arith.mulf %106, %108 : vector<1x8x8xf32>
    %110 = vector.shape_cast %109 : vector<1x8x8xf32> to vector<8x8xf32>
    %111 = vector.extract_strided_slice %25 {offsets = [0, 24], sizes = [8, 8], strides = [1, 1]} : vector<8x32xf32> to vector<8x8xf32>
    %112 = vector.shape_cast %111 : vector<8x8xf32> to vector<1x8x8xf32>
    %113 = arith.truncf %112 : vector<1x8x8xf32> to vector<1x8x8xbf16>
    %114 = vector.extract_strided_slice %30 {offsets = [0, 24], sizes = [8, 8], strides = [1, 1]} : vector<8x32xf32> to vector<8x8xf32>
    %115 = vector.shape_cast %114 : vector<8x8xf32> to vector<1x8x8xf32>
    %116 = arith.truncf %115 : vector<1x8x8xf32> to vector<1x8x8xbf16>
    %117 = vector.extract_strided_slice %35 {offsets = [0, 24], sizes = [8, 8], strides = [1, 1]} : vector<8x32xf32> to vector<8x8xf32>
    %118 = vector.shape_cast %117 : vector<8x8xf32> to vector<1x8x8xf32>
    %119 = arith.truncf %118 : vector<1x8x8xf32> to vector<1x8x8xbf16>
    "tpu.trace_start"() <{level = 10 : i32, message = "nqd,nkd->nqk"}> : () -> ()
    %cst_36 = arith.constant dense<0.000000e+00> : vector<1x8x8xf32>
    %120 = tpu.matmul %113, %116, %cst_36 {dimension_numbers = #tpu.dot_dimension_numbers<[2], [2], [1], [1], [0, 0, 0, 1, 1, 1], [0], [0]>} : vector<1x8x8xbf16>, vector<1x8x8xbf16>, vector<1x8x8xf32> -> vector<1x8x8xf32>
    "tpu.trace_stop"() : () -> ()
    %121 = vector.broadcast %16 : vector<1x1x8xf32> to vector<1x8x8xf32>
    %122 = arith.addf %120, %121 : vector<1x8x8xf32>
    %cst_37 = arith.constant dense<0xFF800000> : vector<1x8xf32>
    %123 = vector.multi_reduction <maximumf>, %122, %cst_37 [2] : vector<1x8x8xf32> to vector<1x8xf32>
    %124 = vector.shape_cast %123 : vector<1x8xf32> to vector<1x8x1xf32>
    %125 = vector.broadcast %124 : vector<1x8x1xf32> to vector<1x8x8xf32>
    %126 = arith.subf %122, %125 : vector<1x8x8xf32>
    %127 = math.exp %126 : vector<1x8x8xf32>
    %cst_38 = arith.constant dense<0.000000e+00> : vector<1x8xf32>
    %128 = vector.multi_reduction <add>, %127, %cst_38 [2] : vector<1x8x8xf32> to vector<1x8xf32>
    %129 = vector.shape_cast %128 : vector<1x8xf32> to vector<1x8x1xf32>
    %130 = arith.truncf %127 : vector<1x8x8xf32> to vector<1x8x8xbf16>
    "tpu.trace_start"() <{level = 10 : i32, message = "nqk,nkd->nqd"}> : () -> ()
    %cst_39 = arith.constant dense<0.000000e+00> : vector<1x8x8xf32>
    %131 = tpu.matmul %130, %119, %cst_39 {dimension_numbers = #tpu.dot_dimension_numbers<[2], [1], [1], [2], [0, 0, 0, 1, 1, 2], [0], [0]>} : vector<1x8x8xbf16>, vector<1x8x8xbf16>, vector<1x8x8xf32> -> vector<1x8x8xf32>
    "tpu.trace_stop"() : () -> ()
    %132 = tpu.reciprocal %129 {approx = true} : vector<1x8x1xf32> -> vector<1x8x1xf32>
    %133 = vector.broadcast %132 : vector<1x8x1xf32> to vector<1x8x8xf32>
    %134 = arith.mulf %131, %133 : vector<1x8x8xf32>
    %135 = vector.shape_cast %134 : vector<1x8x8xf32> to vector<8x8xf32>
    %136 = tpu.concatenate %60, %85, %110, %135 in 1 : vector<8x8xf32>, vector<8x8xf32>, vector<8x8xf32>, vector<8x8xf32> -> vector<8x32xf32>
    %137 = arith.truncf %136 : vector<8x32xf32> to vector<8x32xbf16>
    %cst_40 = arith.constant dense<0.000000e+00> : vector<8x32xf32>
    %138 = tpu.matmul %137, %18, %cst_40 {dimension_numbers = #tpu.dot_dimension_numbers<[1], [0], [0], [1], [0, 0, 1, 1], [], []>} : vector<8x32xbf16>, vector<32x32xbf16>, vector<8x32xf32> -> vector<8x32xf32>
    %139 = vector.broadcast %10 : vector<1x32xf32> to vector<8x32xf32>
    %140 = arith.addf %138, %139 : vector<8x32xf32>
    %141 = arith.addf %4, %140 : vector<8x32xf32>
    %cst_41 = arith.constant dense<0.000000e+00> : vector<8xf32>
    %142 = vector.multi_reduction <add>, %141, %cst_41 [1] : vector<8x32xf32> to vector<8xf32>
    %143 = vector.shape_cast %142 : vector<8xf32> to vector<8x1xf32>
    %cst_42 = arith.constant 3.200000e+01 : f32
    %144 = vector.broadcast %cst_42 : f32 to vector<8x1xf32>
    %145 = arith.divf %143, %144 : vector<8x1xf32>
    %146 = vector.broadcast %145 : vector<8x1xf32> to vector<8x32xf32>
    %147 = arith.subf %141, %146 : vector<8x32xf32>
    %148 = arith.mulf %147, %147 : vector<8x32xf32>
    %cst_43 = arith.constant dense<0.000000e+00> : vector<8xf32>
    %149 = vector.multi_reduction <add>, %148, %cst_43 [1] : vector<8x32xf32> to vector<8xf32>
    %150 = vector.shape_cast %149 : vector<8xf32> to vector<8x1xf32>
    %cst_44 = arith.constant 3.200000e+01 : f32
    %151 = vector.broadcast %cst_44 : f32 to vector<8x1xf32>
    %152 = arith.divf %150, %151 : vector<8x1xf32>
    %cst_45 = arith.constant 9.99999974E-6 : f32
    %153 = vector.broadcast %cst_45 : f32 to vector<8x1xf32>
    %154 = arith.addf %152, %153 : vector<8x1xf32>
    %155 = math.rsqrt %154 : vector<8x1xf32>
    %156 = vector.broadcast %155 : vector<8x1xf32> to vector<8x32xf32>
    %157 = arith.mulf %147, %156 : vector<8x32xf32>
    %158 = vector.broadcast %12 : vector<1x32xf32> to vector<8x32xf32>
    %159 = arith.mulf %157, %158 : vector<8x32xf32>
    %160 = vector.broadcast %13 : vector<1x32xf32> to vector<8x32xf32>
    %161 = arith.addf %159, %160 : vector<8x32xf32>
    %162 = arith.truncf %161 : vector<8x32xf32> to vector<8x32xbf16>
    %c0_46 = arith.constant 0 : index
    %c0_47 = arith.constant 0 : index
    %c0_48 = arith.constant 0 : index
    %163 = vector.load %arg6[%c0_46, %c0_47, %c0_48] : memref<1x32x64xbf16, #tpu.memory_space<vmem>>, vector<1x32x64xbf16>
    %164 = vector.shape_cast %163 : vector<1x32x64xbf16> to vector<32x64xbf16>
    %cst_49 = arith.constant dense<0.000000e+00> : vector<8x64xf32>
    %165 = tpu.matmul %162, %164, %cst_49 {dimension_numbers = #tpu.dot_dimension_numbers<[1], [0], [0], [1], [0, 0, 1, 1], [], []>} : vector<8x32xbf16>, vector<32x64xbf16>, vector<8x64xf32> -> vector<8x64xf32>
    %c0_50 = arith.constant 0 : index
    %c0_51 = arith.constant 0 : index
    %c0_52 = arith.constant 0 : index
    %166 = vector.load %arg8[%c0_50, %c0_51, %c0_52] : memref<1x1x64xf32, #tpu.memory_space<vmem>>, vector<1x1x64xf32>
    %167 = vector.shape_cast %166 : vector<1x1x64xf32> to vector<1x64xf32>
    %168 = vector.broadcast %167 : vector<1x64xf32> to vector<8x64xf32>
    %169 = arith.addf %165, %168 : vector<8x64xf32>
    %cst_53 = arith.constant 0.000000e+00 : f32
    %170 = vector.broadcast %cst_53 : f32 to vector<8x64xf32>
    %171 = arith.maximumf %169, %170 : vector<8x64xf32>
    %172 = arith.truncf %171 : vector<8x64xf32> to vector<8x64xbf16>
    %c0_54 = arith.constant 0 : index
    %c0_55 = arith.constant 0 : index
    %c0_56 = arith.constant 0 : index
    %173 = vector.load %arg7[%c0_54, %c0_55, %c0_56] : memref<1x64x32xbf16, #tpu.memory_space<vmem>>, vector<1x64x32xbf16>
    %174 = vector.shape_cast %173 : vector<1x64x32xbf16> to vector<64x32xbf16>
    %cst_57 = arith.constant dense<0.000000e+00> : vector<8x32xf32>
    %175 = tpu.matmul %172, %174, %cst_57 {dimension_numbers = #tpu.dot_dimension_numbers<[1], [0], [0], [1], [0, 0, 1, 1], [], []>} : vector<8x64xbf16>, vector<64x32xbf16>, vector<8x32xf32> -> vector<8x32xf32>
    %176 = vector.broadcast %11 : vector<1x32xf32> to vector<8x32xf32>
    %177 = arith.addf %175, %176 : vector<8x32xf32>
    %178 = arith.addf %161, %177 : vector<8x32xf32>
    %cst_58 = arith.constant dense<0.000000e+00> : vector<8xf32>
    %179 = vector.multi_reduction <add>, %178, %cst_58 [1] : vector<8x32xf32> to vector<8xf32>
    %180 = vector.shape_cast %179 : vector<8xf32> to vector<8x1xf32>
    %cst_59 = arith.constant 3.200000e+01 : f32
    %181 = vector.broadcast %cst_59 : f32 to vector<8x1xf32>
    %182 = arith.divf %180, %181 : vector<8x1xf32>
    %183 = vector.broadcast %182 : vector<8x1xf32> to vector<8x32xf32>
    %184 = arith.subf %178, %183 : vector<8x32xf32>
    %185 = arith.mulf %184, %184 : vector<8x32xf32>
    %cst_60 = arith.constant dense<0.000000e+00> : vector<8xf32>
    %186 = vector.multi_reduction <add>, %185, %cst_60 [1] : vector<8x32xf32> to vector<8xf32>
    %187 = vector.shape_cast %186 : vector<8xf32> to vector<8x1xf32>
    %cst_61 = arith.constant 3.200000e+01 : f32
    %188 = vector.broadcast %cst_61 : f32 to vector<8x1xf32>
    %189 = arith.divf %187, %188 : vector<8x1xf32>
    %cst_62 = arith.constant 9.99999974E-6 : f32
    %190 = vector.broadcast %cst_62 : f32 to vector<8x1xf32>
    %191 = arith.addf %189, %190 : vector<8x1xf32>
    %192 = math.rsqrt %191 : vector<8x1xf32>
    %193 = vector.broadcast %192 : vector<8x1xf32> to vector<8x32xf32>
    %194 = arith.mulf %184, %193 : vector<8x32xf32>
    %195 = vector.broadcast %14 : vector<1x32xf32> to vector<8x32xf32>
    %196 = arith.mulf %194, %195 : vector<8x32xf32>
    %197 = vector.broadcast %15 : vector<1x32xf32> to vector<8x32xf32>
    %198 = arith.addf %196, %197 : vector<8x32xf32>
    %199 = vector.shape_cast %198 : vector<8x32xf32> to vector<1x8x32xf32>
    %c0_63 = arith.constant 0 : index
    %c0_64 = arith.constant 0 : index
    %c0_65 = arith.constant 0 : index
    %200 = vector.load %arg11[%c0_63, %c0_64, %c0_65] : memref<1x8x32xf32, #tpu.memory_space<vmem>>, vector<1x8x32xf32>
    tpu.vector_store %arg11[%c0_63, %c0_64, %c0_65], %199 {strides = array<i32>} : memref<1x8x32xf32, #tpu.memory_space<vmem>>, vector<1x8x32xf32>,
    %c0_66 = arith.constant 0 : index
    %c0_67 = arith.constant 0 : index
    %c0_68 = arith.constant 0 : index
    %201 = vector.load %arg10[%c0_66, %c0_67, %c0_68] : memref<1x8x32xf32, #tpu.memory_space<vmem>>, vector<1x8x32xf32>
    tpu.vector_store %arg10[%c0_66, %c0_67, %c0_68], %199 {strides = array<i32>} : memref<1x8x32xf32, #tpu.memory_space<vmem>>, vector<1x8x32xf32>,
    return
  }
  func.func @transform_0(%arg0: i32, %arg1: i32) -> (i32, i32, i32) {
    %c0_i32 = arith.constant 0 : i32
    %c0_i32_0 = arith.constant 0 : i32
    %c0_i32_1 = arith.constant 0 : i32
    return %arg0, %c0_i32, %c0_i32_0 : i32, i32, i32
  }
  func.func @transform_1(%arg0: i32, %arg1: i32) -> (i32, i32, i32) {
    %c0_i32 = arith.constant 0 : i32
    %c0_i32_0 = arith.constant 0 : i32
    %c0_i32_1 = arith.constant 0 : i32
    return %arg0, %c0_i32, %c0_i32_0 : i32, i32, i32
  }
  func.func @transform_2(%arg0: i32, %arg1: i32) -> (i32, i32, i32, i32) {
    %c0_i32 = arith.constant 0 : i32
    %c0_i32_0 = arith.constant 0 : i32
    %c0_i32_1 = arith.constant 0 : i32
    %c0_i32_2 = arith.constant 0 : i32
    return %arg1, %c0_i32, %c0_i32_0, %c0_i32_1 : i32, i32, i32, i32
  }
  func.func @transform_3(%arg0: i32, %arg1: i32) -> (i32, i32, i32) {
    %c0_i32 = arith.constant 0 : i32
    %c0_i32_0 = arith.constant 0 : i32
    %c0_i32_1 = arith.constant 0 : i32
    return %arg1, %c0_i32, %c0_i32_0 : i32, i32, i32
  }
  func.func @transform_4(%arg0: i32, %arg1: i32) -> (i32, i32, i32) {
    %c0_i32 = arith.constant 0 : i32
    %c0_i32_0 = arith.constant 0 : i32
    %c0_i32_1 = arith.constant 0 : i32
    return %arg1, %c0_i32, %c0_i32_0 : i32, i32, i32
  }
  func.func @transform_5(%arg0: i32, %arg1: i32) -> (i32, i32, i32) {
    %c0_i32 = arith.constant 0 : i32
    %c0_i32_0 = arith.constant 0 : i32
    %c0_i32_1 = arith.constant 0 : i32
    return %arg1, %c0_i32, %c0_i32_0 : i32, i32, i32
  }
  func.func @transform_6(%arg0: i32, %arg1: i32) -> (i32, i32, i32) {
    %c0_i32 = arith.constant 0 : i32
    %c0_i32_0 = arith.constant 0 : i32
    %c0_i32_1 = arith.constant 0 : i32
    return %arg1, %c0_i32, %c0_i32_0 : i32, i32, i32
  }
  func.func @transform_7(%arg0: i32, %arg1: i32) -> (i32, i32, i32) {
    %c0_i32 = arith.constant 0 : i32
    %c0_i32_0 = arith.constant 0 : i32
    %c0_i32_1 = arith.constant 0 : i32
    return %arg1, %c0_i32, %c0_i32_0 : i32, i32, i32
  }
  func.func @transform_8(%arg0: i32, %arg1: i32) -> (i32, i32, i32) {
    %c0_i32 = arith.constant 0 : i32
    %c0_i32_0 = arith.constant 0 : i32
    %c0_i32_1 = arith.constant 0 : i32
    return %arg0, %c0_i32, %c0_i32_0 : i32, i32, i32
  }
}

module attributes {stable_mosaic.version = 11 : i64} {
  func.func @_linear_kernel(%arg0: i32, %arg1: i32, %arg2: memref<16x32xf32, #tpu.memory_space<vmem>>, %arg3: memref<32x128xbf16, #tpu.memory_space<vmem>>, %arg4: memref<1x128xf32, #tpu.memory_space<vmem>>, %arg5: memref<16x128xf32, #tpu.memory_space<vmem>>) attributes {dimension_semantics = [#tpu.dimension_semantics<parallel>, #tpu.dimension_semantics<parallel>], iteration_bounds = array<i64: 1, 1>, scalar_prefetch = 0 : i64, scratch_operands = 0 : i64, tpu.core_type = #tpu.core_type<tc>, window_params = [{transform_indices = @transform_0, window_bounds = array<i64: 16, 32>}, {transform_indices = @transform_1, window_bounds = array<i64: 32, 128>}, {transform_indices = @transform_2, window_bounds = array<i64: 1, 128>}, {transform_indices = @transform_3, window_bounds = array<i64: 16, 128>}]} {
    %c0 = arith.constant 0 : index
    %c0_0 = arith.constant 0 : index
    %0 = vector.load %arg2[%c0, %c0_0] : memref<16x32xf32, #tpu.memory_space<vmem>>, vector<16x32xf32>
    %1 = arith.truncf %0 : vector<16x32xf32> to vector<16x32xbf16>
    %c0_1 = arith.constant 0 : index
    %c0_2 = arith.constant 0 : index
    %2 = vector.load %arg3[%c0_1, %c0_2] : memref<32x128xbf16, #tpu.memory_space<vmem>>, vector<32x128xbf16>
    %cst = arith.constant dense<0.000000e+00> : vector<16x128xf32>
    %3 = tpu.matmul %1, %2, %cst {dimension_numbers = #tpu.dot_dimension_numbers<[1], [0], [0], [1], [0, 0, 1, 1], [], []>} : vector<16x32xbf16>, vector<32x128xbf16>, vector<16x128xf32> -> vector<16x128xf32>
    %c0_3 = arith.constant 0 : index
    %c0_4 = arith.constant 0 : index
    %4 = vector.load %arg4[%c0_3, %c0_4] : memref<1x128xf32, #tpu.memory_space<vmem>>, vector<1x128xf32>
    %5 = vector.broadcast %4 : vector<1x128xf32> to vector<16x128xf32>
    %6 = arith.addf %3, %5 : vector<16x128xf32>
    %c0_5 = arith.constant 0 : index
    %c0_6 = arith.constant 0 : index
    %7 = vector.load %arg5[%c0_5, %c0_6] : memref<16x128xf32, #tpu.memory_space<vmem>>, vector<16x128xf32>
    tpu.vector_store %arg5[%c0_5, %c0_6], %6 {strides = array<i32>} : memref<16x128xf32, #tpu.memory_space<vmem>>, vector<16x128xf32>,
    return
  }
  func.func @transform_0(%arg0: i32, %arg1: i32) -> (i32, i32) {
    %c0_i32 = arith.constant 0 : i32
    %c0_i32_0 = arith.constant 0 : i32
    return %arg0, %c0_i32 : i32, i32
  }
  func.func @transform_1(%arg0: i32, %arg1: i32) -> (i32, i32) {
    %c0_i32 = arith.constant 0 : i32
    %c0_i32_0 = arith.constant 0 : i32
    return %c0_i32, %arg1 : i32, i32
  }
  func.func @transform_2(%arg0: i32, %arg1: i32) -> (i32, i32) {
    %c0_i32 = arith.constant 0 : i32
    %c0_i32_0 = arith.constant 0 : i32
    return %c0_i32, %arg1 : i32, i32
  }
  func.func @transform_3(%arg0: i32, %arg1: i32) -> (i32, i32) {
    %c0_i32 = arith.constant 0 : i32
    return %arg0, %arg1 : i32, i32
  }
}

module attributes {stable_mosaic.version = 11 : i64} {
  func.func @_decoder_stack_kernel(%arg0: i32, %arg1: i32, %arg2: memref<1x8x32xf32, #tpu.memory_space<vmem>>, %arg3: memref<1x8x32xf32, #tpu.memory_space<vmem>>, %arg4: memref<1x1x8xf32, #tpu.memory_space<vmem>>, %arg5: memref<1x1x8xf32, #tpu.memory_space<vmem>>, %arg6: memref<1x8x8xf32, #tpu.memory_space<vmem>>, %arg7: memref<1x3x32x32xbf16, #tpu.memory_space<vmem>>, %arg8: memref<1x32x32xbf16, #tpu.memory_space<vmem>>, %arg9: memref<1x3x32x32xbf16, #tpu.memory_space<vmem>>, %arg10: memref<1x32x32xbf16, #tpu.memory_space<vmem>>, %arg11: memref<1x32x64xbf16, #tpu.memory_space<vmem>>, %arg12: memref<1x64x32xbf16, #tpu.memory_space<vmem>>, %arg13: memref<1x1x64xf32, #tpu.memory_space<vmem>>, %arg14: memref<1x15x32xf32, #tpu.memory_space<vmem>>, %arg15: memref<1x8x32xf32, #tpu.memory_space<vmem>>, %arg16: memref<1x8x32xf32, #tpu.memory_space<vmem>>) attributes {dimension_semantics = [#tpu.dimension_semantics<parallel>, #tpu.dimension_semantics<arbitrary>], iteration_bounds = array<i64: 2, 2>, scalar_prefetch = 0 : i64, scratch_operands = 1 : i64, tpu.core_type = #tpu.core_type<tc>, window_params = [{transform_indices = @transform_0, window_bounds = array<i64: 1, 8, 32>}, {transform_indices = @transform_1, window_bounds = array<i64: 1, 8, 32>}, {transform_indices = @transform_2, window_bounds = array<i64: 1, 1, 8>}, {transform_indices = @transform_3, window_bounds = array<i64: 1, 1, 8>}, {pipeline_mode = #tpu.pipeline_mode<synchronous>, transform_indices = @transform_4, window_bounds = array<i64: 1, 8, 8>}, {transform_indices = @transform_5, window_bounds = array<i64: 1, 3, 32, 32>}, {transform_indices = @transform_6, window_bounds = array<i64: 1, 32, 32>}, {transform_indices = @transform_7, window_bounds = array<i64: 1, 3, 32, 32>}, {transform_indices = @transform_8, window_bounds = array<i64: 1, 32, 32>}, {transform_indices = @transform_9, window_bounds = array<i64: 1, 32, 64>}, {transform_indices = @transform_10, window_bounds = array<i64: 1, 64, 32>}, {transform_indices = @transform_11, window_bounds = array<i64: 1, 1, 64>}, {transform_indices = @transform_12, window_bounds = array<i64: 1, 15, 32>}, {transform_indices = @transform_13, window_bounds = array<i64: 1, 8, 32>}]} {
    %c0_i32 = arith.constant 0 : i32
    %0 = arith.cmpi eq, %arg1, %c0_i32 : i32
    %1 = arith.extui %0 : i1 to i32
    %c0_i32_0 = arith.constant 0 : i32
    %2 = arith.cmpi ne, %1, %c0_i32_0 : i32
    scf.if %2 {
      %c0_118 = arith.constant 0 : index
      %c0_119 = arith.constant 0 : index
      %c0_120 = arith.constant 0 : index
      %355 = vector.load %arg2[%c0_118, %c0_119, %c0_120] : memref<1x8x32xf32, #tpu.memory_space<vmem>>, vector<1x8x32xf32>
      %c0_121 = arith.constant 0 : index
      %c0_122 = arith.constant 0 : index
      %c0_123 = arith.constant 0 : index
      %356 = vector.load %arg16[%c0_121, %c0_122, %c0_123] : memref<1x8x32xf32, #tpu.memory_space<vmem>>, vector<1x8x32xf32>
      tpu.vector_store %arg16[%c0_121, %c0_122, %c0_123], %355 {strides = array<i32>} : memref<1x8x32xf32, #tpu.memory_space<vmem>>, vector<1x8x32xf32>,
    } else {
    }
    %c0 = arith.constant 0 : index
    %c0_1 = arith.constant 0 : index
    %c0_2 = arith.constant 0 : index
    %3 = vector.load %arg16[%c0, %c0_1, %c0_2] : memref<1x8x32xf32, #tpu.memory_space<vmem>>, vector<1x8x32xf32>
    %4 = vector.shape_cast %3 : vector<1x8x32xf32> to vector<8x32xf32>
    %c0_3 = arith.constant 0 : index
    %c0_4 = arith.constant 0 : index
    %c0_5 = arith.constant 0 : index
    %5 = vector.load %arg3[%c0_3, %c0_4, %c0_5] : memref<1x8x32xf32, #tpu.memory_space<vmem>>, vector<1x8x32xf32>
    %6 = vector.shape_cast %5 : vector<1x8x32xf32> to vector<8x32xf32>
    %c0_6 = arith.constant 0 : index
    %c0_7 = arith.constant 0 : index
    %c0_8 = arith.constant 0 : index
    %7 = vector.load %arg14[%c0_6, %c0_7, %c0_8] : memref<1x15x32xf32, #tpu.memory_space<vmem>>, vector<1x15x32xf32>
    %8 = vector.shape_cast %7 : vector<1x15x32xf32> to vector<15x32xf32>
    %9 = vector.extract_strided_slice %8 {offsets = [0, 0], sizes = [1, 32], strides = [1, 1]} : vector<15x32xf32> to vector<1x32xf32>
    %10 = vector.extract_strided_slice %8 {offsets = [1, 0], sizes = [1, 32], strides = [1, 1]} : vector<15x32xf32> to vector<1x32xf32>
    %11 = vector.extract_strided_slice %8 {offsets = [2, 0], sizes = [1, 32], strides = [1, 1]} : vector<15x32xf32> to vector<1x32xf32>
    %12 = vector.extract_strided_slice %8 {offsets = [3, 0], sizes = [1, 32], strides = [1, 1]} : vector<15x32xf32> to vector<1x32xf32>
    %13 = vector.extract_strided_slice %8 {offsets = [4, 0], sizes = [1, 32], strides = [1, 1]} : vector<15x32xf32> to vector<1x32xf32>
    %14 = vector.extract_strided_slice %8 {offsets = [5, 0], sizes = [1, 32], strides = [1, 1]} : vector<15x32xf32> to vector<1x32xf32>
    %15 = vector.extract_strided_slice %8 {offsets = [6, 0], sizes = [1, 32], strides = [1, 1]} : vector<15x32xf32> to vector<1x32xf32>
    %16 = vector.extract_strided_slice %8 {offsets = [7, 0], sizes = [1, 32], strides = [1, 1]} : vector<15x32xf32> to vector<1x32xf32>
    %17 = vector.extract_strided_slice %8 {offsets = [8, 0], sizes = [1, 32], strides = [1, 1]} : vector<15x32xf32> to vector<1x32xf32>
    %18 = vector.extract_strided_slice %8 {offsets = [9, 0], sizes = [1, 32], strides = [1, 1]} : vector<15x32xf32> to vector<1x32xf32>
    %19 = vector.extract_strided_slice %8 {offsets = [10, 0], sizes = [1, 32], strides = [1, 1]} : vector<15x32xf32> to vector<1x32xf32>
    %20 = vector.extract_strided_slice %8 {offsets = [11, 0], sizes = [1, 32], strides = [1, 1]} : vector<15x32xf32> to vector<1x32xf32>
    %21 = vector.extract_strided_slice %8 {offsets = [12, 0], sizes = [1, 32], strides = [1, 1]} : vector<15x32xf32> to vector<1x32xf32>
    %22 = vector.extract_strided_slice %8 {offsets = [13, 0], sizes = [1, 32], strides = [1, 1]} : vector<15x32xf32> to vector<1x32xf32>
    %23 = vector.extract_strided_slice %8 {offsets = [14, 0], sizes = [1, 32], strides = [1, 1]} : vector<15x32xf32> to vector<1x32xf32>
    %c0_9 = arith.constant 0 : index
    %c0_10 = arith.constant 0 : index
    %c0_11 = arith.constant 0 : index
    %24 = vector.load %arg4[%c0_9, %c0_10, %c0_11] : memref<1x1x8xf32, #tpu.memory_space<vmem>>, vector<1x1x8xf32>
    %c0_12 = arith.constant 0 : index
    %c0_13 = arith.constant 0 : index
    %c0_14 = arith.constant 0 : index
    %25 = vector.load %arg6[%c0_12, %c0_13, %c0_14] : memref<1x8x8xf32, #tpu.memory_space<vmem>>, vector<1x8x8xf32>
    %26 = vector.broadcast %24 : vector<1x1x8xf32> to vector<1x8x8xf32>
    %27 = arith.addf %26, %25 : vector<1x8x8xf32>
    %c0_15 = arith.constant 0 : index
    %c0_16 = arith.constant 0 : index
    %c0_17 = arith.constant 0 : index
    %28 = vector.load %arg8[%c0_15, %c0_16, %c0_17] : memref<1x32x32xbf16, #tpu.memory_space<vmem>>, vector<1x32x32xbf16>
    %29 = vector.shape_cast %28 : vector<1x32x32xbf16> to vector<32x32xbf16>
    %30 = arith.truncf %4 : vector<8x32xf32> to vector<8x32xbf16>
    %31 = arith.truncf %4 : vector<8x32xf32> to vector<8x32xbf16>
    %c0_18 = arith.constant 0 : index
    %c0_19 = arith.constant 0 : index
    %c0_20 = arith.constant 0 : index
    %c0_21 = arith.constant 0 : index
    %32 = vector.load %arg7[%c0_18, %c0_19, %c0_20, %c0_21] : memref<1x3x32x32xbf16, #tpu.memory_space<vmem>>, vector<1x1x32x32xbf16>
    %33 = vector.shape_cast %32 : vector<1x1x32x32xbf16> to vector<32x32xbf16>
    %cst = arith.constant dense<0.000000e+00> : vector<8x32xf32>
    %34 = tpu.matmul %30, %33, %cst {dimension_numbers = #tpu.dot_dimension_numbers<[1], [0], [0], [1], [0, 0, 1, 1], [], []>} : vector<8x32xbf16>, vector<32x32xbf16>, vector<8x32xf32> -> vector<8x32xf32>
    %35 = vector.broadcast %9 : vector<1x32xf32> to vector<8x32xf32>
    %36 = arith.addf %34, %35 : vector<8x32xf32>
    %c0_22 = arith.constant 0 : index
    %c1 = arith.constant 1 : index
    %c0_23 = arith.constant 0 : index
    %c0_24 = arith.constant 0 : index
    %37 = vector.load %arg7[%c0_22, %c1, %c0_23, %c0_24] : memref<1x3x32x32xbf16, #tpu.memory_space<vmem>>, vector<1x1x32x32xbf16>
    %38 = vector.shape_cast %37 : vector<1x1x32x32xbf16> to vector<32x32xbf16>
    %cst_25 = arith.constant dense<0.000000e+00> : vector<8x32xf32>
    %39 = tpu.matmul %31, %38, %cst_25 {dimension_numbers = #tpu.dot_dimension_numbers<[1], [0], [0], [1], [0, 0, 1, 1], [], []>} : vector<8x32xbf16>, vector<32x32xbf16>, vector<8x32xf32> -> vector<8x32xf32>
    %40 = vector.broadcast %10 : vector<1x32xf32> to vector<8x32xf32>
    %41 = arith.addf %39, %40 : vector<8x32xf32>
    %c0_26 = arith.constant 0 : index
    %c2 = arith.constant 2 : index
    %c0_27 = arith.constant 0 : index
    %c0_28 = arith.constant 0 : index
    %42 = vector.load %arg7[%c0_26, %c2, %c0_27, %c0_28] : memref<1x3x32x32xbf16, #tpu.memory_space<vmem>>, vector<1x1x32x32xbf16>
    %43 = vector.shape_cast %42 : vector<1x1x32x32xbf16> to vector<32x32xbf16>
    %cst_29 = arith.constant dense<0.000000e+00> : vector<8x32xf32>
    %44 = tpu.matmul %31, %43, %cst_29 {dimension_numbers = #tpu.dot_dimension_numbers<[1], [0], [0], [1], [0, 0, 1, 1], [], []>} : vector<8x32xbf16>, vector<32x32xbf16>, vector<8x32xf32> -> vector<8x32xf32>
    %45 = vector.broadcast %11 : vector<1x32xf32> to vector<8x32xf32>
    %46 = arith.addf %44, %45 : vector<8x32xf32>
    %47 = vector.extract_strided_slice %36 {offsets = [0, 0], sizes = [8, 8], strides = [1, 1]} : vector<8x32xf32> to vector<8x8xf32>
    %48 = vector.shape_cast %47 : vector<8x8xf32> to vector<1x8x8xf32>
    %49 = arith.truncf %48 : vector<1x8x8xf32> to vector<1x8x8xbf16>
    %50 = vector.extract_strided_slice %41 {offsets = [0, 0], sizes = [8, 8], strides = [1, 1]} : vector<8x32xf32> to vector<8x8xf32>
    %51 = vector.shape_cast %50 : vector<8x8xf32> to vector<1x8x8xf32>
    %52 = arith.truncf %51 : vector<1x8x8xf32> to vector<1x8x8xbf16>
    %53 = vector.extract_strided_slice %46 {offsets = [0, 0], sizes = [8, 8], strides = [1, 1]} : vector<8x32xf32> to vector<8x8xf32>
    %54 = vector.shape_cast %53 : vector<8x8xf32> to vector<1x8x8xf32>
    %55 = arith.truncf %54 : vector<1x8x8xf32> to vector<1x8x8xbf16>
    "tpu.trace_start"() <{level = 10 : i32, message = "nqd,nkd->nqk"}> : () -> ()
    %cst_30 = arith.constant dense<0.000000e+00> : vector<1x8x8xf32>
    %56 = tpu.matmul %49, %52, %cst_30 {dimension_numbers = #tpu.dot_dimension_numbers<[2], [2], [1], [1], [0, 0, 0, 1, 1, 1], [0], [0]>} : vector<1x8x8xbf16>, vector<1x8x8xbf16>, vector<1x8x8xf32> -> vector<1x8x8xf32>
    "tpu.trace_stop"() : () -> ()
    %57 = arith.addf %56, %27 : vector<1x8x8xf32>
    %cst_31 = arith.constant dense<0xFF800000> : vector<1x8xf32>
    %58 = vector.multi_reduction <maximumf>, %57, %cst_31 [2] : vector<1x8x8xf32> to vector<1x8xf32>
    %59 = vector.shape_cast %58 : vector<1x8xf32> to vector<1x8x1xf32>
    %60 = vector.broadcast %59 : vector<1x8x1xf32> to vector<1x8x8xf32>
    %61 = arith.subf %57, %60 : vector<1x8x8xf32>
    %62 = math.exp %61 : vector<1x8x8xf32>
    %cst_32 = arith.constant dense<0.000000e+00> : vector<1x8xf32>
    %63 = vector.multi_reduction <add>, %62, %cst_32 [2] : vector<1x8x8xf32> to vector<1x8xf32>
    %64 = vector.shape_cast %63 : vector<1x8xf32> to vector<1x8x1xf32>
    %65 = arith.truncf %62 : vector<1x8x8xf32> to vector<1x8x8xbf16>
    "tpu.trace_start"() <{level = 10 : i32, message = "nqk,nkd->nqd"}> : () -> ()
    %cst_33 = arith.constant dense<0.000000e+00> : vector<1x8x8xf32>
    %66 = tpu.matmul %65, %55, %cst_33 {dimension_numbers = #tpu.dot_dimension_numbers<[2], [1], [1], [2], [0, 0, 0, 1, 1, 2], [0], [0]>} : vector<1x8x8xbf16>, vector<1x8x8xbf16>, vector<1x8x8xf32> -> vector<1x8x8xf32>
    "tpu.trace_stop"() : () -> ()
    %67 = tpu.reciprocal %64 {approx = true} : vector<1x8x1xf32> -> vector<1x8x1xf32>
    %68 = vector.broadcast %67 : vector<1x8x1xf32> to vector<1x8x8xf32>
    %69 = arith.mulf %66, %68 : vector<1x8x8xf32>
    %70 = vector.shape_cast %69 : vector<1x8x8xf32> to vector<8x8xf32>
    %71 = vector.extract_strided_slice %36 {offsets = [0, 8], sizes = [8, 8], strides = [1, 1]} : vector<8x32xf32> to vector<8x8xf32>
    %72 = vector.shape_cast %71 : vector<8x8xf32> to vector<1x8x8xf32>
    %73 = arith.truncf %72 : vector<1x8x8xf32> to vector<1x8x8xbf16>
    %74 = vector.extract_strided_slice %41 {offsets = [0, 8], sizes = [8, 8], strides = [1, 1]} : vector<8x32xf32> to vector<8x8xf32>
    %75 = vector.shape_cast %74 : vector<8x8xf32> to vector<1x8x8xf32>
    %76 = arith.truncf %75 : vector<1x8x8xf32> to vector<1x8x8xbf16>
    %77 = vector.extract_strided_slice %46 {offsets = [0, 8], sizes = [8, 8], strides = [1, 1]} : vector<8x32xf32> to vector<8x8xf32>
    %78 = vector.shape_cast %77 : vector<8x8xf32> to vector<1x8x8xf32>
    %79 = arith.truncf %78 : vector<1x8x8xf32> to vector<1x8x8xbf16>
    "tpu.trace_start"() <{level = 10 : i32, message = "nqd,nkd->nqk"}> : () -> ()
    %cst_34 = arith.constant dense<0.000000e+00> : vector<1x8x8xf32>
    %80 = tpu.matmul %73, %76, %cst_34 {dimension_numbers = #tpu.dot_dimension_numbers<[2], [2], [1], [1], [0, 0, 0, 1, 1, 1], [0], [0]>} : vector<1x8x8xbf16>, vector<1x8x8xbf16>, vector<1x8x8xf32> -> vector<1x8x8xf32>
    "tpu.trace_stop"() : () -> ()
    %81 = arith.addf %80, %27 : vector<1x8x8xf32>
    %cst_35 = arith.constant dense<0xFF800000> : vector<1x8xf32>
    %82 = vector.multi_reduction <maximumf>, %81, %cst_35 [2] : vector<1x8x8xf32> to vector<1x8xf32>
    %83 = vector.shape_cast %82 : vector<1x8xf32> to vector<1x8x1xf32>
    %84 = vector.broadcast %83 : vector<1x8x1xf32> to vector<1x8x8xf32>
    %85 = arith.subf %81, %84 : vector<1x8x8xf32>
    %86 = math.exp %85 : vector<1x8x8xf32>
    %cst_36 = arith.constant dense<0.000000e+00> : vector<1x8xf32>
    %87 = vector.multi_reduction <add>, %86, %cst_36 [2] : vector<1x8x8xf32> to vector<1x8xf32>
    %88 = vector.shape_cast %87 : vector<1x8xf32> to vector<1x8x1xf32>
    %89 = arith.truncf %86 : vector<1x8x8xf32> to vector<1x8x8xbf16>
    "tpu.trace_start"() <{level = 10 : i32, message = "nqk,nkd->nqd"}> : () -> ()
    %cst_37 = arith.constant dense<0.000000e+00> : vector<1x8x8xf32>
    %90 = tpu.matmul %89, %79, %cst_37 {dimension_numbers = #tpu.dot_dimension_numbers<[2], [1], [1], [2], [0, 0, 0, 1, 1, 2], [0], [0]>} : vector<1x8x8xbf16>, vector<1x8x8xbf16>, vector<1x8x8xf32> -> vector<1x8x8xf32>
    "tpu.trace_stop"() : () -> ()
    %91 = tpu.reciprocal %88 {approx = true} : vector<1x8x1xf32> -> vector<1x8x1xf32>
    %92 = vector.broadcast %91 : vector<1x8x1xf32> to vector<1x8x8xf32>
    %93 = arith.mulf %90, %92 : vector<1x8x8xf32>
    %94 = vector.shape_cast %93 : vector<1x8x8xf32> to vector<8x8xf32>
    %95 = vector.extract_strided_slice %36 {offsets = [0, 16], sizes = [8, 8], strides = [1, 1]} : vector<8x32xf32> to vector<8x8xf32>
    %96 = vector.shape_cast %95 : vector<8x8xf32> to vector<1x8x8xf32>
    %97 = arith.truncf %96 : vector<1x8x8xf32> to vector<1x8x8xbf16>
    %98 = vector.extract_strided_slice %41 {offsets = [0, 16], sizes = [8, 8], strides = [1, 1]} : vector<8x32xf32> to vector<8x8xf32>
    %99 = vector.shape_cast %98 : vector<8x8xf32> to vector<1x8x8xf32>
    %100 = arith.truncf %99 : vector<1x8x8xf32> to vector<1x8x8xbf16>
    %101 = vector.extract_strided_slice %46 {offsets = [0, 16], sizes = [8, 8], strides = [1, 1]} : vector<8x32xf32> to vector<8x8xf32>
    %102 = vector.shape_cast %101 : vector<8x8xf32> to vector<1x8x8xf32>
    %103 = arith.truncf %102 : vector<1x8x8xf32> to vector<1x8x8xbf16>
    "tpu.trace_start"() <{level = 10 : i32, message = "nqd,nkd->nqk"}> : () -> ()
    %cst_38 = arith.constant dense<0.000000e+00> : vector<1x8x8xf32>
    %104 = tpu.matmul %97, %100, %cst_38 {dimension_numbers = #tpu.dot_dimension_numbers<[2], [2], [1], [1], [0, 0, 0, 1, 1, 1], [0], [0]>} : vector<1x8x8xbf16>, vector<1x8x8xbf16>, vector<1x8x8xf32> -> vector<1x8x8xf32>
    "tpu.trace_stop"() : () -> ()
    %105 = arith.addf %104, %27 : vector<1x8x8xf32>
    %cst_39 = arith.constant dense<0xFF800000> : vector<1x8xf32>
    %106 = vector.multi_reduction <maximumf>, %105, %cst_39 [2] : vector<1x8x8xf32> to vector<1x8xf32>
    %107 = vector.shape_cast %106 : vector<1x8xf32> to vector<1x8x1xf32>
    %108 = vector.broadcast %107 : vector<1x8x1xf32> to vector<1x8x8xf32>
    %109 = arith.subf %105, %108 : vector<1x8x8xf32>
    %110 = math.exp %109 : vector<1x8x8xf32>
    %cst_40 = arith.constant dense<0.000000e+00> : vector<1x8xf32>
    %111 = vector.multi_reduction <add>, %110, %cst_40 [2] : vector<1x8x8xf32> to vector<1x8xf32>
    %112 = vector.shape_cast %111 : vector<1x8xf32> to vector<1x8x1xf32>
    %113 = arith.truncf %110 : vector<1x8x8xf32> to vector<1x8x8xbf16>
    "tpu.trace_start"() <{level = 10 : i32, message = "nqk,nkd->nqd"}> : () -> ()
    %cst_41 = arith.constant dense<0.000000e+00> : vector<1x8x8xf32>
    %114 = tpu.matmul %113, %103, %cst_41 {dimension_numbers = #tpu.dot_dimension_numbers<[2], [1], [1], [2], [0, 0, 0, 1, 1, 2], [0], [0]>} : vector<1x8x8xbf16>, vector<1x8x8xbf16>, vector<1x8x8xf32> -> vector<1x8x8xf32>
    "tpu.trace_stop"() : () -> ()
    %115 = tpu.reciprocal %112 {approx = true} : vector<1x8x1xf32> -> vector<1x8x1xf32>
    %116 = vector.broadcast %115 : vector<1x8x1xf32> to vector<1x8x8xf32>
    %117 = arith.mulf %114, %116 : vector<1x8x8xf32>
    %118 = vector.shape_cast %117 : vector<1x8x8xf32> to vector<8x8xf32>
    %119 = vector.extract_strided_slice %36 {offsets = [0, 24], sizes = [8, 8], strides = [1, 1]} : vector<8x32xf32> to vector<8x8xf32>
    %120 = vector.shape_cast %119 : vector<8x8xf32> to vector<1x8x8xf32>
    %121 = arith.truncf %120 : vector<1x8x8xf32> to vector<1x8x8xbf16>
    %122 = vector.extract_strided_slice %41 {offsets = [0, 24], sizes = [8, 8], strides = [1, 1]} : vector<8x32xf32> to vector<8x8xf32>
    %123 = vector.shape_cast %122 : vector<8x8xf32> to vector<1x8x8xf32>
    %124 = arith.truncf %123 : vector<1x8x8xf32> to vector<1x8x8xbf16>
    %125 = vector.extract_strided_slice %46 {offsets = [0, 24], sizes = [8, 8], strides = [1, 1]} : vector<8x32xf32> to vector<8x8xf32>
    %126 = vector.shape_cast %125 : vector<8x8xf32> to vector<1x8x8xf32>
    %127 = arith.truncf %126 : vector<1x8x8xf32> to vector<1x8x8xbf16>
    "tpu.trace_start"() <{level = 10 : i32, message = "nqd,nkd->nqk"}> : () -> ()
    %cst_42 = arith.constant dense<0.000000e+00> : vector<1x8x8xf32>
    %128 = tpu.matmul %121, %124, %cst_42 {dimension_numbers = #tpu.dot_dimension_numbers<[2], [2], [1], [1], [0, 0, 0, 1, 1, 1], [0], [0]>} : vector<1x8x8xbf16>, vector<1x8x8xbf16>, vector<1x8x8xf32> -> vector<1x8x8xf32>
    "tpu.trace_stop"() : () -> ()
    %129 = arith.addf %128, %27 : vector<1x8x8xf32>
    %cst_43 = arith.constant dense<0xFF800000> : vector<1x8xf32>
    %130 = vector.multi_reduction <maximumf>, %129, %cst_43 [2] : vector<1x8x8xf32> to vector<1x8xf32>
    %131 = vector.shape_cast %130 : vector<1x8xf32> to vector<1x8x1xf32>
    %132 = vector.broadcast %131 : vector<1x8x1xf32> to vector<1x8x8xf32>
    %133 = arith.subf %129, %132 : vector<1x8x8xf32>
    %134 = math.exp %133 : vector<1x8x8xf32>
    %cst_44 = arith.constant dense<0.000000e+00> : vector<1x8xf32>
    %135 = vector.multi_reduction <add>, %134, %cst_44 [2] : vector<1x8x8xf32> to vector<1x8xf32>
    %136 = vector.shape_cast %135 : vector<1x8xf32> to vector<1x8x1xf32>
    %137 = arith.truncf %134 : vector<1x8x8xf32> to vector<1x8x8xbf16>
    "tpu.trace_start"() <{level = 10 : i32, message = "nqk,nkd->nqd"}> : () -> ()
    %cst_45 = arith.constant dense<0.000000e+00> : vector<1x8x8xf32>
    %138 = tpu.matmul %137, %127, %cst_45 {dimension_numbers = #tpu.dot_dimension_numbers<[2], [1], [1], [2], [0, 0, 0, 1, 1, 2], [0], [0]>} : vector<1x8x8xbf16>, vector<1x8x8xbf16>, vector<1x8x8xf32> -> vector<1x8x8xf32>
    "tpu.trace_stop"() : () -> ()
    %139 = tpu.reciprocal %136 {approx = true} : vector<1x8x1xf32> -> vector<1x8x1xf32>
    %140 = vector.broadcast %139 : vector<1x8x1xf32> to vector<1x8x8xf32>
    %141 = arith.mulf %138, %140 : vector<1x8x8xf32>
    %142 = vector.shape_cast %141 : vector<1x8x8xf32> to vector<8x8xf32>
    %143 = tpu.concatenate %70, %94, %118, %142 in 1 : vector<8x8xf32>, vector<8x8xf32>, vector<8x8xf32>, vector<8x8xf32> -> vector<8x32xf32>
    %144 = arith.truncf %143 : vector<8x32xf32> to vector<8x32xbf16>
    %cst_46 = arith.constant dense<0.000000e+00> : vector<8x32xf32>
    %145 = tpu.matmul %144, %29, %cst_46 {dimension_numbers = #tpu.dot_dimension_numbers<[1], [0], [0], [1], [0, 0, 1, 1], [], []>} : vector<8x32xbf16>, vector<32x32xbf16>, vector<8x32xf32> -> vector<8x32xf32>
    %146 = vector.broadcast %12 : vector<1x32xf32> to vector<8x32xf32>
    %147 = arith.addf %145, %146 : vector<8x32xf32>
    %148 = arith.addf %4, %147 : vector<8x32xf32>
    %cst_47 = arith.constant dense<0.000000e+00> : vector<8xf32>
    %149 = vector.multi_reduction <add>, %148, %cst_47 [1] : vector<8x32xf32> to vector<8xf32>
    %150 = vector.shape_cast %149 : vector<8xf32> to vector<8x1xf32>
    %cst_48 = arith.constant 3.200000e+01 : f32
    %151 = vector.broadcast %cst_48 : f32 to vector<8x1xf32>
    %152 = arith.divf %150, %151 : vector<8x1xf32>
    %153 = vector.broadcast %152 : vector<8x1xf32> to vector<8x32xf32>
    %154 = arith.subf %148, %153 : vector<8x32xf32>
    %155 = arith.mulf %154, %154 : vector<8x32xf32>
    %cst_49 = arith.constant dense<0.000000e+00> : vector<8xf32>
    %156 = vector.multi_reduction <add>, %155, %cst_49 [1] : vector<8x32xf32> to vector<8xf32>
    %157 = vector.shape_cast %156 : vector<8xf32> to vector<8x1xf32>
    %cst_50 = arith.constant 3.200000e+01 : f32
    %158 = vector.broadcast %cst_50 : f32 to vector<8x1xf32>
    %159 = arith.divf %157, %158 : vector<8x1xf32>
    %cst_51 = arith.constant 9.99999974E-6 : f32
    %160 = vector.broadcast %cst_51 : f32 to vector<8x1xf32>
    %161 = arith.addf %159, %160 : vector<8x1xf32>
    %162 = math.rsqrt %161 : vector<8x1xf32>
    %163 = vector.broadcast %162 : vector<8x1xf32> to vector<8x32xf32>
    %164 = arith.mulf %154, %163 : vector<8x32xf32>
    %165 = vector.broadcast %18 : vector<1x32xf32> to vector<8x32xf32>
    %166 = arith.mulf %164, %165 : vector<8x32xf32>
    %167 = vector.broadcast %19 : vector<1x32xf32> to vector<8x32xf32>
    %168 = arith.addf %166, %167 : vector<8x32xf32>
    %c0_52 = arith.constant 0 : index
    %c0_53 = arith.constant 0 : index
    %c0_54 = arith.constant 0 : index
    %169 = vector.load %arg5[%c0_52, %c0_53, %c0_54] : memref<1x1x8xf32, #tpu.memory_space<vmem>>, vector<1x1x8xf32>
    %c0_55 = arith.constant 0 : index
    %c0_56 = arith.constant 0 : index
    %c0_57 = arith.constant 0 : index
    %170 = vector.load %arg10[%c0_55, %c0_56, %c0_57] : memref<1x32x32xbf16, #tpu.memory_space<vmem>>, vector<1x32x32xbf16>
    %171 = vector.shape_cast %170 : vector<1x32x32xbf16> to vector<32x32xbf16>
    %172 = arith.truncf %168 : vector<8x32xf32> to vector<8x32xbf16>
    %173 = arith.truncf %6 : vector<8x32xf32> to vector<8x32xbf16>
    %c0_58 = arith.constant 0 : index
    %c0_59 = arith.constant 0 : index
    %c0_60 = arith.constant 0 : index
    %c0_61 = arith.constant 0 : index
    %174 = vector.load %arg9[%c0_58, %c0_59, %c0_60, %c0_61] : memref<1x3x32x32xbf16, #tpu.memory_space<vmem>>, vector<1x1x32x32xbf16>
    %175 = vector.shape_cast %174 : vector<1x1x32x32xbf16> to vector<32x32xbf16>
    %cst_62 = arith.constant dense<0.000000e+00> : vector<8x32xf32>
    %176 = tpu.matmul %172, %175, %cst_62 {dimension_numbers = #tpu.dot_dimension_numbers<[1], [0], [0], [1], [0, 0, 1, 1], [], []>} : vector<8x32xbf16>, vector<32x32xbf16>, vector<8x32xf32> -> vector<8x32xf32>
    %177 = vector.broadcast %13 : vector<1x32xf32> to vector<8x32xf32>
    %178 = arith.addf %176, %177 : vector<8x32xf32>
    %c0_63 = arith.constant 0 : index
    %c1_64 = arith.constant 1 : index
    %c0_65 = arith.constant 0 : index
    %c0_66 = arith.constant 0 : index
    %179 = vector.load %arg9[%c0_63, %c1_64, %c0_65, %c0_66] : memref<1x3x32x32xbf16, #tpu.memory_space<vmem>>, vector<1x1x32x32xbf16>
    %180 = vector.shape_cast %179 : vector<1x1x32x32xbf16> to vector<32x32xbf16>
    %cst_67 = arith.constant dense<0.000000e+00> : vector<8x32xf32>
    %181 = tpu.matmul %173, %180, %cst_67 {dimension_numbers = #tpu.dot_dimension_numbers<[1], [0], [0], [1], [0, 0, 1, 1], [], []>} : vector<8x32xbf16>, vector<32x32xbf16>, vector<8x32xf32> -> vector<8x32xf32>
    %182 = vector.broadcast %14 : vector<1x32xf32> to vector<8x32xf32>
    %183 = arith.addf %181, %182 : vector<8x32xf32>
    %c0_68 = arith.constant 0 : index
    %c2_69 = arith.constant 2 : index
    %c0_70 = arith.constant 0 : index
    %c0_71 = arith.constant 0 : index
    %184 = vector.load %arg9[%c0_68, %c2_69, %c0_70, %c0_71] : memref<1x3x32x32xbf16, #tpu.memory_space<vmem>>, vector<1x1x32x32xbf16>
    %185 = vector.shape_cast %184 : vector<1x1x32x32xbf16> to vector<32x32xbf16>
    %cst_72 = arith.constant dense<0.000000e+00> : vector<8x32xf32>
    %186 = tpu.matmul %173, %185, %cst_72 {dimension_numbers = #tpu.dot_dimension_numbers<[1], [0], [0], [1], [0, 0, 1, 1], [], []>} : vector<8x32xbf16>, vector<32x32xbf16>, vector<8x32xf32> -> vector<8x32xf32>
    %187 = vector.broadcast %15 : vector<1x32xf32> to vector<8x32xf32>
    %188 = arith.addf %186, %187 : vector<8x32xf32>
    %189 = vector.extract_strided_slice %178 {offsets = [0, 0], sizes = [8, 8], strides = [1, 1]} : vector<8x32xf32> to vector<8x8xf32>
    %190 = vector.shape_cast %189 : vector<8x8xf32> to vector<1x8x8xf32>
    %191 = arith.truncf %190 : vector<1x8x8xf32> to vector<1x8x8xbf16>
    %192 = vector.extract_strided_slice %183 {offsets = [0, 0], sizes = [8, 8], strides = [1, 1]} : vector<8x32xf32> to vector<8x8xf32>
    %193 = vector.shape_cast %192 : vector<8x8xf32> to vector<1x8x8xf32>
    %194 = arith.truncf %193 : vector<1x8x8xf32> to vector<1x8x8xbf16>
    %195 = vector.extract_strided_slice %188 {offsets = [0, 0], sizes = [8, 8], strides = [1, 1]} : vector<8x32xf32> to vector<8x8xf32>
    %196 = vector.shape_cast %195 : vector<8x8xf32> to vector<1x8x8xf32>
    %197 = arith.truncf %196 : vector<1x8x8xf32> to vector<1x8x8xbf16>
    "tpu.trace_start"() <{level = 10 : i32, message = "nqd,nkd->nqk"}> : () -> ()
    %cst_73 = arith.constant dense<0.000000e+00> : vector<1x8x8xf32>
    %198 = tpu.matmul %191, %194, %cst_73 {dimension_numbers = #tpu.dot_dimension_numbers<[2], [2], [1], [1], [0, 0, 0, 1, 1, 1], [0], [0]>} : vector<1x8x8xbf16>, vector<1x8x8xbf16>, vector<1x8x8xf32> -> vector<1x8x8xf32>
    "tpu.trace_stop"() : () -> ()
    %199 = vector.broadcast %169 : vector<1x1x8xf32> to vector<1x8x8xf32>
    %200 = arith.addf %198, %199 : vector<1x8x8xf32>
    %cst_74 = arith.constant dense<0xFF800000> : vector<1x8xf32>
    %201 = vector.multi_reduction <maximumf>, %200, %cst_74 [2] : vector<1x8x8xf32> to vector<1x8xf32>
    %202 = vector.shape_cast %201 : vector<1x8xf32> to vector<1x8x1xf32>
    %203 = vector.broadcast %202 : vector<1x8x1xf32> to vector<1x8x8xf32>
    %204 = arith.subf %200, %203 : vector<1x8x8xf32>
    %205 = math.exp %204 : vector<1x8x8xf32>
    %cst_75 = arith.constant dense<0.000000e+00> : vector<1x8xf32>
    %206 = vector.multi_reduction <add>, %205, %cst_75 [2] : vector<1x8x8xf32> to vector<1x8xf32>
    %207 = vector.shape_cast %206 : vector<1x8xf32> to vector<1x8x1xf32>
    %208 = arith.truncf %205 : vector<1x8x8xf32> to vector<1x8x8xbf16>
    "tpu.trace_start"() <{level = 10 : i32, message = "nqk,nkd->nqd"}> : () -> ()
    %cst_76 = arith.constant dense<0.000000e+00> : vector<1x8x8xf32>
    %209 = tpu.matmul %208, %197, %cst_76 {dimension_numbers = #tpu.dot_dimension_numbers<[2], [1], [1], [2], [0, 0, 0, 1, 1, 2], [0], [0]>} : vector<1x8x8xbf16>, vector<1x8x8xbf16>, vector<1x8x8xf32> -> vector<1x8x8xf32>
    "tpu.trace_stop"() : () -> ()
    %210 = tpu.reciprocal %207 {approx = true} : vector<1x8x1xf32> -> vector<1x8x1xf32>
    %211 = vector.broadcast %210 : vector<1x8x1xf32> to vector<1x8x8xf32>
    %212 = arith.mulf %209, %211 : vector<1x8x8xf32>
    %213 = vector.shape_cast %212 : vector<1x8x8xf32> to vector<8x8xf32>
    %214 = vector.extract_strided_slice %178 {offsets = [0, 8], sizes = [8, 8], strides = [1, 1]} : vector<8x32xf32> to vector<8x8xf32>
    %215 = vector.shape_cast %214 : vector<8x8xf32> to vector<1x8x8xf32>
    %216 = arith.truncf %215 : vector<1x8x8xf32> to vector<1x8x8xbf16>
    %217 = vector.extract_strided_slice %183 {offsets = [0, 8], sizes = [8, 8], strides = [1, 1]} : vector<8x32xf32> to vector<8x8xf32>
    %218 = vector.shape_cast %217 : vector<8x8xf32> to vector<1x8x8xf32>
    %219 = arith.truncf %218 : vector<1x8x8xf32> to vector<1x8x8xbf16>
    %220 = vector.extract_strided_slice %188 {offsets = [0, 8], sizes = [8, 8], strides = [1, 1]} : vector<8x32xf32> to vector<8x8xf32>
    %221 = vector.shape_cast %220 : vector<8x8xf32> to vector<1x8x8xf32>
    %222 = arith.truncf %221 : vector<1x8x8xf32> to vector<1x8x8xbf16>
    "tpu.trace_start"() <{level = 10 : i32, message = "nqd,nkd->nqk"}> : () -> ()
    %cst_77 = arith.constant dense<0.000000e+00> : vector<1x8x8xf32>
    %223 = tpu.matmul %216, %219, %cst_77 {dimension_numbers = #tpu.dot_dimension_numbers<[2], [2], [1], [1], [0, 0, 0, 1, 1, 1], [0], [0]>} : vector<1x8x8xbf16>, vector<1x8x8xbf16>, vector<1x8x8xf32> -> vector<1x8x8xf32>
    "tpu.trace_stop"() : () -> ()
    %224 = vector.broadcast %169 : vector<1x1x8xf32> to vector<1x8x8xf32>
    %225 = arith.addf %223, %224 : vector<1x8x8xf32>
    %cst_78 = arith.constant dense<0xFF800000> : vector<1x8xf32>
    %226 = vector.multi_reduction <maximumf>, %225, %cst_78 [2] : vector<1x8x8xf32> to vector<1x8xf32>
    %227 = vector.shape_cast %226 : vector<1x8xf32> to vector<1x8x1xf32>
    %228 = vector.broadcast %227 : vector<1x8x1xf32> to vector<1x8x8xf32>
    %229 = arith.subf %225, %228 : vector<1x8x8xf32>
    %230 = math.exp %229 : vector<1x8x8xf32>
    %cst_79 = arith.constant dense<0.000000e+00> : vector<1x8xf32>
    %231 = vector.multi_reduction <add>, %230, %cst_79 [2] : vector<1x8x8xf32> to vector<1x8xf32>
    %232 = vector.shape_cast %231 : vector<1x8xf32> to vector<1x8x1xf32>
    %233 = arith.truncf %230 : vector<1x8x8xf32> to vector<1x8x8xbf16>
    "tpu.trace_start"() <{level = 10 : i32, message = "nqk,nkd->nqd"}> : () -> ()
    %cst_80 = arith.constant dense<0.000000e+00> : vector<1x8x8xf32>
    %234 = tpu.matmul %233, %222, %cst_80 {dimension_numbers = #tpu.dot_dimension_numbers<[2], [1], [1], [2], [0, 0, 0, 1, 1, 2], [0], [0]>} : vector<1x8x8xbf16>, vector<1x8x8xbf16>, vector<1x8x8xf32> -> vector<1x8x8xf32>
    "tpu.trace_stop"() : () -> ()
    %235 = tpu.reciprocal %232 {approx = true} : vector<1x8x1xf32> -> vector<1x8x1xf32>
    %236 = vector.broadcast %235 : vector<1x8x1xf32> to vector<1x8x8xf32>
    %237 = arith.mulf %234, %236 : vector<1x8x8xf32>
    %238 = vector.shape_cast %237 : vector<1x8x8xf32> to vector<8x8xf32>
    %239 = vector.extract_strided_slice %178 {offsets = [0, 16], sizes = [8, 8], strides = [1, 1]} : vector<8x32xf32> to vector<8x8xf32>
    %240 = vector.shape_cast %239 : vector<8x8xf32> to vector<1x8x8xf32>
    %241 = arith.truncf %240 : vector<1x8x8xf32> to vector<1x8x8xbf16>
    %242 = vector.extract_strided_slice %183 {offsets = [0, 16], sizes = [8, 8], strides = [1, 1]} : vector<8x32xf32> to vector<8x8xf32>
    %243 = vector.shape_cast %242 : vector<8x8xf32> to vector<1x8x8xf32>
    %244 = arith.truncf %243 : vector<1x8x8xf32> to vector<1x8x8xbf16>
    %245 = vector.extract_strided_slice %188 {offsets = [0, 16], sizes = [8, 8], strides = [1, 1]} : vector<8x32xf32> to vector<8x8xf32>
    %246 = vector.shape_cast %245 : vector<8x8xf32> to vector<1x8x8xf32>
    %247 = arith.truncf %246 : vector<1x8x8xf32> to vector<1x8x8xbf16>
    "tpu.trace_start"() <{level = 10 : i32, message = "nqd,nkd->nqk"}> : () -> ()
    %cst_81 = arith.constant dense<0.000000e+00> : vector<1x8x8xf32>
    %248 = tpu.matmul %241, %244, %cst_81 {dimension_numbers = #tpu.dot_dimension_numbers<[2], [2], [1], [1], [0, 0, 0, 1, 1, 1], [0], [0]>} : vector<1x8x8xbf16>, vector<1x8x8xbf16>, vector<1x8x8xf32> -> vector<1x8x8xf32>
    "tpu.trace_stop"() : () -> ()
    %249 = vector.broadcast %169 : vector<1x1x8xf32> to vector<1x8x8xf32>
    %250 = arith.addf %248, %249 : vector<1x8x8xf32>
    %cst_82 = arith.constant dense<0xFF800000> : vector<1x8xf32>
    %251 = vector.multi_reduction <maximumf>, %250, %cst_82 [2] : vector<1x8x8xf32> to vector<1x8xf32>
    %252 = vector.shape_cast %251 : vector<1x8xf32> to vector<1x8x1xf32>
    %253 = vector.broadcast %252 : vector<1x8x1xf32> to vector<1x8x8xf32>
    %254 = arith.subf %250, %253 : vector<1x8x8xf32>
    %255 = math.exp %254 : vector<1x8x8xf32>
    %cst_83 = arith.constant dense<0.000000e+00> : vector<1x8xf32>
    %256 = vector.multi_reduction <add>, %255, %cst_83 [2] : vector<1x8x8xf32> to vector<1x8xf32>
    %257 = vector.shape_cast %256 : vector<1x8xf32> to vector<1x8x1xf32>
    %258 = arith.truncf %255 : vector<1x8x8xf32> to vector<1x8x8xbf16>
    "tpu.trace_start"() <{level = 10 : i32, message = "nqk,nkd->nqd"}> : () -> ()
    %cst_84 = arith.constant dense<0.000000e+00> : vector<1x8x8xf32>
    %259 = tpu.matmul %258, %247, %cst_84 {dimension_numbers = #tpu.dot_dimension_numbers<[2], [1], [1], [2], [0, 0, 0, 1, 1, 2], [0], [0]>} : vector<1x8x8xbf16>, vector<1x8x8xbf16>, vector<1x8x8xf32> -> vector<1x8x8xf32>
    "tpu.trace_stop"() : () -> ()
    %260 = tpu.reciprocal %257 {approx = true} : vector<1x8x1xf32> -> vector<1x8x1xf32>
    %261 = vector.broadcast %260 : vector<1x8x1xf32> to vector<1x8x8xf32>
    %262 = arith.mulf %259, %261 : vector<1x8x8xf32>
    %263 = vector.shape_cast %262 : vector<1x8x8xf32> to vector<8x8xf32>
    %264 = vector.extract_strided_slice %178 {offsets = [0, 24], sizes = [8, 8], strides = [1, 1]} : vector<8x32xf32> to vector<8x8xf32>
    %265 = vector.shape_cast %264 : vector<8x8xf32> to vector<1x8x8xf32>
    %266 = arith.truncf %265 : vector<1x8x8xf32> to vector<1x8x8xbf16>
    %267 = vector.extract_strided_slice %183 {offsets = [0, 24], sizes = [8, 8], strides = [1, 1]} : vector<8x32xf32> to vector<8x8xf32>
    %268 = vector.shape_cast %267 : vector<8x8xf32> to vector<1x8x8xf32>
    %269 = arith.truncf %268 : vector<1x8x8xf32> to vector<1x8x8xbf16>
    %270 = vector.extract_strided_slice %188 {offsets = [0, 24], sizes = [8, 8], strides = [1, 1]} : vector<8x32xf32> to vector<8x8xf32>
    %271 = vector.shape_cast %270 : vector<8x8xf32> to vector<1x8x8xf32>
    %272 = arith.truncf %271 : vector<1x8x8xf32> to vector<1x8x8xbf16>
    "tpu.trace_start"() <{level = 10 : i32, message = "nqd,nkd->nqk"}> : () -> ()
    %cst_85 = arith.constant dense<0.000000e+00> : vector<1x8x8xf32>
    %273 = tpu.matmul %266, %269, %cst_85 {dimension_numbers = #tpu.dot_dimension_numbers<[2], [2], [1], [1], [0, 0, 0, 1, 1, 1], [0], [0]>} : vector<1x8x8xbf16>, vector<1x8x8xbf16>, vector<1x8x8xf32> -> vector<1x8x8xf32>
    "tpu.trace_stop"() : () -> ()
    %274 = vector.broadcast %169 : vector<1x1x8xf32> to vector<1x8x8xf32>
    %275 = arith.addf %273, %274 : vector<1x8x8xf32>
    %cst_86 = arith.constant dense<0xFF800000> : vector<1x8xf32>
    %276 = vector.multi_reduction <maximumf>, %275, %cst_86 [2] : vector<1x8x8xf32> to vector<1x8xf32>
    %277 = vector.shape_cast %276 : vector<1x8xf32> to vector<1x8x1xf32>
    %278 = vector.broadcast %277 : vector<1x8x1xf32> to vector<1x8x8xf32>
    %279 = arith.subf %275, %278 : vector<1x8x8xf32>
    %280 = math.exp %279 : vector<1x8x8xf32>
    %cst_87 = arith.constant dense<0.000000e+00> : vector<1x8xf32>
    %281 = vector.multi_reduction <add>, %280, %cst_87 [2] : vector<1x8x8xf32> to vector<1x8xf32>
    %282 = vector.shape_cast %281 : vector<1x8xf32> to vector<1x8x1xf32>
    %283 = arith.truncf %280 : vector<1x8x8xf32> to vector<1x8x8xbf16>
    "tpu.trace_start"() <{level = 10 : i32, message = "nqk,nkd->nqd"}> : () -> ()
    %cst_88 = arith.constant dense<0.000000e+00> : vector<1x8x8xf32>
    %284 = tpu.matmul %283, %272, %cst_88 {dimension_numbers = #tpu.dot_dimension_numbers<[2], [1], [1], [2], [0, 0, 0, 1, 1, 2], [0], [0]>} : vector<1x8x8xbf16>, vector<1x8x8xbf16>, vector<1x8x8xf32> -> vector<1x8x8xf32>
    "tpu.trace_stop"() : () -> ()
    %285 = tpu.reciprocal %282 {approx = true} : vector<1x8x1xf32> -> vector<1x8x1xf32>
    %286 = vector.broadcast %285 : vector<1x8x1xf32> to vector<1x8x8xf32>
    %287 = arith.mulf %284, %286 : vector<1x8x8xf32>
    %288 = vector.shape_cast %287 : vector<1x8x8xf32> to vector<8x8xf32>
    %289 = tpu.concatenate %213, %238, %263, %288 in 1 : vector<8x8xf32>, vector<8x8xf32>, vector<8x8xf32>, vector<8x8xf32> -> vector<8x32xf32>
    %290 = arith.truncf %289 : vector<8x32xf32> to vector<8x32xbf16>
    %cst_89 = arith.constant dense<0.000000e+00> : vector<8x32xf32>
    %291 = tpu.matmul %290, %171, %cst_89 {dimension_numbers = #tpu.dot_dimension_numbers<[1], [0], [0], [1], [0, 0, 1, 1], [], []>} : vector<8x32xbf16>, vector<32x32xbf16>, vector<8x32xf32> -> vector<8x32xf32>
    %292 = vector.broadcast %16 : vector<1x32xf32> to vector<8x32xf32>
    %293 = arith.addf %291, %292 : vector<8x32xf32>
    %294 = arith.addf %168, %293 : vector<8x32xf32>
    %cst_90 = arith.constant dense<0.000000e+00> : vector<8xf32>
    %295 = vector.multi_reduction <add>, %294, %cst_90 [1] : vector<8x32xf32> to vector<8xf32>
    %296 = vector.shape_cast %295 : vector<8xf32> to vector<8x1xf32>
    %cst_91 = arith.constant 3.200000e+01 : f32
    %297 = vector.broadcast %cst_91 : f32 to vector<8x1xf32>
    %298 = arith.divf %296, %297 : vector<8x1xf32>
    %299 = vector.broadcast %298 : vector<8x1xf32> to vector<8x32xf32>
    %300 = arith.subf %294, %299 : vector<8x32xf32>
    %301 = arith.mulf %300, %300 : vector<8x32xf32>
    %cst_92 = arith.constant dense<0.000000e+00> : vector<8xf32>
    %302 = vector.multi_reduction <add>, %301, %cst_92 [1] : vector<8x32xf32> to vector<8xf32>
    %303 = vector.shape_cast %302 : vector<8xf32> to vector<8x1xf32>
    %cst_93 = arith.constant 3.200000e+01 : f32
    %304 = vector.broadcast %cst_93 : f32 to vector<8x1xf32>
    %305 = arith.divf %303, %304 : vector<8x1xf32>
    %cst_94 = arith.constant 9.99999974E-6 : f32
    %306 = vector.broadcast %cst_94 : f32 to vector<8x1xf32>
    %307 = arith.addf %305, %306 : vector<8x1xf32>
    %308 = math.rsqrt %307 : vector<8x1xf32>
    %309 = vector.broadcast %308 : vector<8x1xf32> to vector<8x32xf32>
    %310 = arith.mulf %300, %309 : vector<8x32xf32>
    %311 = vector.broadcast %20 : vector<1x32xf32> to vector<8x32xf32>
    %312 = arith.mulf %310, %311 : vector<8x32xf32>
    %313 = vector.broadcast %21 : vector<1x32xf32> to vector<8x32xf32>
    %314 = arith.addf %312, %313 : vector<8x32xf32>
    %315 = arith.truncf %314 : vector<8x32xf32> to vector<8x32xbf16>
    %c0_95 = arith.constant 0 : index
    %c0_96 = arith.constant 0 : index
    %c0_97 = arith.constant 0 : index
    %316 = vector.load %arg11[%c0_95, %c0_96, %c0_97] : memref<1x32x64xbf16, #tpu.memory_space<vmem>>, vector<1x32x64xbf16>
    %317 = vector.shape_cast %316 : vector<1x32x64xbf16> to vector<32x64xbf16>
    %cst_98 = arith.constant dense<0.000000e+00> : vector<8x64xf32>
    %318 = tpu.matmul %315, %317, %cst_98 {dimension_numbers = #tpu.dot_dimension_numbers<[1], [0], [0], [1], [0, 0, 1, 1], [], []>} : vector<8x32xbf16>, vector<32x64xbf16>, vector<8x64xf32> -> vector<8x64xf32>
    %c0_99 = arith.constant 0 : index
    %c0_100 = arith.constant 0 : index
    %c0_101 = arith.constant 0 : index
    %319 = vector.load %arg13[%c0_99, %c0_100, %c0_101] : memref<1x1x64xf32, #tpu.memory_space<vmem>>, vector<1x1x64xf32>
    %320 = vector.shape_cast %319 : vector<1x1x64xf32> to vector<1x64xf32>
    %321 = vector.broadcast %320 : vector<1x64xf32> to vector<8x64xf32>
    %322 = arith.addf %318, %321 : vector<8x64xf32>
    %cst_102 = arith.constant 0.000000e+00 : f32
    %323 = vector.broadcast %cst_102 : f32 to vector<8x64xf32>
    %324 = arith.maximumf %322, %323 : vector<8x64xf32>
    %325 = arith.truncf %324 : vector<8x64xf32> to vector<8x64xbf16>
    %c0_103 = arith.constant 0 : index
    %c0_104 = arith.constant 0 : index
    %c0_105 = arith.constant 0 : index
    %326 = vector.load %arg12[%c0_103, %c0_104, %c0_105] : memref<1x64x32xbf16, #tpu.memory_space<vmem>>, vector<1x64x32xbf16>
    %327 = vector.shape_cast %326 : vector<1x64x32xbf16> to vector<64x32xbf16>
    %cst_106 = arith.constant dense<0.000000e+00> : vector<8x32xf32>
    %328 = tpu.matmul %325, %327, %cst_106 {dimension_numbers = #tpu.dot_dimension_numbers<[1], [0], [0], [1], [0, 0, 1, 1], [], []>} : vector<8x64xbf16>, vector<64x32xbf16>, vector<8x32xf32> -> vector<8x32xf32>
    %329 = vector.broadcast %17 : vector<1x32xf32> to vector<8x32xf32>
    %330 = arith.addf %328, %329 : vector<8x32xf32>
    %331 = arith.addf %314, %330 : vector<8x32xf32>
    %cst_107 = arith.constant dense<0.000000e+00> : vector<8xf32>
    %332 = vector.multi_reduction <add>, %331, %cst_107 [1] : vector<8x32xf32> to vector<8xf32>
    %333 = vector.shape_cast %332 : vector<8xf32> to vector<8x1xf32>
    %cst_108 = arith.constant 3.200000e+01 : f32
    %334 = vector.broadcast %cst_108 : f32 to vector<8x1xf32>
    %335 = arith.divf %333, %334 : vector<8x1xf32>
    %336 = vector.broadcast %335 : vector<8x1xf32> to vector<8x32xf32>
    %337 = arith.subf %331, %336 : vector<8x32xf32>
    %338 = arith.mulf %337, %337 : vector<8x32xf32>
    %cst_109 = arith.constant dense<0.000000e+00> : vector<8xf32>
    %339 = vector.multi_reduction <add>, %338, %cst_109 [1] : vector<8x32xf32> to vector<8xf32>
    %340 = vector.shape_cast %339 : vector<8xf32> to vector<8x1xf32>
    %cst_110 = arith.constant 3.200000e+01 : f32
    %341 = vector.broadcast %cst_110 : f32 to vector<8x1xf32>
    %342 = arith.divf %340, %341 : vector<8x1xf32>
    %cst_111 = arith.constant 9.99999974E-6 : f32
    %343 = vector.broadcast %cst_111 : f32 to vector<8x1xf32>
    %344 = arith.addf %342, %343 : vector<8x1xf32>
    %345 = math.rsqrt %344 : vector<8x1xf32>
    %346 = vector.broadcast %345 : vector<8x1xf32> to vector<8x32xf32>
    %347 = arith.mulf %337, %346 : vector<8x32xf32>
    %348 = vector.broadcast %22 : vector<1x32xf32> to vector<8x32xf32>
    %349 = arith.mulf %347, %348 : vector<8x32xf32>
    %350 = vector.broadcast %23 : vector<1x32xf32> to vector<8x32xf32>
    %351 = arith.addf %349, %350 : vector<8x32xf32>
    %352 = vector.shape_cast %351 : vector<8x32xf32> to vector<1x8x32xf32>
    %c0_112 = arith.constant 0 : index
    %c0_113 = arith.constant 0 : index
    %c0_114 = arith.constant 0 : index
    %353 = vector.load %arg16[%c0_112, %c0_113, %c0_114] : memref<1x8x32xf32, #tpu.memory_space<vmem>>, vector<1x8x32xf32>
    tpu.vector_store %arg16[%c0_112, %c0_113, %c0_114], %352 {strides = array<i32>} : memref<1x8x32xf32, #tpu.memory_space<vmem>>, vector<1x8x32xf32>,
    %c0_115 = arith.constant 0 : index
    %c0_116 = arith.constant 0 : index
    %c0_117 = arith.constant 0 : index
    %354 = vector.load %arg15[%c0_115, %c0_116, %c0_117] : memref<1x8x32xf32, #tpu.memory_space<vmem>>, vector<1x8x32xf32>
    tpu.vector_store %arg15[%c0_115, %c0_116, %c0_117], %352 {strides = array<i32>} : memref<1x8x32xf32, #tpu.memory_space<vmem>>, vector<1x8x32xf32>,
    return
  }
  func.func @transform_0(%arg0: i32, %arg1: i32) -> (i32, i32, i32) {
    %c0_i32 = arith.constant 0 : i32
    %c0_i32_0 = arith.constant 0 : i32
    %c0_i32_1 = arith.constant 0 : i32
    return %arg0, %c0_i32, %c0_i32_0 : i32, i32, i32
  }
  func.func @transform_1(%arg0: i32, %arg1: i32) -> (i32, i32, i32) {
    %c0_i32 = arith.constant 0 : i32
    %c0_i32_0 = arith.constant 0 : i32
    %c0_i32_1 = arith.constant 0 : i32
    return %arg0, %c0_i32, %c0_i32_0 : i32, i32, i32
  }
  func.func @transform_2(%arg0: i32, %arg1: i32) -> (i32, i32, i32) {
    %c0_i32 = arith.constant 0 : i32
    %c0_i32_0 = arith.constant 0 : i32
    %c0_i32_1 = arith.constant 0 : i32
    return %arg0, %c0_i32, %c0_i32_0 : i32, i32, i32
  }
  func.func @transform_3(%arg0: i32, %arg1: i32) -> (i32, i32, i32) {
    %c0_i32 = arith.constant 0 : i32
    %c0_i32_0 = arith.constant 0 : i32
    %c0_i32_1 = arith.constant 0 : i32
    return %arg0, %c0_i32, %c0_i32_0 : i32, i32, i32
  }
  func.func @transform_4(%arg0: i32, %arg1: i32) -> (i32, i32, i32) {
    %c0_i32 = arith.constant 0 : i32
    %c0_i32_0 = arith.constant 0 : i32
    %c0_i32_1 = arith.constant 0 : i32
    %c0_i32_2 = arith.constant 0 : i32
    return %c0_i32, %c0_i32_0, %c0_i32_1 : i32, i32, i32
  }
  func.func @transform_5(%arg0: i32, %arg1: i32) -> (i32, i32, i32, i32) {
    %c0_i32 = arith.constant 0 : i32
    %c0_i32_0 = arith.constant 0 : i32
    %c0_i32_1 = arith.constant 0 : i32
    %c0_i32_2 = arith.constant 0 : i32
    return %arg1, %c0_i32, %c0_i32_0, %c0_i32_1 : i32, i32, i32, i32
  }
  func.func @transform_6(%arg0: i32, %arg1: i32) -> (i32, i32, i32) {
    %c0_i32 = arith.constant 0 : i32
    %c0_i32_0 = arith.constant 0 : i32
    %c0_i32_1 = arith.constant 0 : i32
    return %arg1, %c0_i32, %c0_i32_0 : i32, i32, i32
  }
  func.func @transform_7(%arg0: i32, %arg1: i32) -> (i32, i32, i32, i32) {
    %c0_i32 = arith.constant 0 : i32
    %c0_i32_0 = arith.constant 0 : i32
    %c0_i32_1 = arith.constant 0 : i32
    %c0_i32_2 = arith.constant 0 : i32
    return %arg1, %c0_i32, %c0_i32_0, %c0_i32_1 : i32, i32, i32, i32
  }
  func.func @transform_8(%arg0: i32, %arg1: i32) -> (i32, i32, i32) {
    %c0_i32 = arith.constant 0 : i32
    %c0_i32_0 = arith.constant 0 : i32
    %c0_i32_1 = arith.constant 0 : i32
    return %arg1, %c0_i32, %c0_i32_0 : i32, i32, i32
  }
  func.func @transform_9(%arg0: i32, %arg1: i32) -> (i32, i32, i32) {
    %c0_i32 = arith.constant 0 : i32
    %c0_i32_0 = arith.constant 0 : i32
    %c0_i32_1 = arith.constant 0 : i32
    return %arg1, %c0_i32, %c0_i32_0 : i32, i32, i32
  }
  func.func @transform_10(%arg0: i32, %arg1: i32) -> (i32, i32, i32) {
    %c0_i32 = arith.constant 0 : i32
    %c0_i32_0 = arith.constant 0 : i32
    %c0_i32_1 = arith.constant 0 : i32
    return %arg1, %c0_i32, %c0_i32_0 : i32, i32, i32
  }
  func.func @transform_11(%arg0: i32, %arg1: i32) -> (i32, i32, i32) {
    %c0_i32 = arith.constant 0 : i32
    %c0_i32_0 = arith.constant 0 : i32
    %c0_i32_1 = arith.constant 0 : i32
    return %arg1, %c0_i32, %c0_i32_0 : i32, i32, i32
  }
  func.func @transform_12(%arg0: i32, %arg1: i32) -> (i32, i32, i32) {
    %c0_i32 = arith.constant 0 : i32
    %c0_i32_0 = arith.constant 0 : i32
    %c0_i32_1 = arith.constant 0 : i32
    return %arg1, %c0_i32, %c0_i32_0 : i32, i32, i32
  }
  func.func @transform_13(%arg0: i32, %arg1: i32) -> (i32, i32, i32) {
    %c0_i32 = arith.constant 0 : i32
    %c0_i32_0 = arith.constant 0 : i32
    %c0_i32_1 = arith.constant 0 : i32
    return %arg0, %c0_i32, %c0_i32_0 : i32, i32, i32
  }
}

</mosaic_0001>

<bundles_post_ra>
// kernel: transformer_forward.5
= control target key start
LH: loop header
LB: loop body
LE: loop exit
PB: predicated region body
PF: predicated region fallthrough
CT: control target
= control target key end

     0   :  { %s159_s0 = inlined_call_operand.vmem [shape: f32[16,32], index: 0, kind: input, shape index: {}]   ;;  %s160_s1 = inlined_call_operand.vmem [shape: bf16[32,128], index: 1, kind: input, shape index: {}]   ;;  %s161_s2 = inlined_call_operand.vmem [shape: f32[1,128], index: 2, kind: input, shape index: {}]   ;;  %s162_s3 = inlined_call_operand.hbm [shape: f32[16,128], index: 3, kind: output, shape index: {}]  }
   0x1   :  { %v87_v0 = vld [vmem:[%s160_s1 + $0x8] sm:$0xff]  ;;  %v86_v1 = vld [vmem:[%s160_s1] sm:$0xff] }
   0x2   :  { %49 = vmatpush.bf16.msra.mxu0 %v87_v0  ;;  %v16_v2 = vld [vmem:[%s159_s0] sm:$0xff]  ;;  %v17_v3 = vld [vmem:[%s159_s0 + $0x8] sm:$0xff] }
   0x3   :  { %8 = vsyncpa [#allocation3], 0  ;;  %v18_v4 = vpack.c.bf16 %v17_v3, %v16_v2  ;;  %vm39_vm0 = vcmask 261120   ;;  %v91_v5 = vld [vmem:[%s161_s2] ss:$0 sm:$0xff]  ;;  %s118_s1 = smov [#allocation2]  }
   0x4   :  { %s63_s22 = sshll.u32 %s118_s1, 4  ;;  %s65_s25 = sshll.u32 %s162_s3, 4  ;;  %s64_s22 = int_to_ptr.vmem [resolvable:$true] %s63_s22  ;;  %s66_s25 = int_to_ptr.hbm [resolvable:$true] %s65_s25 }
   0x5   :  { %s119_s0 = smov 128   ;;  %s120_s26 = smov 8  }
   0x6   :  { %50 = vmatpush.bf16.msra.mxu0 %v86_v1 }
   0x9   :  { %85 = vmatmul.msk.bf16.vlgmr.msra.gmra.mxu0 %vm39_vm0, %v18_v4 }
  0x86   :  { %v52_v6 = vpop.f32.mrf.mxu0 }
  0x87   :  { %v53_v7 = vadd.f32 %v91_v5, %v52_v6 }
  0x89   :  { %57 = vst [vmem:[#allocation2] sm:$0xff] %v53_v7 }
  0x8e   :  { %v54_v8 = vpop.f32.mrf.mxu0 }
  0x8f   :  { %v55_v9 = vadd.f32 %v91_v5, %v54_v8 }
  0x91   :  { %58 = vst [vmem:[#allocation2 + $0x8] sm:$0xff] %v55_v9 }
  0x92   :  { %71 = dma.vmem_to_hbm [thread:$0]  %s64_s22, 256, %s66_s25, [#allocation3], %s119_s0, %s119_s0, %s120_s26  }
  0x93   :  { %116 = dma.done.wait [#allocation3], 256  }
  0x94   :  { %117 = vsyncadd [#allocation3], 4294967040 }
  0x95   :  { %76 = vsyncpa [#allocation3], 1 }

// kernel: transformer_forward.3
= control target key start
LH: loop header
LB: loop body
LE: loop exit
PB: predicated region body
PF: predicated region fallthrough
CT: control target
= control target key end

     0   :  { %s1410_s27 = smov 0   ;;  %s1412_s28 = smov 0   ;;  %s1588_s0 = inlined_call_operand.vmem [shape: f32[2,8,32], index: 0, kind: input, shape index: {}]   ;;  %s1589_s1 = inlined_call_operand.vmem [shape: f32[2,1,8], index: 1, kind: input, shape index: {}]   ;;  %s1590_s2 = inlined_call_operand.vmem [shape: bf16[2,3,32,32], index: 2, kind: input, shape index: {}]   ;;  %s1591_s3 = inlined_call_operand.vmem [shape: bf16[2,32,32], index: 3, kind: input, shape index: {}]   ;;  %s1592_s4 = inlined_call_operand.vmem [shape: bf16[2,32,64], index: 4, kind: input, shape index: {}]   ;;  %s1593_s5 = inlined_call_operand.vmem [shape: bf16[2,64,32], index: 5, kind: input, shape index: {}]   ;;  %s1594_s6 = inlined_call_operand.vmem [shape: f32[2,1,64], index: 6, kind: input, shape index: {}]   ;;  %s1595_s7 = inlined_call_operand.vmem [shape: f32[2,9,32], index: 7, kind: input, shape index: {}]   ;;  %s1596_s8 = inlined_call_operand.vmem [shape: f32[2,8,32], index: 8, kind: output, shape index: {}]  }
   0x1   :  { %1599 = sst [smem:[#allocation7_spill]] %s1588_s0  ;;  %s1414_s29 = smov 0  }
   0x2   :  { %1600 = sst [smem:[#allocation8_spill]] %s1590_s2  ;;  %s1416_s30 = smov 0  }
   0x3   :  { %s1418_s9 = smov 0  }
   0x4 LB: > { %1601 = sst [smem:[#allocation3_spill]] %s1348_s29  ;;  %s27_s10 = sadd.s32 1, %s1348_s29  ;;  %s1356_s9 = sphi %s1418_s9, %s18_s9   ;;  %s1352_s30 = sphi %s1416_s30, %s1611_s30   ;;  %s1348_s29 = sphi %s1414_s29, %s1610_s29   ;;  %s1344_s28 = sphi %s1412_s28, %s1609_s28   ;;  %s1340_s27 = sphi %s1410_s27, %s1608_s27  }
   0x5   : > { %1602 = sst [smem:[#allocation4_spill]] %s1352_s30  ;;  %s30_s11 = sadd.s32 1, %s1352_s30 }
   0x6   : > { %p28_p0 = scmp.ge.s32.totalorder %s27_s10, 2  ;;  %p1134_p1 = scmp.ge.s32.totalorder %s1356_s9, 1 }
   0x7   : > { %p339_p2 = scmp.lt.s32.totalorder %s1356_s9, 5 }
   0x8   : > { %s1613_s10 = smov (%p28_p0, %s27_s10), 0  ;;  %s1615_s11 = smov (!%p28_p0, %s30_s11), %s1352_s30 }
   0x9   : > { %1603 = sst [smem:[#allocation5_spill]] %s1613_s10  ;;  %p340_p3 = pnand %p1134_p1, %p339_p2 }
   0xa   : > { %p32_p4 = scmp.ge.s32.totalorder %s1615_s11, 2  ;;  %p402_p5 = scmp.lt.s32.totalorder (!%p340_p3), %s1344_s28, 1 }
   0xb   : > { %343 = sbr.rel (%p340_p3) target bundleno = 1755 (0x6db), region = 52  ;;  %p409_p6 = scmp.lt.s32.totalorder (!%p340_p3), %s1340_s27, 1 }
   0xc   : > { %s1617_s11 = smov (%p32_p4, %s1615_s11), 0  ;;  %s1605_s0 = sld [smem:[#allocation7_spill]] (!%p340_p3) }
   0xd   : > { %1604 = sst [smem:[#allocation6_spill]] %s1617_s11  ;;  %p1146_p7 = scmp.ne.s32.totalorder (!%p340_p3), %s1340_s27, 0 }
   0xe   : > { %s1606_s2 = sld [smem:[#allocation8_spill]] (!%p340_p3) }
  0x10   : > { %s1619_s28 = smov (!%p402_p5, %s1344_s28), 1 }
  0x11   : > { %s1446_s12 = scalar_select %p409_p6, %s1340_s27, 1 }
  0x12   : > { %s1135_s13 = sshll.u32 %s1619_s28, 3 }
  0x13   : > { %s405_s19 = scalar_lea.vmem %s1605_s0, %s1135_s13  ;;  %s1245_s20 = smul.u32 48, %s1446_s12 }
  0x14   : > { %s1227_s21 = sshll.u32 %s1446_s12, 4  ;;  %s1229_s22 = sshll.u32 %s1446_s12, 5 }
  0x15   : > { %s413_s25 = scalar_lea.vmem %s1606_s2, %s1245_s20  ;;  %s1465_s10 = scalar_lea.vmem %s1591_s3, %s1227_s21 }
  0x16   : > { %s1470_s14 = scalar_lea.vmem %s1592_s4, %s1227_s21  ;;  %s1475_s18 = scalar_lea.vmem %s1593_s5, %s1229_s22 }
  0x17   : > { %s431_s23 = scalar_lea.vmem %s1594_s6, %s1446_s12  ;;  %s1484_s11 = scalar_lea.vmem %s1595_s7, %s1227_s21 }
  0x18   : > { %s1489_s29 = scalar_lea.vmem %s1596_s8, %s1135_s13  ;;  %445 = sbr.rel (%p1146_p7) target bundleno = 31 (0x1f), region = 56 }
  0x1d   : > { %v446_v0 = vld [vmem:[%s405_s19] sm:$0xff]  ;;  %vm447_vm0 = vcmask 261120  }
  0x1e   : > { %448 = vst.msk [vmem:[#allocation2] sm:$0xff] %vm447_vm0, %v446_v0 }
  0x1f PF: > { %v1234_v1 = vld [vmem:[%s413_s25 + $0x8] sm:$0xff]  ;;  %v1236_v2 = vld [vmem:[%s413_s25 + $0x18] sm:$0xff]  ;;  %v1233_v3 = vld [vmem:[%s413_s25] sm:$0xff]  ;;  %vm475_vm1 = vcmask 261120   ;;  %vm560_vm2 = vcmask 64512   ;;  %s1358_s0 = smov 112   ;;  %s1607_s16 = scalar_lea.vmem %s1589_s1, %s1619_s28 }
  0x20   : > { %v1235_v4 = vld [vmem:[%s413_s25 + $0x10] sm:$0xff]  ;;  %485 = vmatpush.bf16.msra.mxu0 %v1234_v1  ;;  %516 = vmatpush.bf16.msra.mxu1 %v1236_v2  ;;  %v1238_v7 = vld [vmem:[%s413_s25 + $0x28] sm:$0xff]  ;;  %v1237_v8 = vld [vmem:[%s413_s25 + $0x20] sm:$0xff]  ;;  %s1359_s2 = smov 120   ;;  %s1360_s27 = smov 104   ;;  %vm593_vm3 = vcmask 1043456  }
  0x21   : > { %547 = vmatpush.bf16.msra.mxu2 %v1238_v7  ;;  %v1499_v9 = vld [vmem:[%s1484_s11] sm:$0xff]  ;;  %s1361_s28 = smov 8   ;;  %s1362_s19 = smov 16   ;;  %vm802_vm4 = vcmask 130048   ;;  %vm804_vm5 = vcmask 195584   ;;  %vm942_vm10 = vcmask 523264  }
  0x22   : > { %v462_v10 = vperm.slane %v1499_v9, 0  ;;  %v497_v11 = vperm.slane %v1499_v9, 1  ;;  %v528_v27 = vperm.slane %v1499_v9, 2  ;;  %v1293_v41 = vld [vmem:[%s1607_s16] ss:$0 sm:$0xff]  ;;  %s1363_s21 = smov 24  }
  0x24   : > { %486 = vmatpush.bf16.msra.mxu0 %v1233_v3  ;;  %517 = vmatpush.bf16.msra.mxu1 %v1235_v4 }
  0x25   : > { %v1492_v5 = vld [vmem:[#allocation2] sm:$0xff]  ;;  %548 = vmatpush.bf16.msra.mxu2 %v1237_v8 }
  0x26   : > { %v457_v6 = vpack.c.bf16 %v1492_v5, %v1492_v5 }
  0x28   : > { %1155 = vmatmul.msk.bf16.vlgmr.msra.gmra.mxu0 %vm475_vm1, %v457_v6  ;;  %1168 = vmatmul.msk.bf16.vlgmr.msra.gmra.mxu1 %vm475_vm1, %v457_v6 }
  0x29   : > { %1181 = vmatmul.msk.bf16.vlgmr.msra.gmra.mxu2 %vm475_vm1, %v457_v6 }
  0xa5   : > { %v488_v12 = vpop.f32.mrf.mxu0  ;;  %v519_v13 = vpop.f32.mrf.mxu1 }
  0xa6   : > { %v489_v14 = vadd.f32 %v488_v12, %v462_v10  ;;  %v520_v15 = vadd.f32 %v519_v13, %v497_v11 }
  0xa8   : > { %v554_v16 = vpack.c.bf16 %v489_v14, %v489_v14  ;;  %v555_v17 = vpack.c.bf16 %v520_v15, %v520_v15 }
  0xaa   : > { %v613_v18 = vunpack.c.l.b16 %v554_v16  ;;  %v618_v19 = vunpack.c.l.b16 %v555_v17  ;;  %v565_v20 = vsel %vm560_vm2, %v555_v17, 0 }
  0xab   : > { %574 = vmatpush.bf16.xpose.msra.mxu3 %v565_v20 }
  0xac   : > { %v614_v21 = vpack.c.b16 %v613_v18, %v613_v18  ;;  %v619_v22 = vpack.c.b16 %v618_v19, %v618_v19  ;;  %v550_v30 = vpop.f32.mrf.mxu2 }
  0xad   : > { %v490_v23 = vpop.f32.mrf.mxu0  ;;  %v521_v24 = vpop.f32.mrf.mxu1  ;;  %v551_v31 = vadd.f32 %v550_v30, %v528_v27 }
  0xae   : > { %679 = vrot.lane.b32.xlu1 %v619_v22, %s1358_s0  ;;  %620 = vrot.lane.b32.xlu0 %v619_v22, %s1359_s2 }
  0xaf   : > { %677 = vrot.lane.b32.xlu2 %v614_v21, %s1358_s0  ;;  %v556_v32 = vpack.c.bf16 %v551_v31, %v551_v31 }
  0xb1   : > { %v652_v36 = vunpack.c.l.b16 %v556_v32  ;;  %v595_v37 = vsel %vm593_vm3, %v556_v32, 0 }
  0xb2   : > { %1182 = vmatmul.msk.bf16.vlgmr.msra.gmra.mxu3 %vm560_vm2, %v554_v16  ;;  %604 = vmatpush.bf16.msrb.mxu0 %v595_v37 }
  0xb3   : > { %v653_v39 = vpack.c.b16 %v652_v36, %v652_v36 }
  0xb4   : > { %v552_v40 = vpop.f32.mrf.mxu2 }
  0xb6   : > { %735 = vrot.lane.b32.xlu1 %v619_v22, %s1360_s27  ;;  %615 = vrot.lane.b32.xlu0 %v614_v21, %s1359_s2 }
  0xb7   : > { %733 = vrot.lane.b32.xlu2 %v614_v21, %s1360_s27 }
  0xbf   : > { %654 = vrot.lane.b32.xlu2 %v653_v39, %s1359_s2 }
 0x109   : > { %v678_v33 = vpop.permute.xlu2 %677 }
 0x111   : > { %v734_v44 = vpop.permute.xlu2 %733 }
 0x119   : > { %v655_v57 = vpop.permute.xlu2 %654 }
 0x11a   : > { %v660_v58 = vsel %vm593_vm3, %v655_v57, 0 }
 0x11b   : > { %669 = vmatpush.bf16.msrb.mxu2 %v660_v58 }
 0x120   : > { %v680_v25 = vpop.permute.xlu1 %679  ;;  %v621_v26 = vpop.permute.xlu0 %620 }
 0x121   : > { %v626_v28 = vsel %vm560_vm2, %v621_v26, 0  ;;  %v685_v29 = vsel %vm560_vm2, %v680_v25, 0 }
 0x122   : > { %635 = vmatpush.bf16.xpose.msrb.mxu1 %v626_v28  ;;  %694 = vmatpush.bf16.xpose.msrb.mxu3 %v685_v29 }
 0x128   : > { %v736_v34 = vpop.permute.xlu1 %735  ;;  %v616_v35 = vpop.permute.xlu0 %615 }
 0x129   : > { %v741_v38 = vsel %vm560_vm2, %v736_v34, 0  ;;  %1184 = vmatmul.msk.bf16.vlgmr.msrb.gmra.mxu1 %vm560_vm2, %v616_v35  ;;  %1186 = vmatmul.msk.bf16.vlgmr.msrb.gmra.mxu3 %vm560_vm2, %v678_v33 }
 0x12a   : > { %750 = vmatpush.bf16.xpose.msra.mxu1 %v741_v38 }
 0x135   : > { %v576_v42 = vpop.f32.mrf.mxu3 }
 0x136   : > { %v577_v43 = vadd.f32 %v1293_v41, %v576_v42 }
 0x138   : > { %v580_v45 = vsel %vm560_vm2, %v577_v43, -inf }
 0x139   : > { %1188 = vmatmul.msk.bf16.vlgmr.msra.gmra.mxu1 %vm560_vm2, %v734_v44  ;;  %581 = vmax.xlane.f32.xlu1 %v580_v45  ;;  %v1232_v44 = vld [vmem:[%s1465_s10 + $0x8] sm:$0xff]  ;;  %v1231_v45 = vld [vmem:[%s1465_s10] sm:$0xff] }
 0x13a   : > { %829 = vmatpush.bf16.msra.mxu3 %v1232_v44 }
 0x13d   : > { %v578_v46 = vpop.f32.mrf.mxu3 }
 0x13e   : > { %830 = vmatpush.bf16.msra.mxu3 %v1231_v45 }
 0x152   : > { %766 = vrot.lane.b32.xlu1 %v653_v39, %s1360_s27 }
 0x1a6   : > { %v637_v47 = vpop.f32.mrf.mxu1 }
 0x1a7   : > { %v638_v48 = vadd.f32 %v1293_v41, %v637_v47 }
 0x1a9   : > { %v641_v49 = vsel %vm560_vm2, %v638_v48, -inf }
 0x1aa   : > { %642 = vmax.xlane.f32.xlu0 %v641_v49 }
 0x1ac   : > { %v696_v50 = vpop.f32.mrf.mxu3  ;;  %v582_v51 = vpop.xlane.xlu1 %581 }
 0x1ad   : > { %v697_v52 = vadd.f32 %v1293_v41, %v696_v50  ;;  %v583_v53 = vsub.f32 %v577_v43, %v582_v51 }
 0x1ae   : > { %v639_v54 = vpop.f32.mrf.mxu1 }
 0x1af   : > { %v584_v55 = vmul.f32 1.442695, %v583_v53  ;;  %v700_v56 = vsel %vm560_vm2, %v697_v52, -inf }
 0x1b1   : > { %1296 = vpow2.f32 %v584_v55 }
 0x1b2   : > { %701 = vmax.xlane.f32.xlu0 %v700_v56  ;;  %v807_v56 = vperm.slane %v1499_v9, 3 }
 0x1b4   : > { %v698_v59 = vpop.f32.mrf.mxu3 }
 0x1b6   : > { %v752_v60 = vpop.f32.mrf.mxu1 }
 0x1b7   : > { %v1297_v61 = vpop.eup %1296  ;;  %v753_v62 = vadd.f32 %v1293_v41, %v752_v60 }
 0x1b8   : > { %v586_v63 = vsel %vm560_vm2, %v1297_v61, 0.0  ;;  %v589_v0 = vpack.c.bf16 %v1297_v61, %v1297_v61 }
 0x1b9   : > { %587 = vadd.xlane.f32.xlu1 %v586_v63  ;;  %v756_v1 = vsel %vm560_vm2, %v753_v62, -inf }
 0x1ba   : > { %757 = vmax.xlane.f32.xlu2 %v756_v1  ;;  %1183 = vmatmul.msk.bf16.vlgmr.msrb.gmra.mxu0 %vm560_vm2, %v589_v0 }
 0x1be   : > { %v754_v2 = vpop.f32.mrf.mxu1 }
 0x1c4   : > { %v767_v3 = vpop.permute.xlu1 %766 }
 0x1c5   : > { %v772_v4 = vsel %vm593_vm3, %v767_v3, 0 }
 0x1c6   : > { %781 = vmatpush.bf16.msra.mxu2 %v772_v4 }
 0x1d2   : > { %710 = vrot.lane.b32.xlu2 %v653_v39, %s1358_s0 }
 0x21d   : > { %v643_v6 = vpop.xlane.xlu0 %642 }
 0x21e   : > { %v644_v7 = vsub.f32 %v638_v48, %v643_v6 }
 0x220   : > { %v645_v8 = vmul.f32 1.442695, %v644_v7 }
 0x222   : > { %1298 = vpow2.f32 %v645_v8 }
 0x225   : > { %v702_v10 = vpop.xlane.xlu0 %701 }
 0x226   : > { %v703_v11 = vsub.f32 %v697_v52, %v702_v10 }
 0x228   : > { %v1299_v12 = vpop.eup %1298  ;;  %v704_v13 = vmul.f32 1.442695, %v703_v11  ;;  %v1240_v11 = vld [vmem:[%s1470_s14 + $0x8] sm:$0xff] }
 0x229   : > { %v647_v14 = vsel %vm560_vm2, %v1299_v12, 0.0  ;;  %v650_v15 = vpack.c.bf16 %v1299_v12, %v1299_v12  ;;  %v1239_v12 = vld [vmem:[%s1470_s14] sm:$0xff] }
 0x22a   : > { %1300 = vpow2.f32 %v704_v13  ;;  %648 = vadd.xlane.f32.xlu0 %v647_v14  ;;  %v1244_v13 = vld [vmem:[%s1475_s18 + $0x18] sm:$0xff] }
 0x22b   : > { %1185 = vmatmul.msk.bf16.vlgmr.msrb.gmra.mxu2 %vm560_vm2, %v650_v15  ;;  %950 = vmatpush.bf16.msrb.mxu1 %v1244_v13 }
 0x22c   : > { %v588_v46 = vpop.xlane.xlu1 %587 }
 0x22d   : > { %v758_v16 = vpop.xlane.xlu2 %757 }
 0x22e   : > { %v759_v17 = vsub.f32 %v753_v62, %v758_v16  ;;  %v1364_v62 = vmov 32.0   ;;  %v1243_v16 = vld [vmem:[%s1475_s18 + $0x10] sm:$0xff] }
 0x22f   : > { %951 = vmatpush.bf16.msrb.mxu1 %v1243_v16 }
 0x230   : > { %v1301_v18 = vpop.eup %1300  ;;  %v760_v19 = vmul.f32 1.442695, %v759_v17 }
 0x231   : > { %v706_v20 = vsel %vm560_vm2, %v1301_v18, 0.0  ;;  %v709_v25 = vpack.c.bf16 %v1301_v18, %v1301_v18 }
 0x232   : > { %1302 = vpow2.f32 %v760_v19  ;;  %707 = vadd.xlane.f32.xlu0 %v706_v20 }
 0x235   : > { %v711_v21 = vpop.permute.xlu2 %710 }
 0x236   : > { %v716_v22 = vsel %vm593_vm3, %v711_v21, 0 }
 0x237   : > { %v606_v23 = vpop.f32.mrf.mxu0  ;;  %725 = vmatpush.bf16.msra.mxu0 %v716_v22 }
 0x238   : > { %v1303_v24 = vpop.eup %1302 }
 0x239   : > { %v765_v26 = vpack.c.bf16 %v1303_v24, %v1303_v24  ;;  %v762_v27 = vsel %vm560_vm2, %v1303_v24, 0.0  ;;  %v866_v24 = vperm.slane %v1499_v9, 5 }
 0x23a   : > { %763 = vadd.xlane.f32.xlu0 %v762_v27  ;;  %1187 = vmatmul.msk.bf16.vlgmr.msra.gmra.mxu0 %vm560_vm2, %v709_v25 }
 0x23b   : > { %1189 = vmatmul.msk.bf16.vlgmr.msra.gmra.mxu2 %vm560_vm2, %v765_v26  ;;  %900 = vmatpush.bf16.msrb.mxu0 %v1240_v11  ;;  %v868_v26 = vperm.slane %v1499_v9, 6 }
 0x23f   : > { %v608_v28 = vpop.f32.mrf.mxu0  ;;  %901 = vmatpush.bf16.msrb.mxu0 %v1239_v12 }
 0x29d   : > { %v649_v29 = vpop.xlane.xlu0 %648 }
 0x29e   : > { %1304 = vrcp.f32 %v649_v29 }
 0x2a4   : > { %v1305_v31 = vpop.eup %1304 }
 0x2a5   : > { %v708_v30 = vpop.xlane.xlu0 %707 }
 0x2a6   : > { %1306 = vrcp.f32 %v708_v30 }
 0x2ac   : > { %v1307_v36 = vpop.eup %1306 }
 0x2ad   : > { %v764_v34 = vpop.xlane.xlu0 %763 }
 0x2ae   : > { %v671_v32 = vpop.f32.mrf.mxu2  ;;  %1308 = vrcp.f32 %v764_v34 }
 0x2af   : > { %v676_v33 = vmul.f32 %v1305_v31, %v671_v32  ;;  %1310 = vrcp.f32 %v588_v46  ;;  %v1242_v31 = vld [vmem:[%s1475_s18 + $0x8] sm:$0xff]  ;;  %v1241_v32 = vld [vmem:[%s1475_s18] sm:$0xff] }
 0x2b0   : > { %1312 = vrcp.f32 %v1364_v62  ;;  %952 = vmatpush.bf16.msrb.mxu1 %v1242_v31 }
 0x2b1   : > { %790 = vrot.lane.b32.xlu2 %v676_v33, %s1361_s28  ;;  %v1294_v33 = vld [vmem:[%s431_s23] ss:$0 sm:$0xff] }
 0x2b4   : > { %v1309_v39 = vpop.eup %1308  ;;  %953 = vmatpush.bf16.msrb.mxu1 %v1241_v32 }
 0x2b5   : > { %v1311_v48 = vpop.eup %1310 }
 0x2b6   : > { %v673_v35 = vpop.f32.mrf.mxu2  ;;  %v611_v49 = vmul.f32 %v1311_v48, %v606_v23  ;;  %v1313_v63 = vpop.eup %1312 }
 0x2b7   : > { %v727_v37 = vpop.f32.mrf.mxu0  ;;  %v841_v0 = vmul.f32 32.0, %v1313_v63  ;;  %vm845_vm6 = vweird.f32 %v1313_v63 }
 0x2b8   : > { %v732_v38 = vmul.f32 %v1307_v36, %v727_v37 }
 0x2b9   : > { %v842_v1 = vsub.f32 1.0, %v841_v0 }
 0x2ba   : > { %794 = vrot.lane.b32.xlu0 %v732_v38, %s1362_s19 }
 0x2bb   : > { %v843_v2 = vmul.f32 %v1313_v63, %v842_v1 }
 0x2bd   : > { %v844_v3 = vadd.f32 %v1313_v63, %v843_v2 }
 0x2be   : > { %v783_v40 = vpop.f32.mrf.mxu2 }
 0x2bf   : > { %v788_v41 = vmul.f32 %v1309_v39, %v783_v40  ;;  %v729_v42 = vpop.f32.mrf.mxu0  ;;  %v846_v4 = vsel %vm845_vm6, %v1313_v63, %v844_v3  ;;  %v917_v39 = vperm.slane %v1499_v9, 4 }
 0x2c1   : > { %798 = vrot.lane.b32.xlu2 %v788_v41, %s1363_s21 }
 0x2c6   : > { %v785_v43 = vpop.f32.mrf.mxu2 }
 0x30b   : > { %v791_v47 = vpop.permute.xlu2 %790 }
 0x30c   : > { %v801_v50 = vsel %vm560_vm2, %v611_v49, %v791_v47 }
 0x31b   : > { %v799_v52 = vpop.permute.xlu2 %798 }
 0x32c   : > { %v795_v51 = vpop.permute.xlu0 %794 }
 0x32d   : > { %v803_v53 = vsel %vm802_vm4, %v801_v50, %v795_v51 }
 0x32e   : > { %v805_v54 = vsel %vm804_vm5, %v803_v53, %v799_v52 }
 0x32f   : > { %v806_v55 = vpack.c.bf16 %v805_v54, %v805_v54 }
 0x331   : > { %1198 = vmatmul.msk.bf16.vlgmr.msra.gmra.mxu3 %vm475_vm1, %v806_v55 }
 0x3b4   : > { %v832_v57 = vpop.f32.mrf.mxu3 }
 0x3b5   : > { %v833_v58 = vadd.f32 %v832_v57, %v807_v56 }
 0x3b7   : > { %v836_v59 = vadd.f32 %v833_v58, %v1492_v5 }
 0x3b9   : > { %v837_v60 = vsel %vm475_vm1, %v836_v59, 0.0 }
 0x3ba   : > { %838 = vadd.xlane.f32.xlu2 %v837_v60 }
 0x3bc   : > { %v834_v61 = vpop.f32.mrf.mxu3 }
 0x3bd   : > { %v1295_v61 = vld [vmem:[%s1484_s11 + $0x8] ss:$0 sm:$0xff] }
 0x42d   : > { %v839_v6 = vpop.xlane.xlu2 %838 }
 0x42e   : > { %v847_v7 = vmul.f32 %v846_v4, %v839_v6 }
 0x430   : > { %v848_v5 = vsub.f32 %v836_v59, %v847_v7  ;;  %v982_v59 = vperm.slane %v1499_v9, 7 }
 0x432   : > { %v849_v8 = vmul.f32 %v848_v5, %v848_v5 }
 0x434   : > { %v850_v10 = vsel %vm475_vm1, %v849_v8, 0.0 }
 0x435   : > { %851 = vadd.xlane.f32.xlu0 %v850_v10 }
 0x4a8   : > { %v852_v14 = vpop.xlane.xlu0 %851 }
 0x4a9   : > { %v853_v15 = vmul.f32 %v852_v14, %v846_v4 }
 0x4ab   : > { %v854_v17 = vadd.f32 1e-05, %v853_v15 }
 0x4ad   : > { %1314 = vrsqrt.f32 %v854_v17  ;;  %vm861_vm8 = vweird.f32 %v854_v17 }
 0x4b3   : > { %v1315_v18 = vpop.eup %1314 }
 0x4b4   : > { %v856_v19 = vmul.f32 %v1315_v18, %v854_v17  ;;  %vm862_vm7 = vweird.f32 %v1315_v18 }
 0x4b5   : > { %vm863_vm9 = vmor %vm861_vm8, %vm862_vm7 }
 0x4b6   : > { %v857_v20 = vmul.f32 %v1315_v18, %v856_v19 }
 0x4b8   : > { %v858_v21 = vmul.f32 0.5, %v857_v20 }
 0x4ba   : > { %v859_v22 = vsub.f32 1.5, %v858_v21 }
 0x4bc   : > { %v860_v23 = vmul.f32 %v1315_v18, %v859_v22 }
 0x4be   : > { %v864_v25 = vsel %vm863_vm9, %v1315_v18, %v860_v23 }
 0x4bf   : > { %v865_v27 = vmul.f32 %v864_v25, %v848_v5 }
 0x4c1   : > { %v867_v28 = vmul.f32 %v866_v24, %v865_v27 }
 0x4c3   : > { %v869_v29 = vadd.f32 %v868_v26, %v867_v28 }
 0x4c5   : > { %v870_v30 = vpack.c.bf16 %v869_v29, %v869_v29 }
 0x4c7   : > { %1207 = vmatmul.msk.bf16.vlgmr.msrb.gmra.mxu0 %vm475_vm1, %v870_v30 }
 0x544   : > { %v903_v34 = vpop.f32.mrf.mxu0 }
 0x545   : > { %v904_v35 = vadd.f32 %v1294_v33, %v903_v34 }
 0x547   : > { %v907_v36 = vmax.f32 %v904_v35, 0.0 }
 0x549   : > { %v908_v37 = vpack.c.bf16 %v907_v36, %v907_v36 }
 0x54b   : > { %1224 = vmatmul.msk.bf16.vlgmr.msrb.gmra.mxu1 %vm942_vm10, %v908_v37 }
 0x54c   : > { %v905_v38 = vpop.f32.mrf.mxu0 }
 0x5c8   : > { %v955_v40 = vpop.f32.mrf.mxu1 }
 0x5c9   : > { %v956_v41 = vadd.f32 %v955_v40, %v917_v39 }
 0x5cb   : > { %v959_v42 = vadd.f32 %v956_v41, %v869_v29 }
 0x5cd   : > { %v960_v43 = vsel %vm475_vm1, %v959_v42, 0.0 }
 0x5ce   : > { %961 = vadd.xlane.f32.xlu1 %v960_v43 }
 0x5d0   : > { %v957_v44 = vpop.f32.mrf.mxu1 }
 0x641   : > { %v962_v45 = vpop.xlane.xlu1 %961 }
 0x642   : > { %v963_v46 = vmul.f32 %v962_v45, %v846_v4 }
 0x644   : > { %v964_v47 = vsub.f32 %v959_v42, %v963_v46 }
 0x646   : > { %v965_v48 = vmul.f32 %v964_v47, %v964_v47 }
 0x648   : > { %v966_v49 = vsel %vm475_vm1, %v965_v48, 0.0 }
 0x649   : > { %967 = vadd.xlane.f32.xlu1 %v966_v49 }
 0x6bc   : > { %v968_v50 = vpop.xlane.xlu1 %967 }
 0x6bd   : > { %v969_v51 = vmul.f32 %v968_v50, %v846_v4 }
 0x6bf   : > { %v970_v52 = vadd.f32 1e-05, %v969_v51 }
 0x6c1   : > { %1316 = vrsqrt.f32 %v970_v52  ;;  %vm977_vm12 = vweird.f32 %v970_v52 }
 0x6c7   : > { %v1317_v53 = vpop.eup %1316 }
 0x6c8   : > { %v972_v54 = vmul.f32 %v1317_v53, %v970_v52  ;;  %vm978_vm11 = vweird.f32 %v1317_v53 }
 0x6c9   : > { %vm979_vm13 = vmor %vm977_vm12, %vm978_vm11 }
 0x6ca   : > { %v973_v55 = vmul.f32 %v1317_v53, %v972_v54 }
 0x6cc   : > { %v974_v56 = vmul.f32 0.5, %v973_v55 }
 0x6ce   : > { %v975_v57 = vsub.f32 1.5, %v974_v56 }
 0x6d0   : > { %v976_v58 = vmul.f32 %v1317_v53, %v975_v57 }
 0x6d2   : > { %v980_v60 = vsel %vm979_vm13, %v1317_v53, %v976_v58 }
 0x6d3   : > { %v981_v62 = vmul.f32 %v980_v60, %v964_v47 }
 0x6d5   : > { %v983_v63 = vmul.f32 %v982_v59, %v981_v62 }
 0x6d7   : > { %v985_v0 = vadd.f32 %v1295_v61, %v983_v63 }
 0x6d9   : > { %986 = vst.msk [vmem:[#allocation2] sm:$0xff] %vm475_vm1, %v985_v0 }
 0x6da   : > { %987 = vst.msk [vmem:[%s1489_s29] sm:$0xff] %vm475_vm1, %v985_v0 }
 0x6db PF: > { %s18_s9 = sadd.s32 1, %s1356_s9   ;;  %s1608_s27 = sld [smem:[#allocation3_spill]] }
 0x6dc   : > { %p15_p8 = scmp.ge.s32.totalorder %s18_s9, 6   ;;  %s1609_s28 = sld [smem:[#allocation4_spill]] }
 0x6dd   : > { %s1610_s29 = sld [smem:[#allocation5_spill]] }
 0x6de   : > { %s1611_s30 = sld [smem:[#allocation6_spill]]  ;;  %17 = sbr.rel (!%p15_p8) target bundleno = 4 (0x4), region = 109 }

// kernel: transformer_forward.4
= control target key start
LH: loop header
LB: loop body
LE: loop exit
PB: predicated region body
PF: predicated region fallthrough
CT: control target
= control target key end

     0   :  { %s2182_s25 = smov 0   ;;  %s2184_s26 = smov 0   ;;  %s2477_s0 = inlined_call_operand.vmem [shape: f32[2,8,32], index: 0, kind: input, shape index: {}]   ;;  %s2478_s1 = inlined_call_operand.vmem [shape: f32[2,8,32], index: 1, kind: input, shape index: {}]   ;;  %s2479_s2 = inlined_call_operand.vmem [shape: f32[2,1,8], index: 2, kind: input, shape index: {}]   ;;  %s2480_s3 = inlined_call_operand.vmem [shape: f32[2,1,8], index: 3, kind: input, shape index: {}]   ;;  %s2481_s4 = inlined_call_operand.vmem [shape: f32[1,8,8], index: 4, kind: input, shape index: {}]   ;;  %s2482_s5 = inlined_call_operand.vmem [shape: bf16[2,3,32,32], index: 5, kind: input, shape index: {}]   ;;  %s2483_s6 = inlined_call_operand.vmem [shape: bf16[2,32,32], index: 6, kind: input, shape index: {}]   ;;  %s2484_s7 = inlined_call_operand.vmem [shape: bf16[2,3,32,32], index: 7, kind: input, shape index: {}]   ;;  %s2485_s8 = inlined_call_operand.vmem [shape: bf16[2,32,32], index: 8, kind: input, shape index: {}]   ;;  %s2486_s9 = inlined_call_operand.vmem [shape: bf16[2,32,64], index: 9, kind: input, shape index: {}]   ;;  %s2487_s10 = inlined_call_operand.vmem [shape: bf16[2,64,32], index: 10, kind: input, shape index: {}]   ;;  %s2488_s11 = inlined_call_operand.vmem [shape: f32[2,1,64], index: 11, kind: input, shape index: {}]   ;;  %s2489_s12 = inlined_call_operand.vmem [shape: f32[2,15,32], index: 12, kind: input, shape index: {}]   ;;  %s2490_s13 = inlined_call_operand.vmem [shape: f32[2,8,32], index: 13, kind: output, shape index: {}]  }
   0x1   :  { %2495 = sst [smem:[#allocation9_spill]] %s2477_s0  ;;  %s2186_s27 = smov 0  }
   0x2   :  { %2496 = sst [smem:[#allocation10_spill]] %s2479_s2  ;;  %s2188_s28 = smov 0  }
   0x3   :  { %2497 = sst [smem:[#allocation11_spill]] %s2481_s4  ;;  %s2190_s29 = smov 0  }
   0x4   :  { %2498 = sst [smem:[#allocation12_spill]] %s2482_s5 }
   0x5   :  { %2499 = sst [smem:[#allocation13_spill]] %s2483_s6 }
   0x6   :  { %2500 = sst [smem:[#allocation14_spill]] %s2484_s7 }
   0x7   :  { %2501 = sst [smem:[#allocation15_spill]] %s2485_s8 }
   0x8   :  { %2502 = sst [smem:[#allocation16_spill]] %s2490_s13 }
   0x9 LB: > { %2503 = sst [smem:[#allocation3_spill]] %s2087_s25  ;;  %s32_s30 = sadd.s32 1, %s2095_s27  ;;  %s2103_s29 = sphi %s2190_s29, %s23_s29   ;;  %s2099_s28 = sphi %s2188_s28, %s2527_s28   ;;  %s2095_s27 = sphi %s2186_s27, %s2526_s27   ;;  %s2091_s26 = sphi %s2184_s26, %s2525_s26   ;;  %s2087_s25 = sphi %s2182_s25, %s2524_s25  }
   0xa   : > { %2504 = sst [smem:[#allocation4_spill]] %s2095_s27  ;;  %s35_s14 = sadd.s32 1, %s2099_s28 }
   0xb   : > { %2505 = sst [smem:[#allocation5_spill]] %s2099_s28  ;;  %p33_p0 = scmp.ge.s32.totalorder %s32_s30, 2 }
   0xc   : > { %2506 = sst [smem:[#allocation6_spill]] %s2103_s29  ;;  %p1798_p1 = scmp.ge.s32.totalorder %s2103_s29, 1 }
   0xd   : > { %p501_p2 = scmp.lt.s32.totalorder %s2103_s29, 5  ;;  %s2529_s30 = smov (%p33_p0, %s32_s30), 0 }
   0xe   : > { %2507 = sst [smem:[#allocation7_spill]] %s2529_s30  ;;  %s2531_s14 = smov (!%p33_p0, %s35_s14), %s2099_s28 }
   0xf   : > { %p502_p3 = pnand %p1798_p1, %p501_p2  ;;  %p37_p4 = scmp.ge.s32.totalorder %s2531_s14, 2 }
  0x10   : > { %p591_p5 = scmp.lt.s32.totalorder (!%p502_p3), %s2091_s26, 1  ;;  %p605_p6 = scmp.lt.s32.totalorder (!%p502_p3), %s2087_s25, 1 }
  0x11   : > { %s2533_s14 = smov (%p37_p4, %s2531_s14), 0  ;;  %505 = sbr.rel (%p502_p3) target bundleno = 2937 (0xb79), region = 72 }
  0x12   : > { %2508 = sst [smem:[#allocation8_spill]] %s2533_s14 }
  0x13   : > { %s2510_s0 = sld [smem:[#allocation9_spill]] (!%p502_p3) }
  0x14   : > { %s2511_s5 = sld [smem:[#allocation12_spill]] (!%p502_p3) }
  0x15   : > { %s2512_s6 = sld [smem:[#allocation13_spill]] (!%p502_p3) }
  0x16   : > { %s2535_s26 = smov (!%p591_p5, %s2091_s26), 1  ;;  %s2513_s7 = sld [smem:[#allocation14_spill]] }
  0x17   : > { %s2218_s15 = scalar_select %p605_p6, %s2087_s25, 1 }
  0x18   : > { %s2221_s16 = sshll.u32 %s2535_s26, 3  ;;  %s2514_s8 = sld [smem:[#allocation15_spill]] }
  0x19   : > { %s594_s22 = scalar_lea.vmem %s2510_s0, %s2221_s16  ;;  %s1974_s29 = smul.u32 48, %s2218_s15 }
  0x1a   : > { %s1947_s4 = sshll.u32 %s2218_s15, 4  ;;  %s1950_s25 = sshll.u32 %s2218_s15, 5 }
  0x1b   : > { %s609_s13 = scalar_lea.vmem %s2511_s5, %s1974_s29  ;;  %s2248_s20 = scalar_lea.vmem %s2512_s6, %s1947_s4 }
  0x1c   : > { %s2253_s23 = scalar_lea.vmem %s2513_s7, %s1974_s29  ;;  %s2263_s17 = scalar_lea.vmem %s2486_s9, %s1947_s4 }
  0x1d   : > { %s2268_s2 = scalar_lea.vmem %s2487_s10, %s1950_s25  ;;  %s637_s0 = scalar_lea.vmem %s2488_s11, %s2218_s15 }
  0x1e   : > { %s2258_s30 = scalar_lea.vmem %s2514_s8, %s1947_s4  ;;  %s2277_s24 = scalar_lea.vmem %s2489_s12, %s1947_s4 }
  0x1f   : > { %s2515_s8 = sld [smem:[#allocation16_spill]] }
  0x20   : > { %s2516_s14 = sld [smem:[#allocation3_spill]] }
  0x25   : > { %s646_s27 = scalar_lea.vmem %s2515_s8, %s2221_s16 }
  0x26   : > { %p1814_p7 = scmp.ne.s32.totalorder %s2516_s14, 0 }
  0x28   : > { %651 = sbr.rel (%p1814_p7) target bundleno = 47 (0x2f), region = 76 }
  0x2d   : > { %v652_v0 = vld [vmem:[%s594_s22] sm:$0xff]  ;;  %vm653_vm0 = vcmask 261120  }
  0x2e   : > { %654 = vst.msk [vmem:[#allocation2] sm:$0xff] %vm653_vm0, %v652_v0 }
  0x2f PF: > { %v1955_v1 = vld [vmem:[%s609_s13 + $0x8] sm:$0xff]  ;;  %v1957_v2 = vld [vmem:[%s609_s13 + $0x18] sm:$0xff]  ;;  %v1954_v3 = vld [vmem:[%s609_s13] sm:$0xff]  ;;  %vm687_vm1 = vcmask 261120   ;;  %vm769_vm2 = vcmask 64512   ;;  %s2105_s4 = smov 112   ;;  %s2520_s7 = scalar_lea.vmem %s2478_s1, %s2221_s16 }
  0x30   : > { %v1956_v4 = vld [vmem:[%s609_s13 + $0x10] sm:$0xff]  ;;  %697 = vmatpush.bf16.msra.mxu0 %v1955_v1  ;;  %728 = vmatpush.bf16.msra.mxu1 %v1957_v2  ;;  %v1959_v7 = vld [vmem:[%s609_s13 + $0x28] sm:$0xff]  ;;  %v1958_v8 = vld [vmem:[%s609_s13 + $0x20] sm:$0xff]  ;;  %s2106_s5 = smov 120   ;;  %s2107_s6 = smov 104   ;;  %vm802_vm3 = vcmask 1043456  }
  0x31   : > { %759 = vmatpush.bf16.msra.mxu2 %v1959_v7  ;;  %v2291_v9 = vld [vmem:[%s2277_s24] sm:$0xff]  ;;  %s2517_s13 = sld [smem:[#allocation10_spill]]  ;;  %s2108_s29 = smov 8   ;;  %vm1011_vm4 = vcmask 130048   ;;  %vm1013_vm5 = vcmask 195584   ;;  %vm1561_vm13 = vcmask 523264  }
  0x32   : > { %v674_v10 = vperm.slane %v2291_v9, 0  ;;  %v709_v11 = vperm.slane %v2291_v9, 1  ;;  %v740_v27 = vperm.slane %v2291_v9, 2  ;;  %s2519_s19 = sld [smem:[#allocation11_spill]]  ;;  %s2109_s21 = smov 16  }
  0x33   : > { %s2110_s28 = smov 24   ;;  %s2521_s8 = scalar_lea.vmem %s2480_s3, %s2535_s26 }
  0x34   : > { %698 = vmatpush.bf16.msra.mxu0 %v1954_v3  ;;  %729 = vmatpush.bf16.msra.mxu1 %v1956_v4 }
  0x35   : > { %v2284_v5 = vld [vmem:[#allocation2] sm:$0xff]  ;;  %760 = vmatpush.bf16.msra.mxu2 %v1958_v8 }
  0x36   : > { %v669_v6 = vpack.c.bf16 %v2284_v5, %v2284_v5 }
  0x37   : > { %s2518_s25 = scalar_lea.vmem %s2517_s13, %s2535_s26 }
  0x38   : > { %1823 = vmatmul.msk.bf16.vlgmr.msra.gmra.mxu0 %vm687_vm1, %v669_v6  ;;  %1836 = vmatmul.msk.bf16.vlgmr.msra.gmra.mxu1 %vm687_vm1, %v669_v6  ;;  %v2022_v41 = vld [vmem:[%s2518_s25] ss:$0 sm:$0xff] }
  0x39   : > { %1849 = vmatmul.msk.bf16.vlgmr.msra.gmra.mxu2 %vm687_vm1, %v669_v6  ;;  %v660_v42 = vld [vmem:[%s2519_s19] sm:$0xff] }
  0x3a   : > { %v664_v43 = vadd.f32 %v2022_v41, %v660_v42 }
  0xb5   : > { %v700_v12 = vpop.f32.mrf.mxu0  ;;  %v731_v13 = vpop.f32.mrf.mxu1 }
  0xb6   : > { %v701_v14 = vadd.f32 %v700_v12, %v674_v10  ;;  %v732_v15 = vadd.f32 %v731_v13, %v709_v11 }
  0xb8   : > { %v766_v16 = vpack.c.bf16 %v701_v14, %v701_v14  ;;  %v767_v17 = vpack.c.bf16 %v732_v15, %v732_v15 }
  0xba   : > { %v822_v18 = vunpack.c.l.b16 %v766_v16  ;;  %v827_v19 = vunpack.c.l.b16 %v767_v17  ;;  %v774_v20 = vsel %vm769_vm2, %v767_v17, 0 }
  0xbb   : > { %783 = vmatpush.bf16.xpose.msra.mxu3 %v774_v20 }
  0xbc   : > { %v823_v21 = vpack.c.b16 %v822_v18, %v822_v18  ;;  %v828_v22 = vpack.c.b16 %v827_v19, %v827_v19  ;;  %v762_v30 = vpop.f32.mrf.mxu2 }
  0xbd   : > { %v702_v23 = vpop.f32.mrf.mxu0  ;;  %v733_v24 = vpop.f32.mrf.mxu1  ;;  %v763_v31 = vadd.f32 %v762_v30, %v740_v27 }
  0xbe   : > { %888 = vrot.lane.b32.xlu1 %v828_v22, %s2105_s4  ;;  %829 = vrot.lane.b32.xlu0 %v828_v22, %s2106_s5 }
  0xbf   : > { %886 = vrot.lane.b32.xlu2 %v823_v21, %s2105_s4  ;;  %v768_v32 = vpack.c.bf16 %v763_v31, %v763_v31 }
  0xc1   : > { %v861_v36 = vunpack.c.l.b16 %v768_v32  ;;  %v804_v37 = vsel %vm802_vm3, %v768_v32, 0 }
  0xc2   : > { %1850 = vmatmul.msk.bf16.vlgmr.msra.gmra.mxu3 %vm769_vm2, %v766_v16  ;;  %813 = vmatpush.bf16.msrb.mxu0 %v804_v37 }
  0xc3   : > { %v862_v39 = vpack.c.b16 %v861_v36, %v861_v36 }
  0xc4   : > { %v764_v40 = vpop.f32.mrf.mxu2 }
  0xc6   : > { %944 = vrot.lane.b32.xlu1 %v828_v22, %s2107_s6  ;;  %824 = vrot.lane.b32.xlu0 %v823_v21, %s2106_s5 }
  0xc7   : > { %942 = vrot.lane.b32.xlu2 %v823_v21, %s2107_s6 }
  0xcf   : > { %863 = vrot.lane.b32.xlu2 %v862_v39, %s2106_s5 }
 0x119   : > { %v887_v33 = vpop.permute.xlu2 %886 }
 0x121   : > { %v943_v46 = vpop.permute.xlu2 %942 }
 0x129   : > { %v864_v59 = vpop.permute.xlu2 %863 }
 0x12a   : > { %v869_v60 = vsel %vm802_vm3, %v864_v59, 0 }
 0x12b   : > { %878 = vmatpush.bf16.msrb.mxu2 %v869_v60 }
 0x130   : > { %v889_v25 = vpop.permute.xlu1 %888  ;;  %v830_v26 = vpop.permute.xlu0 %829 }
 0x131   : > { %v835_v28 = vsel %vm769_vm2, %v830_v26, 0  ;;  %v894_v29 = vsel %vm769_vm2, %v889_v25, 0 }
 0x132   : > { %844 = vmatpush.bf16.xpose.msrb.mxu1 %v835_v28  ;;  %903 = vmatpush.bf16.xpose.msrb.mxu3 %v894_v29 }
 0x138   : > { %v945_v34 = vpop.permute.xlu1 %944  ;;  %v825_v35 = vpop.permute.xlu0 %824 }
 0x139   : > { %v950_v38 = vsel %vm769_vm2, %v945_v34, 0  ;;  %1852 = vmatmul.msk.bf16.vlgmr.msrb.gmra.mxu1 %vm769_vm2, %v825_v35  ;;  %1854 = vmatmul.msk.bf16.vlgmr.msrb.gmra.mxu3 %vm769_vm2, %v887_v33 }
 0x13a   : > { %959 = vmatpush.bf16.xpose.msra.mxu1 %v950_v38 }
 0x145   : > { %v785_v44 = vpop.f32.mrf.mxu3 }
 0x146   : > { %v786_v45 = vadd.f32 %v785_v44, %v664_v43 }
 0x148   : > { %v789_v47 = vsel %vm769_vm2, %v786_v45, -inf }
 0x149   : > { %1856 = vmatmul.msk.bf16.vlgmr.msra.gmra.mxu1 %vm769_vm2, %v943_v46  ;;  %790 = vmax.xlane.f32.xlu1 %v789_v47  ;;  %v1953_v46 = vld [vmem:[%s2248_s20 + $0x8] sm:$0xff]  ;;  %v1952_v47 = vld [vmem:[%s2248_s20] sm:$0xff] }
 0x14a   : > { %1038 = vmatpush.bf16.msra.mxu3 %v1953_v46 }
 0x14d   : > { %v787_v48 = vpop.f32.mrf.mxu3 }
 0x14e   : > { %1039 = vmatpush.bf16.msra.mxu3 %v1952_v47  ;;  %v1966_v47 = vld [vmem:[%s2253_s23 + $0x20] sm:$0xff] }
 0x162   : > { %975 = vrot.lane.b32.xlu1 %v862_v39, %s2107_s6 }
 0x1b6   : > { %v846_v49 = vpop.f32.mrf.mxu1 }
 0x1b7   : > { %v847_v50 = vadd.f32 %v846_v49, %v664_v43 }
 0x1b9   : > { %v850_v51 = vsel %vm769_vm2, %v847_v50, -inf }
 0x1ba   : > { %851 = vmax.xlane.f32.xlu0 %v850_v51 }
 0x1bc   : > { %v905_v52 = vpop.f32.mrf.mxu3  ;;  %v791_v53 = vpop.xlane.xlu1 %790 }
 0x1bd   : > { %v906_v54 = vadd.f32 %v905_v52, %v664_v43  ;;  %v792_v55 = vsub.f32 %v786_v45, %v791_v53 }
 0x1be   : > { %v848_v56 = vpop.f32.mrf.mxu1 }
 0x1bf   : > { %v793_v57 = vmul.f32 1.442695, %v792_v55  ;;  %v909_v58 = vsel %vm769_vm2, %v906_v54, -inf }
 0x1c1   : > { %2025 = vpow2.f32 %v793_v57 }
 0x1c2   : > { %910 = vmax.xlane.f32.xlu0 %v909_v58  ;;  %v1016_v58 = vperm.slane %v2291_v9, 3 }
 0x1c4   : > { %v907_v61 = vpop.f32.mrf.mxu3 }
 0x1c6   : > { %v961_v62 = vpop.f32.mrf.mxu1 }
 0x1c7   : > { %v2026_v63 = vpop.eup %2025  ;;  %v962_v0 = vadd.f32 %v961_v62, %v664_v43 }
 0x1c8   : > { %v795_v1 = vsel %vm769_vm2, %v2026_v63, 0.0  ;;  %v798_v2 = vpack.c.bf16 %v2026_v63, %v2026_v63 }
 0x1c9   : > { %796 = vadd.xlane.f32.xlu1 %v795_v1  ;;  %v965_v3 = vsel %vm769_vm2, %v962_v0, -inf  ;;  %v1965_v1 = vld [vmem:[%s2253_s23 + $0x18] sm:$0xff] }
 0x1ca   : > { %966 = vmax.xlane.f32.xlu2 %v965_v3  ;;  %1851 = vmatmul.msk.bf16.vlgmr.msrb.gmra.mxu0 %vm769_vm2, %v798_v2  ;;  %v1964_v2 = vld [vmem:[%s2253_s23 + $0x10] sm:$0xff]  ;;  %v656_v3 = vld [vmem:[%s2520_s7] sm:$0xff] }
 0x1cb   : > { %1146 = vmatpush.bf16.msrb.mxu1 %v1965_v1 }
 0x1ce   : > { %v963_v4 = vpop.f32.mrf.mxu1 }
 0x1cf   : > { %1147 = vmatpush.bf16.msrb.mxu1 %v1964_v2 }
 0x1d4   : > { %v976_v6 = vpop.permute.xlu1 %975 }
 0x1d5   : > { %v981_v7 = vsel %vm802_vm3, %v976_v6, 0  ;;  %v1085_v6 = vpack.c.bf16 %v656_v3, %v656_v3 }
 0x1d6   : > { %990 = vmatpush.bf16.msra.mxu2 %v981_v7 }
 0x1d7   : > { %1888 = vmatmul.msk.bf16.vlgmr.msrb.gmra.mxu1 %vm687_vm1, %v1085_v6 }
 0x1e2   : > { %919 = vrot.lane.b32.xlu2 %v862_v39, %s2105_s4 }
 0x22d   : > { %v852_v8 = vpop.xlane.xlu0 %851 }
 0x22e   : > { %v853_v10 = vsub.f32 %v847_v50, %v852_v8 }
 0x230   : > { %v854_v11 = vmul.f32 1.442695, %v853_v10 }
 0x232   : > { %2027 = vpow2.f32 %v854_v11 }
 0x235   : > { %v911_v12 = vpop.xlane.xlu0 %910 }
 0x236   : > { %v912_v13 = vsub.f32 %v906_v54, %v911_v12 }
 0x238   : > { %v2028_v14 = vpop.eup %2027  ;;  %v913_v15 = vmul.f32 1.442695, %v912_v13 }
 0x239   : > { %v856_v16 = vsel %vm769_vm2, %v2028_v14, 0.0  ;;  %v859_v17 = vpack.c.bf16 %v2028_v14, %v2028_v14 }
 0x23a   : > { %2029 = vpow2.f32 %v913_v15  ;;  %857 = vadd.xlane.f32.xlu0 %v856_v16 }
 0x23b   : > { %1853 = vmatmul.msk.bf16.vlgmr.msrb.gmra.mxu2 %vm769_vm2, %v859_v17  ;;  %v1963_v17 = vld [vmem:[%s2253_s23 + $0x8] sm:$0xff] }
 0x23c   : > { %v797_v48 = vpop.xlane.xlu1 %796 }
 0x23d   : > { %v967_v18 = vpop.xlane.xlu2 %966 }
 0x23e   : > { %v968_v19 = vsub.f32 %v962_v0, %v967_v18  ;;  %v2111_v0 = vmov 32.0   ;;  %v1962_v18 = vld [vmem:[%s2253_s23] sm:$0xff] }
 0x240   : > { %v2030_v20 = vpop.eup %2029  ;;  %v969_v21 = vmul.f32 1.442695, %v968_v19  ;;  %v1124_v19 = vperm.slane %v2291_v9, 5 }
 0x241   : > { %v915_v22 = vsel %vm769_vm2, %v2030_v20, 0.0  ;;  %v918_v27 = vpack.c.bf16 %v2030_v20, %v2030_v20 }
 0x242   : > { %2031 = vpow2.f32 %v969_v21  ;;  %916 = vadd.xlane.f32.xlu0 %v915_v22 }
 0x245   : > { %v920_v23 = vpop.permute.xlu2 %919 }
 0x246   : > { %v925_v24 = vsel %vm802_vm3, %v920_v23, 0 }
 0x247   : > { %v815_v25 = vpop.f32.mrf.mxu0  ;;  %934 = vmatpush.bf16.msra.mxu0 %v925_v24 }
 0x248   : > { %v2032_v26 = vpop.eup %2031 }
 0x249   : > { %v974_v28 = vpack.c.bf16 %v2032_v26, %v2032_v26  ;;  %v971_v29 = vsel %vm769_vm2, %v2032_v26, 0.0 }
 0x24a   : > { %972 = vadd.xlane.f32.xlu0 %v971_v29  ;;  %1855 = vmatmul.msk.bf16.vlgmr.msra.gmra.mxu0 %vm769_vm2, %v918_v27 }
 0x24b   : > { %1857 = vmatmul.msk.bf16.vlgmr.msra.gmra.mxu2 %vm769_vm2, %v974_v28  ;;  %1112 = vmatpush.bf16.msrb.mxu0 %v1963_v17 }
 0x24f   : > { %v817_v30 = vpop.f32.mrf.mxu0  ;;  %1113 = vmatpush.bf16.msrb.mxu0 %v1962_v18 }
 0x254   : > { %v1149_v20 = vpop.f32.mrf.mxu1 }
 0x255   : > { %v1150_v23 = vadd.f32 %v1149_v20, %v1124_v19 }
 0x25c   : > { %v1151_v29 = vpop.f32.mrf.mxu1 }
 0x2ad   : > { %v858_v31 = vpop.xlane.xlu0 %857 }
 0x2ae   : > { %2033 = vrcp.f32 %v858_v31 }
 0x2b4   : > { %v2034_v33 = vpop.eup %2033 }
 0x2b5   : > { %v917_v32 = vpop.xlane.xlu0 %916 }
 0x2b6   : > { %2035 = vrcp.f32 %v917_v32 }
 0x2bc   : > { %v2036_v38 = vpop.eup %2035 }
 0x2bd   : > { %v973_v36 = vpop.xlane.xlu0 %972 }
 0x2be   : > { %v880_v34 = vpop.f32.mrf.mxu2  ;;  %2037 = vrcp.f32 %v973_v36 }
 0x2bf   : > { %v885_v35 = vmul.f32 %v2034_v33, %v880_v34  ;;  %2039 = vrcp.f32 %v797_v48  ;;  %v2371_v34 = vld [vmem:[%s2277_s24 + $0x8] sm:$0x7f]  ;;  %v1090_v48 = vperm.slane %v2291_v9, 4 }
 0x2c0   : > { %2041 = vrcp.f32 %v2111_v0 }
 0x2c1   : > { %999 = vrot.lane.b32.xlu2 %v885_v35, %s2108_s29 }
 0x2c4   : > { %v2038_v41 = vpop.eup %2037 }
 0x2c5   : > { %v2040_v50 = vpop.eup %2039 }
 0x2c6   : > { %v882_v37 = vpop.f32.mrf.mxu2  ;;  %v820_v51 = vmul.f32 %v2040_v50, %v815_v25  ;;  %v2042_v4 = vpop.eup %2041  ;;  %v1185_v25 = vpack.c.bf16 %v1150_v23, %v1150_v23 }
 0x2c7   : > { %v936_v39 = vpop.f32.mrf.mxu0  ;;  %v1050_v7 = vmul.f32 32.0, %v2042_v4  ;;  %vm1054_vm6 = vweird.f32 %v2042_v4  ;;  %v1075_v37 = vperm.slane %v2371_v34, 1 }
 0x2c8   : > { %v941_v40 = vmul.f32 %v2036_v38, %v936_v39  ;;  %v1194_v26 = vsel %vm769_vm2, %v1185_v25, 0  ;;  %v1246_v27 = vunpack.c.l.b16 %v1185_v25  ;;  %v1077_v39 = vperm.slane %v2371_v34, 2 }
 0x2c9   : > { %1203 = vmatpush.bf16.xpose.msrb.mxu3 %v1194_v26 }
 0x2ca   : > { %1003 = vrot.lane.b32.xlu0 %v941_v40, %s2109_s21  ;;  %v1247_v28 = vpack.c.b16 %v1246_v27, %v1246_v27 }
 0x2cc   : > { %1248 = vrot.lane.b32.xlu1 %v1247_v28, %s2106_s5 }
 0x2ce   : > { %v992_v42 = vpop.f32.mrf.mxu2 }
 0x2cf   : > { %v997_v43 = vmul.f32 %v2038_v41, %v992_v42  ;;  %v938_v44 = vpop.f32.mrf.mxu0 }
 0x2d0   : > { %v1967_v44 = vld [vmem:[%s2253_s23 + $0x28] sm:$0xff] }
 0x2d1   : > { %1007 = vrot.lane.b32.xlu2 %v997_v43, %s2110_s28  ;;  %1177 = vmatpush.bf16.msrb.mxu2 %v1967_v44 }
 0x2d4   : > { %1307 = vrot.lane.b32.xlu1 %v1247_v28, %s2105_s4 }
 0x2d5   : > { %1178 = vmatpush.bf16.msrb.mxu2 %v1966_v47 }
 0x2d6   : > { %v994_v45 = vpop.f32.mrf.mxu2 }
 0x2d8   : > { %1901 = vmatmul.msk.bf16.vlgmr.msrb.gmra.mxu2 %vm687_vm1, %v1085_v6  ;;  %v2023_v6 = vld [vmem:[%s2521_s8] ss:$0 sm:$0xff] }
 0x31b   : > { %v1000_v49 = vpop.permute.xlu2 %999 }
 0x31c   : > { %v1010_v52 = vsel %vm769_vm2, %v820_v51, %v1000_v49 }
 0x32b   : > { %v1008_v54 = vpop.permute.xlu2 %1007 }
 0x33c   : > { %v1004_v53 = vpop.permute.xlu0 %1003 }
 0x33d   : > { %v1012_v55 = vsel %vm1011_vm4, %v1010_v52, %v1004_v53 }
 0x33e   : > { %v1014_v56 = vsel %vm1013_vm5, %v1012_v55, %v1008_v54  ;;  %v1249_v45 = vpop.permute.xlu1 %1248 }
 0x33f   : > { %v1015_v57 = vpack.c.bf16 %v1014_v56, %v1014_v56  ;;  %v1254_v46 = vsel %vm769_vm2, %v1249_v45, 0 }
 0x340   : > { %1263 = vmatpush.bf16.xpose.msra.mxu1 %v1254_v46 }
 0x341   : > { %1866 = vmatmul.msk.bf16.vlgmr.msra.gmra.mxu3 %vm687_vm1, %v1015_v57 }
 0x346   : > { %v1308_v56 = vpop.permute.xlu1 %1307 }
 0x3c4   : > { %v1041_v59 = vpop.f32.mrf.mxu3 }
 0x3c5   : > { %v1042_v60 = vadd.f32 %v1041_v59, %v1016_v58  ;;  %v1313_v58 = vsel %vm769_vm2, %v1308_v56, 0 }
 0x3c6   : > { %1322 = vmatpush.bf16.xpose.msra.mxu3 %v1313_v58 }
 0x3c7   : > { %v1045_v61 = vadd.f32 %v1042_v60, %v2284_v5  ;;  %v1051_v5 = vsub.f32 1.0, %v1050_v7  ;;  %v1158_v60 = vperm.slane %v2291_v9, 6 }
 0x3c9   : > { %v1046_v62 = vsel %vm687_vm1, %v1045_v61, 0.0  ;;  %v1052_v8 = vmul.f32 %v2042_v4, %v1051_v5 }
 0x3ca   : > { %1047 = vadd.xlane.f32.xlu2 %v1046_v62  ;;  %v1180_v62 = vpop.f32.mrf.mxu2 }
 0x3cb   : > { %v1053_v10 = vadd.f32 %v2042_v4, %v1052_v8 }
 0x3cc   : > { %v1043_v63 = vpop.f32.mrf.mxu3 }
 0x3cd   : > { %v2358_v11 = vsel %vm1054_vm6, %v2042_v4, %v1053_v10  ;;  %v1181_v63 = vadd.f32 %v1180_v62, %v1158_v60 }
 0x3cf   : > { %v1186_v0 = vpack.c.bf16 %v1181_v63, %v1181_v63 }
 0x3d1   : > { %v1223_v1 = vsel %vm802_vm3, %v1186_v0, 0  ;;  %v1280_v2 = vunpack.c.l.b16 %v1186_v0 }
 0x3d2   : > { %1232 = vmatpush.bf16.msra.mxu0 %v1223_v1  ;;  %v1182_v7 = vpop.f32.mrf.mxu2 }
 0x3d3   : > { %v1281_v4 = vpack.c.b16 %v1280_v2, %v1280_v2 }
 0x43d   : > { %v1048_v12 = vpop.xlane.xlu2 %1047 }
 0x43e   : > { %v1056_v13 = vmul.f32 %v2358_v11, %v1048_v12 }
 0x440   : > { %v1057_v14 = vsub.f32 %v1045_v61, %v1056_v13 }
 0x442   : > { %v1058_v15 = vmul.f32 %v1057_v14, %v1057_v14 }
 0x444   : > { %v1059_v16 = vsel %vm687_vm1, %v1058_v15, 0.0 }
 0x445   : > { %1060 = vadd.xlane.f32.xlu0 %v1059_v16 }
 0x459   : > { %1363 = vrot.lane.b32.xlu0 %v1247_v28, %s2107_s6 }
 0x4b8   : > { %v1061_v21 = vpop.xlane.xlu0 %1060 }
 0x4b9   : > { %v1062_v22 = vmul.f32 %v1061_v21, %v2358_v11 }
 0x4bb   : > { %v1063_v24 = vadd.f32 1e-05, %v1062_v22 }
 0x4bd   : > { %2043 = vrsqrt.f32 %v1063_v24  ;;  %vm1070_vm8 = vweird.f32 %v1063_v24 }
 0x4c3   : > { %v2044_v30 = vpop.eup %2043 }
 0x4c4   : > { %v1065_v31 = vmul.f32 %v2044_v30, %v1063_v24  ;;  %vm1071_vm7 = vweird.f32 %v2044_v30 }
 0x4c5   : > { %vm1072_vm9 = vmor %vm1070_vm8, %vm1071_vm7 }
 0x4c6   : > { %v1066_v32 = vmul.f32 %v2044_v30, %v1065_v31 }
 0x4c8   : > { %v1067_v33 = vmul.f32 0.5, %v1066_v32 }
 0x4ca   : > { %v1068_v35 = vsub.f32 1.5, %v1067_v33 }
 0x4cb   : > { %v1364_v55 = vpop.permute.xlu0 %1363 }
 0x4cc   : > { %v1069_v36 = vmul.f32 %v2044_v30, %v1068_v35  ;;  %v1369_v57 = vsel %vm769_vm2, %v1364_v55, 0 }
 0x4cd   : > { %1378 = vmatpush.bf16.xpose.msrb.mxu1 %v1369_v57 }
 0x4ce   : > { %v1073_v38 = vsel %vm1072_vm9, %v2044_v30, %v1069_v36 }
 0x4cf   : > { %v1074_v40 = vmul.f32 %v1073_v38, %v1057_v14 }
 0x4d1   : > { %v1076_v41 = vmul.f32 %v1075_v37, %v1074_v40 }
 0x4d3   : > { %v2375_v42 = vadd.f32 %v1077_v39, %v1076_v41 }
 0x4d5   : > { %v1084_v43 = vpack.c.bf16 %v2375_v42, %v2375_v42 }
 0x4d7   : > { %1875 = vmatmul.msk.bf16.vlgmr.msrb.gmra.mxu0 %vm687_vm1, %v1084_v43 }
 0x554   : > { %v1115_v49 = vpop.f32.mrf.mxu0 }
 0x555   : > { %v1116_v50 = vadd.f32 %v1115_v49, %v1090_v48 }
 0x557   : > { %v1184_v51 = vpack.c.bf16 %v1116_v50, %v1116_v50 }
 0x559   : > { %v1241_v52 = vunpack.c.l.b16 %v1184_v51  ;;  %1902 = vmatmul.msk.bf16.vlgmr.msrb.gmra.mxu3 %vm769_vm2, %v1184_v51 }
 0x55b   : > { %v1242_v53 = vpack.c.b16 %v1241_v52, %v1241_v52 }
 0x55c   : > { %v1117_v54 = vpop.f32.mrf.mxu0 }
 0x55d   : > { %1305 = vrot.lane.b32.xlu1 %v1242_v53, %s2105_s4  ;;  %1243 = vrot.lane.b32.xlu2 %v1242_v53, %s2106_s5 }
 0x565   : > { %1361 = vrot.lane.b32.xlu1 %v1242_v53, %s2107_s6 }
 0x56d   : > { %1282 = vrot.lane.b32.xlu1 %v1281_v4, %s2106_s5 }
 0x5b7   : > { %v1244_v59 = vpop.permute.xlu2 %1243 }
 0x5b8   : > { %1904 = vmatmul.msk.bf16.vlgmr.msra.gmra.mxu1 %vm769_vm2, %v1244_v59 }
 0x5cf   : > { %v1306_v61 = vpop.permute.xlu1 %1305 }
 0x5d0   : > { %1906 = vmatmul.msk.bf16.vlgmr.msra.gmra.mxu3 %vm769_vm2, %v1306_v61 }
 0x5d7   : > { %v1362_v3 = vpop.permute.xlu1 %1361 }
 0x5d8   : > { %1908 = vmatmul.msk.bf16.vlgmr.msrb.gmra.mxu1 %vm769_vm2, %v1362_v3 }
 0x5dc   : > { %v1205_v5 = vpop.f32.mrf.mxu3 }
 0x5dd   : > { %v1206_v8 = vadd.f32 %v2023_v6, %v1205_v5 }
 0x5df   : > { %v1209_v10 = vsel %vm769_vm2, %v1206_v8, -inf  ;;  %v1283_v30 = vpop.permute.xlu1 %1282 }
 0x5e0   : > { %1210 = vmax.xlane.f32.xlu0 %v1209_v10  ;;  %v1288_v31 = vsel %vm802_vm3, %v1283_v30, 0 }
 0x5e1   : > { %1297 = vmatpush.bf16.msra.mxu2 %v1288_v31 }
 0x5e4   : > { %v1207_v12 = vpop.f32.mrf.mxu3 }
 0x5e5   : > { %v1961_v12 = vld [vmem:[%s2258_s30 + $0x8] sm:$0xff] }
 0x5e6   : > { %1455 = vmatpush.bf16.msrb.mxu3 %v1961_v12 }
 0x5f4   : > { %1394 = vrot.lane.b32.xlu0 %v1281_v4, %s2107_s6 }
 0x635   : > { %v1265_v13 = vpop.f32.mrf.mxu1 }
 0x636   : > { %v1266_v14 = vadd.f32 %v2023_v6, %v1265_v13  ;;  %v1960_v13 = vld [vmem:[%s2258_s30] sm:$0xff] }
 0x637   : > { %1456 = vmatpush.bf16.msrb.mxu3 %v1960_v13 }
 0x638   : > { %v1269_v15 = vsel %vm769_vm2, %v1266_v14, -inf }
 0x639   : > { %1270 = vmax.xlane.f32.xlu2 %v1269_v15 }
 0x63d   : > { %v1267_v16 = vpop.f32.mrf.mxu1 }
 0x653   : > { %v1211_v17 = vpop.xlane.xlu0 %1210  ;;  %v1324_v18 = vpop.f32.mrf.mxu3 }
 0x654   : > { %v1212_v19 = vsub.f32 %v1206_v8, %v1211_v17  ;;  %v1325_v20 = vadd.f32 %v2023_v6, %v1324_v18 }
 0x655   : > { %v1380_v21 = vpop.f32.mrf.mxu1 }
 0x656   : > { %v1213_v22 = vmul.f32 1.442695, %v1212_v19  ;;  %v1381_v23 = vadd.f32 %v2023_v6, %v1380_v21  ;;  %v1328_v24 = vsel %vm769_vm2, %v1325_v20, -inf }
 0x657   : > { %1329 = vmax.xlane.f32.xlu2 %v1328_v24  ;;  %v1433_v24 = vperm.slane %v2291_v9, 7  ;;  %v1968_v9 = vld [vmem:[%s2263_s17] sm:$0xff] }
 0x658   : > { %2045 = vpow2.f32 %v1213_v22  ;;  %v1384_v25 = vsel %vm769_vm2, %v1381_v23, -inf }
 0x659   : > { %1385 = vmax.xlane.f32.xlu1 %v1384_v25 }
 0x65b   : > { %v1326_v26 = vpop.f32.mrf.mxu3 }
 0x65d   : > { %v1382_v27 = vpop.f32.mrf.mxu1 }
 0x65e   : > { %v2046_v28 = vpop.eup %2045 }
 0x65f   : > { %v1218_v29 = vpack.c.bf16 %v2046_v28, %v2046_v28  ;;  %v1215_v57 = vsel %vm769_vm2, %v2046_v28, 0.0 }
 0x661   : > { %1903 = vmatmul.msk.bf16.vlgmr.msra.gmra.mxu0 %vm769_vm2, %v1218_v29 }
 0x666   : > { %v1395_v32 = vpop.permute.xlu0 %1394 }
 0x667   : > { %v1400_v33 = vsel %vm802_vm3, %v1395_v32, 0 }
 0x668   : > { %1409 = vmatpush.bf16.msrb.mxu2 %v1400_v33 }
 0x66f   : > { %1338 = vrot.lane.b32.xlu2 %v1281_v4, %s2105_s4 }
 0x6ac   : > { %v1271_v35 = vpop.xlane.xlu2 %1270 }
 0x6ad   : > { %v1272_v36 = vsub.f32 %v1266_v14, %v1271_v35 }
 0x6af   : > { %v1273_v37 = vmul.f32 1.442695, %v1272_v36  ;;  %v1969_v36 = vld [vmem:[%s2263_s17 + $0x8] sm:$0xff] }
 0x6b1   : > { %2047 = vpow2.f32 %v1273_v37  ;;  %v1973_v37 = vld [vmem:[%s2268_s2 + $0x18] sm:$0xff] }
 0x6b2   : > { %1569 = vmatpush.bf16.msra.mxu1 %v1973_v37 }
 0x6b7   : > { %v2048_v38 = vpop.eup %2047 }
 0x6b8   : > { %v1278_v39 = vpack.c.bf16 %v2048_v38, %v2048_v38  ;;  %v1275_v40 = vsel %vm769_vm2, %v2048_v38, 0.0 }
 0x6b9   : > { %1276 = vadd.xlane.f32.xlu1 %v1275_v40 }
 0x6ba   : > { %1905 = vmatmul.msk.bf16.vlgmr.msra.gmra.mxu2 %vm769_vm2, %v1278_v39  ;;  %v1972_v39 = vld [vmem:[%s2268_s2 + $0x10] sm:$0xff] }
 0x6bb   : > { %1570 = vmatpush.bf16.msra.mxu1 %v1972_v39 }
 0x6ca   : > { %v1330_v41 = vpop.xlane.xlu2 %1329 }
 0x6cb   : > { %v1331_v43 = vsub.f32 %v1325_v20, %v1330_v41 }
 0x6cc   : > { %v1386_v44 = vpop.xlane.xlu1 %1385 }
 0x6cd   : > { %v1332_v45 = vmul.f32 1.442695, %v1331_v43  ;;  %v1387_v46 = vsub.f32 %v1381_v23, %v1386_v44 }
 0x6cf   : > { %2049 = vpow2.f32 %v1332_v45  ;;  %v1388_v47 = vmul.f32 1.442695, %v1387_v46 }
 0x6d1   : > { %2051 = vpow2.f32 %v1388_v47 }
 0x6d2   : > { %v1339_v48 = vpop.permute.xlu2 %1338 }
 0x6d3   : > { %v1344_v49 = vsel %vm802_vm3, %v1339_v48, 0  ;;  %v1485_v48 = vperm.slane %v2371_v34, 3 }
 0x6d4   : > { %1353 = vmatpush.bf16.msrb.mxu0 %v1344_v49 }
 0x6d5   : > { %v2050_v50 = vpop.eup %2049 }
 0x6d6   : > { %v1337_v51 = vpack.c.bf16 %v2050_v50, %v2050_v50  ;;  %v1334_v52 = vsel %vm769_vm2, %v2050_v50, 0.0  ;;  %v1487_v50 = vperm.slane %v2371_v34, 4 }
 0x6d7   : > { %v2052_v53 = vpop.eup %2051  ;;  %1335 = vadd.xlane.f32.xlu1 %v1334_v52 }
 0x6d8   : > { %v1393_v54 = vpack.c.bf16 %v2052_v53, %v2052_v53  ;;  %1907 = vmatmul.msk.bf16.vlgmr.msrb.gmra.mxu0 %vm769_vm2, %v1337_v51  ;;  %v1390_v55 = vsel %vm769_vm2, %v2052_v53, 0.0 }
 0x6d9   : > { %1391 = vadd.xlane.f32.xlu0 %v1390_v55  ;;  %1519 = vmatpush.bf16.msra.mxu0 %v1969_v36  ;;  %v1971_v55 = vld [vmem:[%s2268_s2 + $0x8] sm:$0xff] }
 0x6da   : > { %1909 = vmatmul.msk.bf16.vlgmr.msrb.gmra.mxu2 %vm769_vm2, %v1393_v54  ;;  %1571 = vmatpush.bf16.msra.mxu1 %v1971_v55 }
 0x6dd   : > { %1520 = vmatpush.bf16.msra.mxu0 %v1968_v9 }
 0x6de   : > { %v1234_v56 = vpop.f32.mrf.mxu0 }
 0x6df   : > { %1216 = vadd.xlane.f32.xlu1 %v1215_v57  ;;  %v2024_v57 = vld [vmem:[%s637_s0] ss:$0 sm:$0xff] }
 0x6e6   : > { %v1236_v58 = vpop.f32.mrf.mxu0 }
 0x72c   : > { %v1277_v59 = vpop.xlane.xlu1 %1276 }
 0x72d   : > { %2053 = vrcp.f32 %v1277_v59 }
 0x733   : > { %v2054_v60 = vpop.eup %2053 }
 0x73d   : > { %v1299_v61 = vpop.f32.mrf.mxu2 }
 0x73e   : > { %v1304_v62 = vmul.f32 %v2054_v60, %v1299_v61 }
 0x740   : > { %1418 = vrot.lane.b32.xlu2 %v1304_v62, %s2108_s29 }
 0x745   : > { %v1301_v63 = vpop.f32.mrf.mxu2 }
 0x746   : > { %v1536_v63 = vperm.slane %v2371_v34, 0 }
 0x74a   : > { %v1336_v0 = vpop.xlane.xlu1 %1335 }
 0x74b   : > { %2055 = vrcp.f32 %v1336_v0 }
 0x74c   : > { %v1392_v1 = vpop.xlane.xlu0 %1391 }
 0x74d   : > { %2057 = vrcp.f32 %v1392_v1 }
 0x751   : > { %v2056_v2 = vpop.eup %2055 }
 0x752   : > { %v1217_v14 = vpop.xlane.xlu1 %1216 }
 0x753   : > { %v2058_v6 = vpop.eup %2057  ;;  %2059 = vrcp.f32 %v1217_v14 }
 0x755   : > { %v1355_v3 = vpop.f32.mrf.mxu0 }
 0x756   : > { %v1360_v4 = vmul.f32 %v2056_v2, %v1355_v3 }
 0x758   : > { %1422 = vrot.lane.b32.xlu1 %v1360_v4, %s2109_s21 }
 0x759   : > { %v2060_v16 = vpop.eup %2059 }
 0x75a   : > { %v1239_v17 = vmul.f32 %v2060_v16, %v1234_v56  ;;  %v1970_v56 = vld [vmem:[%s2268_s2] sm:$0xff] }
 0x75b   : > { %1572 = vmatpush.bf16.msra.mxu1 %v1970_v56 }
 0x75d   : > { %v1357_v7 = vpop.f32.mrf.mxu0  ;;  %v1411_v5 = vpop.f32.mrf.mxu2 }
 0x75e   : > { %v1416_v8 = vmul.f32 %v2058_v6, %v1411_v5 }
 0x760   : > { %1426 = vrot.lane.b32.xlu2 %v1416_v8, %s2110_s28 }
 0x765   : > { %v1413_v10 = vpop.f32.mrf.mxu2 }
 0x79a   : > { %v1419_v15 = vpop.permute.xlu2 %1418 }
 0x79b   : > { %v1429_v18 = vsel %vm769_vm2, %v1239_v17, %v1419_v15 }
 0x7ba   : > { %v1427_v20 = vpop.permute.xlu2 %1426 }
 0x7ca   : > { %v1423_v19 = vpop.permute.xlu1 %1422 }
 0x7cb   : > { %v1430_v21 = vsel %vm1011_vm4, %v1429_v18, %v1423_v19 }
 0x7cc   : > { %v1431_v22 = vsel %vm1013_vm5, %v1430_v21, %v1427_v20  ;;  %v1601_v21 = vperm.slane %v2371_v34, 5 }
 0x7cd   : > { %v1432_v23 = vpack.c.bf16 %v1431_v22, %v1431_v22 }
 0x7cf   : > { %1918 = vmatmul.msk.bf16.vlgmr.msrb.gmra.mxu3 %vm687_vm1, %v1432_v23  ;;  %v1603_v23 = vperm.slane %v2371_v34, 6 }
 0x852   : > { %v1458_v25 = vpop.f32.mrf.mxu3 }
 0x853   : > { %v1459_v26 = vadd.f32 %v1458_v25, %v1433_v24 }
 0x855   : > { %v1462_v27 = vadd.f32 %v1459_v26, %v2375_v42 }
 0x857   : > { %v1463_v28 = vsel %vm687_vm1, %v1462_v27, 0.0 }
 0x858   : > { %1464 = vadd.xlane.f32.xlu2 %v1463_v28 }
 0x85a   : > { %v1460_v29 = vpop.f32.mrf.mxu3 }
 0x8cb   : > { %v1465_v30 = vpop.xlane.xlu2 %1464 }
 0x8cc   : > { %v1466_v31 = vmul.f32 %v1465_v30, %v2358_v11 }
 0x8ce   : > { %v1467_v32 = vsub.f32 %v1462_v27, %v1466_v31 }
 0x8d0   : > { %v1468_v33 = vmul.f32 %v1467_v32, %v1467_v32 }
 0x8d2   : > { %v1469_v35 = vsel %vm687_vm1, %v1468_v33, 0.0 }
 0x8d3   : > { %1470 = vadd.xlane.f32.xlu1 %v1469_v35 }
 0x946   : > { %v1471_v38 = vpop.xlane.xlu1 %1470 }
 0x947   : > { %v1472_v42 = vmul.f32 %v1471_v38, %v2358_v11 }
 0x949   : > { %v1473_v40 = vadd.f32 1e-05, %v1472_v42 }
 0x94b   : > { %2061 = vrsqrt.f32 %v1473_v40  ;;  %vm1480_vm11 = vweird.f32 %v1473_v40 }
 0x951   : > { %v2062_v41 = vpop.eup %2061 }
 0x952   : > { %v1475_v43 = vmul.f32 %v2062_v41, %v1473_v40  ;;  %vm1481_vm10 = vweird.f32 %v2062_v41 }
 0x953   : > { %vm1482_vm12 = vmor %vm1480_vm11, %vm1481_vm10 }
 0x954   : > { %v1476_v44 = vmul.f32 %v2062_v41, %v1475_v43 }
 0x956   : > { %v1477_v45 = vmul.f32 0.5, %v1476_v44 }
 0x958   : > { %v1478_v46 = vsub.f32 1.5, %v1477_v45 }
 0x95a   : > { %v1479_v47 = vmul.f32 %v2062_v41, %v1478_v46 }
 0x95c   : > { %v1483_v49 = vsel %vm1482_vm12, %v2062_v41, %v1479_v47 }
 0x95d   : > { %v1484_v51 = vmul.f32 %v1483_v49, %v1467_v32 }
 0x95f   : > { %v1486_v52 = vmul.f32 %v1485_v48, %v1484_v51 }
 0x961   : > { %v1488_v53 = vadd.f32 %v1487_v50, %v1486_v52 }
 0x963   : > { %v1489_v54 = vpack.c.bf16 %v1488_v53, %v1488_v53 }
 0x965   : > { %1927 = vmatmul.msk.bf16.vlgmr.msra.gmra.mxu0 %vm687_vm1, %v1489_v54 }
 0x9e2   : > { %v1522_v58 = vpop.f32.mrf.mxu0 }
 0x9e3   : > { %v1523_v59 = vadd.f32 %v2024_v57, %v1522_v58 }
 0x9e5   : > { %v1526_v60 = vmax.f32 %v1523_v59, 0.0 }
 0x9e7   : > { %v1527_v61 = vpack.c.bf16 %v1526_v60, %v1526_v60 }
 0x9e9   : > { %1944 = vmatmul.msk.bf16.vlgmr.msra.gmra.mxu1 %vm1561_vm13, %v1527_v61 }
 0x9ea   : > { %v1524_v62 = vpop.f32.mrf.mxu0 }
 0xa66   : > { %v1574_v0 = vpop.f32.mrf.mxu1 }
 0xa67   : > { %v1575_v1 = vadd.f32 %v1574_v0, %v1536_v63 }
 0xa69   : > { %v1578_v2 = vadd.f32 %v1575_v1, %v1488_v53 }
 0xa6b   : > { %v1579_v3 = vsel %vm687_vm1, %v1578_v2, 0.0 }
 0xa6c   : > { %1580 = vadd.xlane.f32.xlu0 %v1579_v3 }
 0xa6e   : > { %v1576_v4 = vpop.f32.mrf.mxu1 }
 0xadf   : > { %v1581_v6 = vpop.xlane.xlu0 %1580 }
 0xae0   : > { %v1582_v7 = vmul.f32 %v1581_v6, %v2358_v11 }
 0xae2   : > { %v1583_v5 = vsub.f32 %v1578_v2, %v1582_v7 }
 0xae4   : > { %v1584_v8 = vmul.f32 %v1583_v5, %v1583_v5 }
 0xae6   : > { %v1585_v10 = vsel %vm687_vm1, %v1584_v8, 0.0 }
 0xae7   : > { %1586 = vadd.xlane.f32.xlu0 %v1585_v10 }
 0xb5a   : > { %v1587_v12 = vpop.xlane.xlu0 %1586 }
 0xb5b   : > { %v1588_v13 = vmul.f32 %v1587_v12, %v2358_v11 }
 0xb5d   : > { %v1589_v14 = vadd.f32 1e-05, %v1588_v13 }
 0xb5f   : > { %2063 = vrsqrt.f32 %v1589_v14  ;;  %vm1596_vm15 = vweird.f32 %v1589_v14 }
 0xb65   : > { %v2064_v15 = vpop.eup %2063 }
 0xb66   : > { %v1591_v16 = vmul.f32 %v2064_v15, %v1589_v14  ;;  %vm1597_vm14 = vweird.f32 %v2064_v15 }
 0xb67   : > { %vm1598_vm0 = vmor %vm1596_vm15, %vm1597_vm14 }
 0xb68   : > { %v1592_v17 = vmul.f32 %v2064_v15, %v1591_v16 }
 0xb6a   : > { %v1593_v18 = vmul.f32 0.5, %v1592_v17 }
 0xb6c   : > { %v1594_v19 = vsub.f32 1.5, %v1593_v18 }
 0xb6e   : > { %v1595_v20 = vmul.f32 %v2064_v15, %v1594_v19 }
 0xb70   : > { %v1599_v22 = vsel %vm1598_vm0, %v2064_v15, %v1595_v20 }
 0xb71   : > { %v1600_v24 = vmul.f32 %v1599_v22, %v1583_v5 }
 0xb73   : > { %v1602_v25 = vmul.f32 %v1601_v21, %v1600_v24 }
 0xb75   : > { %v1604_v11 = vadd.f32 %v1603_v23, %v1602_v25 }
 0xb77   : > { %1605 = vst.msk [vmem:[#allocation2] sm:$0xff] %vm687_vm1, %v1604_v11 }
 0xb78   : > { %1606 = vst.msk [vmem:[%s646_s27] sm:$0xff] %vm687_vm1, %v1604_v11 }
 0xb79 PF: > { %s2523_s0 = sld [smem:[#allocation6_spill]] }
 0xb7a   : > { %s2524_s25 = sld [smem:[#allocation4_spill]] }
 0xb7b   : > { %s2525_s26 = sld [smem:[#allocation5_spill]] }
 0xb7c   : > { %s2526_s27 = sld [smem:[#allocation7_spill]] }
 0xb7d   : > { %s2527_s28 = sld [smem:[#allocation8_spill]] }
 0xb7f   : > { %s23_s29 = sadd.s32 1, %s2523_s0  }
 0xb80   : > { %p20_p8 = scmp.ge.s32.totalorder %s23_s29, 6  }
 0xb82   :  { %22 = sbr.rel (!%p20_p8) target bundleno = 9 (0x9), region = 143 }

</bundles_post_ra>
